<compile_context>
chip_gen: v7x
topology: tpu7x:2x2x1
jax: 0.10.0
libtpu: 0.0.40
codegen_flags: <defaults>
</compile_context>

<pallas_src>
import functools

import jax
import jax.numpy as jnp
from jax.experimental import pallas as pl
from jax.experimental.pallas import tpu as pltpu

# ---- small, module-consistent sizes -------------------------------------------------
B = 8        # batch (source.shape[1]) — >=8 fills the sublanes on every (B, ·) vector op
E = 16       # embedding_size
H = 32       # hidden_size
V_IN = 16    # len(input_index)
V_OUT = 16   # len(output_index)
T_SRC = 8    # encoder sequence length
T_TGT = 8    # decoder sequence length (target.shape[0])
GP = 128     # per-gate lane pitch in stacked gate weights (keeps gate slices vreg-aligned)

# Spare lanes of gate-0's 128-lane slot (live gate lanes are [0, H)):
ATT_COL = H          # column holding wee (enc) / weh (dec) -> energy halves fall out of gh matmuls
FC_COL = 64          # columns [FC_COL, FC_COL+V_OUT) of w_h_dec hold fc_w -> deferred logits

# Row offsets inside the packed weight slab
R_WXE = 0                    # encoder input projection (embedding folded)   (V_IN rows)
R_WHE = R_WXE + V_IN         # encoder hidden weights (+ wee column)          (H rows)
R_WCD = R_WHE + H            # decoder fused [context | one-hot] projection   (H + V_OUT rows)
R_WHD = R_WCD + H + V_OUT    # decoder hidden weights (+ weh, fc columns)     (H rows)
W_ROWS = R_WHD + H           # = 128


def _full_spec(shape):
  nd = len(shape)
  return pl.BlockSpec(shape, lambda i, _nd=nd: (0,) * _nd)


# ======================================================================================
# Fused kernel: encoder GRU over the source, attention + decoder GRU + output projection
# with the greedy feedback loop (argmax -> next input), all in one invocation.
# ======================================================================================
def _seq2seq_kernel(tok_ref, w_ref, b_ref, out_ref, *, t_src, t_tgt):
  f32 = jnp.float32
  bf16 = jnp.bfloat16
  bsz = tok_ref.shape[1]

  # ---- unpack the two parameter slabs (static slices of loaded values) ---------------
  w = w_ref[...]                                   # (128, 3*GP) bf16
  bias = b_ref[...]                                # (8,   3*GP) f32

  w_x_enc = w[R_WXE:R_WXE + V_IN]                  # (V_IN, 3*GP)   embedding folded
  w_h_enc = w[R_WHE:R_WHE + H]                     # (H,    3*GP)   + wee at col ATT_COL
  w_cd_dec = w[R_WCD:R_WCD + H + V_OUT]            # (H+V_OUT, 3*GP) fused [context|one-hot]
  w_h_dec = w[R_WHD:R_WHD + H]                     # (H,    3*GP)   + weh / fc in spare lanes
  wfc = w_h_dec[:, FC_COL:FC_COL + V_OUT]          # (H, V_OUT)     for the final output row

  b_i_enc = bias[0:1]
  b_h_enc = bias[1:2]
  b_i_dec = bias[2:3]
  b_h_dec = bias[3:4]
  wee_row = bias[4:5, 0:H]                         # (1, H)  raw wee (last encoder state's energy)
  att_bias = bias[4:5, ATT_COL:ATT_COL + 1]        # (1, 1)  attention energy bias
  b_fc = bias[4:5, FC_COL:FC_COL + V_OUT]          # (1, V_OUT)

  tok = tok_ref[...]                               # (t_src + t_tgt, B) int32
  v_in_iota = jax.lax.broadcasted_iota(jnp.int32, (bsz, V_IN), 1)
  v_out_iota = jax.lax.broadcasted_iota(jnp.int32, (bsz, V_OUT), 1)

  def gru_cell(gi, gh, h):
    # gi/gh carry the gates [r | z | n] at lane offsets 0, GP, 2*GP (vreg-aligned slices).
    r = jax.nn.sigmoid(gi[:, 0:H] + gh[:, 0:H])
    z = jax.nn.sigmoid(gi[:, GP:GP + H] + gh[:, GP:GP + H])
    n = jnp.tanh(gi[:, 2 * GP:2 * GP + H] + r * gh[:, 2 * GP:2 * GP + H])
    return (1.0 - z) * n + z * h

  # ---------------- encoder: single-layer GRU over the source sequence ----------------
  # All 8 state-independent input projections done in ONE batched matmul, off the h-chain.
  src_oh = (tok[0:t_src, :, None] == v_in_iota).astype(bf16)          # (T_src, B, V_in)
  gi_all = jnp.dot(src_oh.reshape(t_src * bsz, V_IN), w_x_enc,
                   preferred_element_type=f32) + b_i_enc              # (T_src*B, 3*GP)

  h = jnp.zeros((bsz, H), f32)
  enc_states = []
  energy_cols = []
  for t in range(t_src):
    gh = jnp.dot(h.astype(bf16), w_h_enc, preferred_element_type=f32) + b_h_enc
    if t > 0:
      energy_cols.append(gh[:, ATT_COL:ATT_COL + 1])   # = enc_{t-1} . wee (free column of gh)
    h = gru_cell(gi_all[t * bsz:(t + 1) * bsz], gh, h)
    enc_states.append(h)                               # encoder_op[t] (kept in registers)
  energy_cols.append(jnp.sum(h * wee_row, axis=1, keepdims=True))     # last state's wee half
  energy_enc = jnp.concatenate(energy_cols, axis=1) + att_bias        # (B, T_src)

  # ---------------- decoder: attention + GRU + projection, greedy feedback ------------
  xoh = (tok[t_src:t_src + 1, :, None] == v_out_iota).astype(bf16)[0]  # one-hot(target[0])
  logits_rows = [jnp.zeros((bsz, V_OUT), f32)]                         # outputs[0] stays zero

  def attention_and_gru(ghx, h, xoh):
    e_h = ghx[:, ATT_COL:ATT_COL + 1]                                  # hidden half of energy
    energy = jnp.maximum(energy_enc + e_h, 0.0)                        # (B, T_src)
    m = jnp.max(energy, axis=1, keepdims=True)
    p = jnp.exp(energy - m)
    attn = p * pl.reciprocal(jnp.sum(p, axis=1, keepdims=True), approx=True)
    context = attn[:, 0:1] * enc_states[0]
    for ts in range(1, t_src):
      context = context + attn[:, ts:ts + 1] * enc_states[ts]          # (B, H)
    cat = jnp.concatenate([context.astype(bf16), xoh], axis=1)         # (B, H+V_OUT)
    gi = jnp.dot(cat, w_cd_dec, preferred_element_type=f32) + b_i_dec  # one fused matmul
    return gru_cell(gi, ghx, h)

  for t in range(1, t_tgt):
    # gh of step t also carries e_h (col ATT_COL) and fc(h_{t-1}) (cols FC_COL:FC_COL+V_OUT).
    ghx = jnp.dot(h.astype(bf16), w_h_dec, preferred_element_type=f32) + b_h_dec
    if t > 1:
      logits = ghx[:, FC_COL:FC_COL + V_OUT] + b_fc                    # = outputs[t-1]
      logits_rows.append(logits)
      mx = jnp.max(logits, axis=1, keepdims=True)
      xoh = (logits == mx).astype(bf16)        # greedy feedback (multi-hot only on exact ties)
    h = attention_and_gru(ghx, h, xoh)

  # last output row: fc(h_{T-1}) (the deferred scheme above stops one row short)
  logits_rows.append(jnp.dot(h.astype(bf16), wfc, preferred_element_type=f32) + b_fc)

  out_ref[...] = jnp.stack(logits_rows, axis=0)                        # single stacked store


def seq2seq_attention_forward(params, source, target):
  """Equivalent of Seq2Seq_Attention.forward(source, target) with tfr=0 (greedy)."""
  wslab, bslab = params
  source = source.astype(jnp.int32)
  target = target.astype(jnp.int32)
  t_src, bsz = source.shape
  t_tgt = target.shape[0]

  tok = jnp.concatenate([source, target], axis=0)      # one token slab -> one DMA
  kernel = functools.partial(_seq2seq_kernel, t_src=t_src, t_tgt=t_tgt)

  operands = (tok, wslab, bslab)
  in_specs = [_full_spec(x.shape) for x in operands]

  return pl.pallas_call(
      kernel,
      out_shape=jax.ShapeDtypeStruct((t_tgt, bsz, V_OUT), jnp.float32),
      grid_spec=pltpu.PrefetchScalarGridSpec(
          num_scalar_prefetch=0,
          grid=(1,),
          in_specs=in_specs,
          out_specs=_full_spec((t_tgt, bsz, V_OUT))),
      compiler_params=pltpu.CompilerParams(dimension_semantics=("arbitrary",)),
  )(*operands)


# ======================================================================================
# Parameter init (raw, PyTorch-like) and folding into the kernel's packed slabs.
# ======================================================================================
def init_raw_params(key):
  keys = iter(jax.random.split(key, 64))

  def rnd(shape, scale=0.2):
    return (scale * jax.random.normal(next(keys), shape)).astype(jnp.float32)

  return {
      "emb_enc": rnd((V_IN, E)),
      "enc_w_i": [rnd((E, H)) for _ in range(3)],    # W_ir, W_iz, W_in
      "enc_w_h": [rnd((H, H)) for _ in range(3)],    # W_hr, W_hz, W_hn
      "enc_b_i": [rnd((1, H)) for _ in range(3)],
      "enc_b_h": [rnd((1, H)) for _ in range(3)],
      "attn_weh": rnd((1, H)),                       # energy weights (hidden part)
      "attn_wee": rnd((1, H)),                       # energy weights (encoder part)
      "attn_be": rnd((1, 1)),
      "emb_dec": rnd((V_OUT, E)),
      "dec_w_c": [rnd((H, H)) for _ in range(3)],    # W_ih, context part (r,z,n)
      "dec_w_e": [rnd((E, H)) for _ in range(3)],    # W_ih, embedding part (r,z,n)
      "dec_w_h": [rnd((H, H)) for _ in range(3)],
      "dec_b_i": [rnd((1, H)) for _ in range(3)],
      "dec_b_h": [rnd((1, H)) for _ in range(3)],
      "fc_w": rnd((H, V_OUT)),
      "fc_b": rnd((1, V_OUT)),
  }


def _stack_gates(mats):
  """[3 x (rows, H)] -> (rows, 3*GP), gate g at lanes [g*GP, g*GP + H)."""
  rows = mats[0].shape[0]
  out = jnp.zeros((rows, 3 * GP), jnp.float32)
  for g, m in enumerate(mats):
    out = out.at[:, g * GP:g * GP + H].set(m.astype(jnp.float32))
  return out


def fold_params(raw):
  """Fold embeddings / attention / fc into two flat slabs: bf16 weights + f32 biases/misc."""
  dot = functools.partial(jnp.dot, precision=jax.lax.Precision.HIGHEST)

  w_x_enc = _stack_gates([dot(raw["emb_enc"], w) for w in raw["enc_w_i"]])   # (V_IN, 3*GP)
  w_h_enc = _stack_gates(raw["enc_w_h"])                                     # (H, 3*GP)
  w_h_enc = w_h_enc.at[:, ATT_COL].set(raw["attn_wee"][0])                   # wee in spare lane

  w_c = _stack_gates(raw["dec_w_c"])                                         # (H, 3*GP)
  w_e = _stack_gates([dot(raw["emb_dec"], w) for w in raw["dec_w_e"]])       # (V_OUT, 3*GP)
  w_cd_dec = jnp.concatenate([w_c, w_e], axis=0)                             # (H+V_OUT, 3*GP)

  w_h_dec = _stack_gates(raw["dec_w_h"])                                     # (H, 3*GP)
  w_h_dec = w_h_dec.at[:, ATT_COL].set(raw["attn_weh"][0])                   # weh in spare lane
  w_h_dec = w_h_dec.at[:, FC_COL:FC_COL + V_OUT].set(raw["fc_w"])            # fc in spare lanes

  wslab = jnp.concatenate([w_x_enc, w_h_enc, w_cd_dec, w_h_dec],
                          axis=0).astype(jnp.bfloat16)                       # (128, 3*GP)

  bslab = jnp.zeros((8, 3 * GP), jnp.float32)
  bslab = bslab.at[0].set(_stack_gates(raw["enc_b_i"])[0])
  bslab = bslab.at[1].set(_stack_gates(raw["enc_b_h"])[0])
  bslab = bslab.at[2].set(_stack_gates(raw["dec_b_i"])[0])
  bslab = bslab.at[3].set(_stack_gates(raw["dec_b_h"])[0])
  bslab = bslab.at[4, 0:H].set(raw["attn_wee"][0])
  bslab = bslab.at[4, ATT_COL].set(raw["attn_be"][0, 0])
  bslab = bslab.at[4, FC_COL:FC_COL + V_OUT].set(raw["fc_b"][0])
  return (wslab, bslab)


# ======================================================================================
# Plain-JAX reference (mirrors the PyTorch module structure) for a numerical check.
# ======================================================================================
def reference_forward(raw, source, target):
  dot = functools.partial(jnp.dot, precision=jax.lax.Precision.HIGHEST)
  emb_src = jnp.take(raw["emb_enc"], source, axis=0)                 # (T_src, B, E)
  bsz = source.shape[1]

  h = jnp.zeros((bsz, H), jnp.float32)
  enc_states = []
  for t in range(source.shape[0]):
    x = emb_src[t]
    r = jax.nn.sigmoid(dot(x, raw["enc_w_i"][0]) + raw["enc_b_i"][0]
                       + dot(h, raw["enc_w_h"][0]) + raw["enc_b_h"][0])
    z = jax.nn.sigmoid(dot(x, raw["enc_w_i"][1]) + raw["enc_b_i"][1]
                       + dot(h, raw["enc_w_h"][1]) + raw["enc_b_h"][1])
    n = jnp.tanh(dot(x, raw["enc_w_i"][2]) + raw["enc_b_i"][2]
                 + r * (dot(h, raw["enc_w_h"][2]) + raw["enc_b_h"][2]))
    h = (1.0 - z) * n + z * h
    enc_states.append(h)
  enc = jnp.stack(enc_states, axis=0)                                # (T_src, B, H)

  outputs = [jnp.zeros((bsz, V_OUT), jnp.float32)]
  x_tok = target[0]
  for t in range(1, target.shape[0]):
    emb = jnp.take(raw["emb_dec"], x_tok, axis=0)
    energy = jnp.maximum(
        jnp.sum(enc * raw["attn_wee"].reshape(1, 1, H), axis=2)
        + jnp.sum(h * raw["attn_weh"], axis=1)[None, :]
        + raw["attn_be"][0, 0], 0.0)
    attn = jax.nn.softmax(energy, axis=0)
    context = jnp.sum(attn[:, :, None] * enc, axis=0)
    r = jax.nn.sigmoid(dot(context, raw["dec_w_c"][0]) + dot(emb, raw["dec_w_e"][0])
                       + raw["dec_b_i"][0] + dot(h, raw["dec_w_h"][0]) + raw["dec_b_h"][0])
    z = jax.nn.sigmoid(dot(context, raw["dec_w_c"][1]) + dot(emb, raw["dec_w_e"][1])
                       + raw["dec_b_i"][1] + dot(h, raw["dec_w_h"][1]) + raw["dec_b_h"][1])
    n = jnp.tanh(dot(context, raw["dec_w_c"][2]) + dot(emb, raw["dec_w_e"][2])
                 + raw["dec_b_i"][2] + r * (dot(h, raw["dec_w_h"][2]) + raw["dec_b_h"][2]))
    h = (1.0 - z) * n + z * h
    logits = dot(h, raw["fc_w"]) + raw["fc_b"]
    outputs.append(logits)
    x_tok = jnp.argmax(logits, axis=1)
  return jnp.stack(outputs, axis=0)


if __name__ == "__main__":
  key = jax.random.PRNGKey(0)
  kp, ksrc, ktgt = jax.random.split(key, 3)
  raw = init_raw_params(kp)
  params = fold_params(raw)

  source = jax.random.randint(ksrc, (T_SRC, B), 0, V_IN, dtype=jnp.int32)
  target = jax.random.randint(ktgt, (T_TGT, B), 0, V_OUT, dtype=jnp.int32)

  fwd = jax.jit(seq2seq_attention_forward)
  out = jax.block_until_ready(fwd(params, source, target))

  assert out.shape == (T_TGT, B, V_OUT), out.shape
  assert bool(jnp.all(jnp.isfinite(out)))
  assert bool(jnp.all(out[0] == 0.0))   # outputs[0] untouched, as in the reference module

  # Numerical check against the plain-JAX (f32, unfolded) reference. Tolerance is loosened to
  # 5e-2 because the kernel's matmul operands are bf16 (element-wise math stays f32).
  ref = reference_forward(raw, source, target)
  # Step 1 has no greedy-feedback dependence, so it is a deterministic comparison.
  assert float(jnp.max(jnp.abs(out[1] - ref[1]))) < 5e-2
  # Full comparison only if both follow the same greedy path (avoids spurious near-tie flips).
  if bool(jnp.all(jnp.argmax(out[1:], axis=-1) == jnp.argmax(ref[1:], axis=-1))):
    assert float(jnp.max(jnp.abs(out - ref))) < 5e-2

  print("KERNEL_OK")
</pallas_src>

<mosaic_0001>
module attributes {stable_mosaic.version = 11 : i64} {
  func.func @_seq2seq_kernel(%arg0: i32, %arg1: memref<16x8xi32, #tpu.memory_space<vmem>>, %arg2: memref<128x384xbf16, #tpu.memory_space<vmem>>, %arg3: memref<8x384xf32, #tpu.memory_space<vmem>>, %arg4: memref<8x8x16xf32, #tpu.memory_space<vmem>>) attributes {dimension_semantics = [#tpu.dimension_semantics<arbitrary>], iteration_bounds = array<i64: 1>, scalar_prefetch = 0 : i64, scratch_operands = 0 : i64, tpu.core_type = #tpu.core_type<tc>, window_params = [{pipeline_mode = #tpu.pipeline_mode<synchronous>, transform_indices = @transform_0, window_bounds = array<i64: 16, 8>}, {pipeline_mode = #tpu.pipeline_mode<synchronous>, transform_indices = @transform_1, window_bounds = array<i64: 128, 384>}, {pipeline_mode = #tpu.pipeline_mode<synchronous>, transform_indices = @transform_2, window_bounds = array<i64: 8, 384>}, {pipeline_mode = #tpu.pipeline_mode<synchronous>, transform_indices = @transform_3, window_bounds = array<i64: 8, 8, 16>}]} {
    %c0 = arith.constant 0 : index
    %c0_0 = arith.constant 0 : index
    %0 = vector.load %arg2[%c0, %c0_0] : memref<128x384xbf16, #tpu.memory_space<vmem>>, vector<128x384xbf16>
    %c0_1 = arith.constant 0 : index
    %c0_2 = arith.constant 0 : index
    %1 = vector.load %arg3[%c0_1, %c0_2] : memref<8x384xf32, #tpu.memory_space<vmem>>, vector<8x384xf32>
    %2 = vector.extract_strided_slice %0 {offsets = [0, 0], sizes = [16, 384], strides = [1, 1]} : vector<128x384xbf16> to vector<16x384xbf16>
    %3 = vector.extract_strided_slice %0 {offsets = [16, 0], sizes = [32, 384], strides = [1, 1]} : vector<128x384xbf16> to vector<32x384xbf16>
    %4 = vector.extract_strided_slice %0 {offsets = [48, 0], sizes = [48, 384], strides = [1, 1]} : vector<128x384xbf16> to vector<48x384xbf16>
    %5 = vector.extract_strided_slice %0 {offsets = [96, 0], sizes = [32, 384], strides = [1, 1]} : vector<128x384xbf16> to vector<32x384xbf16>
    %6 = vector.extract_strided_slice %5 {offsets = [0, 64], sizes = [32, 16], strides = [1, 1]} : vector<32x384xbf16> to vector<32x16xbf16>
    %7 = vector.extract_strided_slice %1 {offsets = [0, 0], sizes = [1, 384], strides = [1, 1]} : vector<8x384xf32> to vector<1x384xf32>
    %8 = vector.extract_strided_slice %1 {offsets = [1, 0], sizes = [1, 384], strides = [1, 1]} : vector<8x384xf32> to vector<1x384xf32>
    %9 = vector.extract_strided_slice %1 {offsets = [2, 0], sizes = [1, 384], strides = [1, 1]} : vector<8x384xf32> to vector<1x384xf32>
    %10 = vector.extract_strided_slice %1 {offsets = [3, 0], sizes = [1, 384], strides = [1, 1]} : vector<8x384xf32> to vector<1x384xf32>
    %11 = vector.extract_strided_slice %1 {offsets = [4, 0], sizes = [1, 32], strides = [1, 1]} : vector<8x384xf32> to vector<1x32xf32>
    %12 = vector.extract_strided_slice %1 {offsets = [4, 32], sizes = [1, 1], strides = [1, 1]} : vector<8x384xf32> to vector<1x1xf32>
    %13 = vector.extract_strided_slice %1 {offsets = [4, 64], sizes = [1, 16], strides = [1, 1]} : vector<8x384xf32> to vector<1x16xf32>
    %c0_3 = arith.constant 0 : index
    %c0_4 = arith.constant 0 : index
    %14 = vector.load %arg1[%c0_3, %c0_4] : memref<16x8xi32, #tpu.memory_space<vmem>>, vector<16x8xi32>
    %15 = tpu.iota {dimensions = array<i32: 1>} : vector<8x16xi32>
    %16 = tpu.iota {dimensions = array<i32: 1>} : vector<8x16xi32>
    %17 = vector.extract_strided_slice %14 {offsets = [0, 0], sizes = [8, 8], strides = [1, 1]} : vector<16x8xi32> to vector<8x8xi32>
    %18 = vector.shape_cast %17 : vector<8x8xi32> to vector<8x8x1xi32>
    %19 = vector.shape_cast %15 : vector<8x16xi32> to vector<1x8x16xi32>
    %20 = vector.broadcast %18 : vector<8x8x1xi32> to vector<8x8x16xi32>
    %21 = vector.broadcast %19 : vector<1x8x16xi32> to vector<8x8x16xi32>
    %22 = arith.cmpi eq, %20, %21 : vector<8x8x16xi32>
    %23 = arith.extui %22 : vector<8x8x16xi1> to vector<8x8x16xi32>
    %24 = arith.sitofp %23 : vector<8x8x16xi32> to vector<8x8x16xf32>
    %25 = arith.truncf %24 : vector<8x8x16xf32> to vector<8x8x16xbf16>
    %26 = vector.shape_cast %25 : vector<8x8x16xbf16> to vector<64x16xbf16>
    %cst = arith.constant dense<0.000000e+00> : vector<64x384xf32>
    %27 = tpu.matmul %26, %2, %cst {dimension_numbers = #tpu.dot_dimension_numbers<[1], [0], [0], [1], [0, 0, 1, 1], [], []>} : vector<64x16xbf16>, vector<16x384xbf16>, vector<64x384xf32> -> vector<64x384xf32>
    %28 = vector.broadcast %7 : vector<1x384xf32> to vector<64x384xf32>
    %29 = arith.addf %27, %28 : vector<64x384xf32>
    %cst_5 = arith.constant 0.000000e+00 : f32
    %30 = vector.broadcast %cst_5 : f32 to vector<8x32xf32>
    %31 = arith.truncf %30 : vector<8x32xf32> to vector<8x32xbf16>
    %cst_6 = arith.constant dense<0.000000e+00> : vector<8x384xf32>
    %32 = tpu.matmul %31, %3, %cst_6 {dimension_numbers = #tpu.dot_dimension_numbers<[1], [0], [0], [1], [0, 0, 1, 1], [], []>} : vector<8x32xbf16>, vector<32x384xbf16>, vector<8x384xf32> -> vector<8x384xf32>
    %33 = vector.broadcast %8 : vector<1x384xf32> to vector<8x384xf32>
    %34 = arith.addf %32, %33 : vector<8x384xf32>
    %35 = vector.extract_strided_slice %29 {offsets = [0, 0], sizes = [8, 384], strides = [1, 1]} : vector<64x384xf32> to vector<8x384xf32>
    %36 = vector.extract_strided_slice %35 {offsets = [0, 0], sizes = [8, 32], strides = [1, 1]} : vector<8x384xf32> to vector<8x32xf32>
    %37 = vector.extract_strided_slice %34 {offsets = [0, 0], sizes = [8, 32], strides = [1, 1]} : vector<8x384xf32> to vector<8x32xf32>
    %38 = arith.addf %36, %37 : vector<8x32xf32>
    %39 = arith.negf %38 : vector<8x32xf32>
    %40 = math.exp %39 : vector<8x32xf32>
    %cst_7 = arith.constant 1.000000e+00 : f32
    %41 = vector.broadcast %cst_7 : f32 to vector<8x32xf32>
    %42 = arith.addf %41, %40 : vector<8x32xf32>
    %43 = arith.divf %41, %42 : vector<8x32xf32>
    %44 = vector.extract_strided_slice %35 {offsets = [0, 128], sizes = [8, 32], strides = [1, 1]} : vector<8x384xf32> to vector<8x32xf32>
    %45 = vector.extract_strided_slice %34 {offsets = [0, 128], sizes = [8, 32], strides = [1, 1]} : vector<8x384xf32> to vector<8x32xf32>
    %46 = arith.addf %44, %45 : vector<8x32xf32>
    %47 = arith.negf %46 : vector<8x32xf32>
    %48 = math.exp %47 : vector<8x32xf32>
    %cst_8 = arith.constant 1.000000e+00 : f32
    %49 = vector.broadcast %cst_8 : f32 to vector<8x32xf32>
    %50 = arith.addf %49, %48 : vector<8x32xf32>
    %51 = arith.divf %49, %50 : vector<8x32xf32>
    %52 = vector.extract_strided_slice %35 {offsets = [0, 256], sizes = [8, 32], strides = [1, 1]} : vector<8x384xf32> to vector<8x32xf32>
    %53 = vector.extract_strided_slice %34 {offsets = [0, 256], sizes = [8, 32], strides = [1, 1]} : vector<8x384xf32> to vector<8x32xf32>
    %54 = arith.mulf %43, %53 : vector<8x32xf32>
    %55 = arith.addf %52, %54 : vector<8x32xf32>
    %56 = math.tanh %55 : vector<8x32xf32>
    %cst_9 = arith.constant 1.000000e+00 : f32
    %57 = vector.broadcast %cst_9 : f32 to vector<8x32xf32>
    %58 = arith.subf %57, %51 : vector<8x32xf32>
    %59 = arith.mulf %58, %56 : vector<8x32xf32>
    %60 = arith.mulf %51, %30 : vector<8x32xf32>
    %61 = arith.addf %59, %60 : vector<8x32xf32>
    %62 = arith.truncf %61 : vector<8x32xf32> to vector<8x32xbf16>
    %cst_10 = arith.constant dense<0.000000e+00> : vector<8x384xf32>
    %63 = tpu.matmul %62, %3, %cst_10 {dimension_numbers = #tpu.dot_dimension_numbers<[1], [0], [0], [1], [0, 0, 1, 1], [], []>} : vector<8x32xbf16>, vector<32x384xbf16>, vector<8x384xf32> -> vector<8x384xf32>
    %64 = vector.broadcast %8 : vector<1x384xf32> to vector<8x384xf32>
    %65 = arith.addf %63, %64 : vector<8x384xf32>
    %66 = vector.extract_strided_slice %65 {offsets = [0, 32], sizes = [8, 1], strides = [1, 1]} : vector<8x384xf32> to vector<8x1xf32>
    %67 = vector.extract_strided_slice %29 {offsets = [8, 0], sizes = [8, 384], strides = [1, 1]} : vector<64x384xf32> to vector<8x384xf32>
    %68 = vector.extract_strided_slice %67 {offsets = [0, 0], sizes = [8, 32], strides = [1, 1]} : vector<8x384xf32> to vector<8x32xf32>
    %69 = vector.extract_strided_slice %65 {offsets = [0, 0], sizes = [8, 32], strides = [1, 1]} : vector<8x384xf32> to vector<8x32xf32>
    %70 = arith.addf %68, %69 : vector<8x32xf32>
    %71 = arith.negf %70 : vector<8x32xf32>
    %72 = math.exp %71 : vector<8x32xf32>
    %cst_11 = arith.constant 1.000000e+00 : f32
    %73 = vector.broadcast %cst_11 : f32 to vector<8x32xf32>
    %74 = arith.addf %73, %72 : vector<8x32xf32>
    %75 = arith.divf %73, %74 : vector<8x32xf32>
    %76 = vector.extract_strided_slice %67 {offsets = [0, 128], sizes = [8, 32], strides = [1, 1]} : vector<8x384xf32> to vector<8x32xf32>
    %77 = vector.extract_strided_slice %65 {offsets = [0, 128], sizes = [8, 32], strides = [1, 1]} : vector<8x384xf32> to vector<8x32xf32>
    %78 = arith.addf %76, %77 : vector<8x32xf32>
    %79 = arith.negf %78 : vector<8x32xf32>
    %80 = math.exp %79 : vector<8x32xf32>
    %cst_12 = arith.constant 1.000000e+00 : f32
    %81 = vector.broadcast %cst_12 : f32 to vector<8x32xf32>
    %82 = arith.addf %81, %80 : vector<8x32xf32>
    %83 = arith.divf %81, %82 : vector<8x32xf32>
    %84 = vector.extract_strided_slice %67 {offsets = [0, 256], sizes = [8, 32], strides = [1, 1]} : vector<8x384xf32> to vector<8x32xf32>
    %85 = vector.extract_strided_slice %65 {offsets = [0, 256], sizes = [8, 32], strides = [1, 1]} : vector<8x384xf32> to vector<8x32xf32>
    %86 = arith.mulf %75, %85 : vector<8x32xf32>
    %87 = arith.addf %84, %86 : vector<8x32xf32>
    %88 = math.tanh %87 : vector<8x32xf32>
    %cst_13 = arith.constant 1.000000e+00 : f32
    %89 = vector.broadcast %cst_13 : f32 to vector<8x32xf32>
    %90 = arith.subf %89, %83 : vector<8x32xf32>
    %91 = arith.mulf %90, %88 : vector<8x32xf32>
    %92 = arith.mulf %83, %61 : vector<8x32xf32>
    %93 = arith.addf %91, %92 : vector<8x32xf32>
    %94 = arith.truncf %93 : vector<8x32xf32> to vector<8x32xbf16>
    %cst_14 = arith.constant dense<0.000000e+00> : vector<8x384xf32>
    %95 = tpu.matmul %94, %3, %cst_14 {dimension_numbers = #tpu.dot_dimension_numbers<[1], [0], [0], [1], [0, 0, 1, 1], [], []>} : vector<8x32xbf16>, vector<32x384xbf16>, vector<8x384xf32> -> vector<8x384xf32>
    %96 = vector.broadcast %8 : vector<1x384xf32> to vector<8x384xf32>
    %97 = arith.addf %95, %96 : vector<8x384xf32>
    %98 = vector.extract_strided_slice %97 {offsets = [0, 32], sizes = [8, 1], strides = [1, 1]} : vector<8x384xf32> to vector<8x1xf32>
    %99 = vector.extract_strided_slice %29 {offsets = [16, 0], sizes = [8, 384], strides = [1, 1]} : vector<64x384xf32> to vector<8x384xf32>
    %100 = vector.extract_strided_slice %99 {offsets = [0, 0], sizes = [8, 32], strides = [1, 1]} : vector<8x384xf32> to vector<8x32xf32>
    %101 = vector.extract_strided_slice %97 {offsets = [0, 0], sizes = [8, 32], strides = [1, 1]} : vector<8x384xf32> to vector<8x32xf32>
    %102 = arith.addf %100, %101 : vector<8x32xf32>
    %103 = arith.negf %102 : vector<8x32xf32>
    %104 = math.exp %103 : vector<8x32xf32>
    %cst_15 = arith.constant 1.000000e+00 : f32
    %105 = vector.broadcast %cst_15 : f32 to vector<8x32xf32>
    %106 = arith.addf %105, %104 : vector<8x32xf32>
    %107 = arith.divf %105, %106 : vector<8x32xf32>
    %108 = vector.extract_strided_slice %99 {offsets = [0, 128], sizes = [8, 32], strides = [1, 1]} : vector<8x384xf32> to vector<8x32xf32>
    %109 = vector.extract_strided_slice %97 {offsets = [0, 128], sizes = [8, 32], strides = [1, 1]} : vector<8x384xf32> to vector<8x32xf32>
    %110 = arith.addf %108, %109 : vector<8x32xf32>
    %111 = arith.negf %110 : vector<8x32xf32>
    %112 = math.exp %111 : vector<8x32xf32>
    %cst_16 = arith.constant 1.000000e+00 : f32
    %113 = vector.broadcast %cst_16 : f32 to vector<8x32xf32>
    %114 = arith.addf %113, %112 : vector<8x32xf32>
    %115 = arith.divf %113, %114 : vector<8x32xf32>
    %116 = vector.extract_strided_slice %99 {offsets = [0, 256], sizes = [8, 32], strides = [1, 1]} : vector<8x384xf32> to vector<8x32xf32>
    %117 = vector.extract_strided_slice %97 {offsets = [0, 256], sizes = [8, 32], strides = [1, 1]} : vector<8x384xf32> to vector<8x32xf32>
    %118 = arith.mulf %107, %117 : vector<8x32xf32>
    %119 = arith.addf %116, %118 : vector<8x32xf32>
    %120 = math.tanh %119 : vector<8x32xf32>
    %cst_17 = arith.constant 1.000000e+00 : f32
    %121 = vector.broadcast %cst_17 : f32 to vector<8x32xf32>
    %122 = arith.subf %121, %115 : vector<8x32xf32>
    %123 = arith.mulf %122, %120 : vector<8x32xf32>
    %124 = arith.mulf %115, %93 : vector<8x32xf32>
    %125 = arith.addf %123, %124 : vector<8x32xf32>
    %126 = arith.truncf %125 : vector<8x32xf32> to vector<8x32xbf16>
    %cst_18 = arith.constant dense<0.000000e+00> : vector<8x384xf32>
    %127 = tpu.matmul %126, %3, %cst_18 {dimension_numbers = #tpu.dot_dimension_numbers<[1], [0], [0], [1], [0, 0, 1, 1], [], []>} : vector<8x32xbf16>, vector<32x384xbf16>, vector<8x384xf32> -> vector<8x384xf32>
    %128 = vector.broadcast %8 : vector<1x384xf32> to vector<8x384xf32>
    %129 = arith.addf %127, %128 : vector<8x384xf32>
    %130 = vector.extract_strided_slice %129 {offsets = [0, 32], sizes = [8, 1], strides = [1, 1]} : vector<8x384xf32> to vector<8x1xf32>
    %131 = vector.extract_strided_slice %29 {offsets = [24, 0], sizes = [8, 384], strides = [1, 1]} : vector<64x384xf32> to vector<8x384xf32>
    %132 = vector.extract_strided_slice %131 {offsets = [0, 0], sizes = [8, 32], strides = [1, 1]} : vector<8x384xf32> to vector<8x32xf32>
    %133 = vector.extract_strided_slice %129 {offsets = [0, 0], sizes = [8, 32], strides = [1, 1]} : vector<8x384xf32> to vector<8x32xf32>
    %134 = arith.addf %132, %133 : vector<8x32xf32>
    %135 = arith.negf %134 : vector<8x32xf32>
    %136 = math.exp %135 : vector<8x32xf32>
    %cst_19 = arith.constant 1.000000e+00 : f32
    %137 = vector.broadcast %cst_19 : f32 to vector<8x32xf32>
    %138 = arith.addf %137, %136 : vector<8x32xf32>
    %139 = arith.divf %137, %138 : vector<8x32xf32>
    %140 = vector.extract_strided_slice %131 {offsets = [0, 128], sizes = [8, 32], strides = [1, 1]} : vector<8x384xf32> to vector<8x32xf32>
    %141 = vector.extract_strided_slice %129 {offsets = [0, 128], sizes = [8, 32], strides = [1, 1]} : vector<8x384xf32> to vector<8x32xf32>
    %142 = arith.addf %140, %141 : vector<8x32xf32>
    %143 = arith.negf %142 : vector<8x32xf32>
    %144 = math.exp %143 : vector<8x32xf32>
    %cst_20 = arith.constant 1.000000e+00 : f32
    %145 = vector.broadcast %cst_20 : f32 to vector<8x32xf32>
    %146 = arith.addf %145, %144 : vector<8x32xf32>
    %147 = arith.divf %145, %146 : vector<8x32xf32>
    %148 = vector.extract_strided_slice %131 {offsets = [0, 256], sizes = [8, 32], strides = [1, 1]} : vector<8x384xf32> to vector<8x32xf32>
    %149 = vector.extract_strided_slice %129 {offsets = [0, 256], sizes = [8, 32], strides = [1, 1]} : vector<8x384xf32> to vector<8x32xf32>
    %150 = arith.mulf %139, %149 : vector<8x32xf32>
    %151 = arith.addf %148, %150 : vector<8x32xf32>
    %152 = math.tanh %151 : vector<8x32xf32>
    %cst_21 = arith.constant 1.000000e+00 : f32
    %153 = vector.broadcast %cst_21 : f32 to vector<8x32xf32>
    %154 = arith.subf %153, %147 : vector<8x32xf32>
    %155 = arith.mulf %154, %152 : vector<8x32xf32>
    %156 = arith.mulf %147, %125 : vector<8x32xf32>
    %157 = arith.addf %155, %156 : vector<8x32xf32>
    %158 = arith.truncf %157 : vector<8x32xf32> to vector<8x32xbf16>
    %cst_22 = arith.constant dense<0.000000e+00> : vector<8x384xf32>
    %159 = tpu.matmul %158, %3, %cst_22 {dimension_numbers = #tpu.dot_dimension_numbers<[1], [0], [0], [1], [0, 0, 1, 1], [], []>} : vector<8x32xbf16>, vector<32x384xbf16>, vector<8x384xf32> -> vector<8x384xf32>
    %160 = vector.broadcast %8 : vector<1x384xf32> to vector<8x384xf32>
    %161 = arith.addf %159, %160 : vector<8x384xf32>
    %162 = vector.extract_strided_slice %161 {offsets = [0, 32], sizes = [8, 1], strides = [1, 1]} : vector<8x384xf32> to vector<8x1xf32>
    %163 = vector.extract_strided_slice %29 {offsets = [32, 0], sizes = [8, 384], strides = [1, 1]} : vector<64x384xf32> to vector<8x384xf32>
    %164 = vector.extract_strided_slice %163 {offsets = [0, 0], sizes = [8, 32], strides = [1, 1]} : vector<8x384xf32> to vector<8x32xf32>
    %165 = vector.extract_strided_slice %161 {offsets = [0, 0], sizes = [8, 32], strides = [1, 1]} : vector<8x384xf32> to vector<8x32xf32>
    %166 = arith.addf %164, %165 : vector<8x32xf32>
    %167 = arith.negf %166 : vector<8x32xf32>
    %168 = math.exp %167 : vector<8x32xf32>
    %cst_23 = arith.constant 1.000000e+00 : f32
    %169 = vector.broadcast %cst_23 : f32 to vector<8x32xf32>
    %170 = arith.addf %169, %168 : vector<8x32xf32>
    %171 = arith.divf %169, %170 : vector<8x32xf32>
    %172 = vector.extract_strided_slice %163 {offsets = [0, 128], sizes = [8, 32], strides = [1, 1]} : vector<8x384xf32> to vector<8x32xf32>
    %173 = vector.extract_strided_slice %161 {offsets = [0, 128], sizes = [8, 32], strides = [1, 1]} : vector<8x384xf32> to vector<8x32xf32>
    %174 = arith.addf %172, %173 : vector<8x32xf32>
    %175 = arith.negf %174 : vector<8x32xf32>
    %176 = math.exp %175 : vector<8x32xf32>
    %cst_24 = arith.constant 1.000000e+00 : f32
    %177 = vector.broadcast %cst_24 : f32 to vector<8x32xf32>
    %178 = arith.addf %177, %176 : vector<8x32xf32>
    %179 = arith.divf %177, %178 : vector<8x32xf32>
    %180 = vector.extract_strided_slice %163 {offsets = [0, 256], sizes = [8, 32], strides = [1, 1]} : vector<8x384xf32> to vector<8x32xf32>
    %181 = vector.extract_strided_slice %161 {offsets = [0, 256], sizes = [8, 32], strides = [1, 1]} : vector<8x384xf32> to vector<8x32xf32>
    %182 = arith.mulf %171, %181 : vector<8x32xf32>
    %183 = arith.addf %180, %182 : vector<8x32xf32>
    %184 = math.tanh %183 : vector<8x32xf32>
    %cst_25 = arith.constant 1.000000e+00 : f32
    %185 = vector.broadcast %cst_25 : f32 to vector<8x32xf32>
    %186 = arith.subf %185, %179 : vector<8x32xf32>
    %187 = arith.mulf %186, %184 : vector<8x32xf32>
    %188 = arith.mulf %179, %157 : vector<8x32xf32>
    %189 = arith.addf %187, %188 : vector<8x32xf32>
    %190 = arith.truncf %189 : vector<8x32xf32> to vector<8x32xbf16>
    %cst_26 = arith.constant dense<0.000000e+00> : vector<8x384xf32>
    %191 = tpu.matmul %190, %3, %cst_26 {dimension_numbers = #tpu.dot_dimension_numbers<[1], [0], [0], [1], [0, 0, 1, 1], [], []>} : vector<8x32xbf16>, vector<32x384xbf16>, vector<8x384xf32> -> vector<8x384xf32>
    %192 = vector.broadcast %8 : vector<1x384xf32> to vector<8x384xf32>
    %193 = arith.addf %191, %192 : vector<8x384xf32>
    %194 = vector.extract_strided_slice %193 {offsets = [0, 32], sizes = [8, 1], strides = [1, 1]} : vector<8x384xf32> to vector<8x1xf32>
    %195 = vector.extract_strided_slice %29 {offsets = [40, 0], sizes = [8, 384], strides = [1, 1]} : vector<64x384xf32> to vector<8x384xf32>
    %196 = vector.extract_strided_slice %195 {offsets = [0, 0], sizes = [8, 32], strides = [1, 1]} : vector<8x384xf32> to vector<8x32xf32>
    %197 = vector.extract_strided_slice %193 {offsets = [0, 0], sizes = [8, 32], strides = [1, 1]} : vector<8x384xf32> to vector<8x32xf32>
    %198 = arith.addf %196, %197 : vector<8x32xf32>
    %199 = arith.negf %198 : vector<8x32xf32>
    %200 = math.exp %199 : vector<8x32xf32>
    %cst_27 = arith.constant 1.000000e+00 : f32
    %201 = vector.broadcast %cst_27 : f32 to vector<8x32xf32>
    %202 = arith.addf %201, %200 : vector<8x32xf32>
    %203 = arith.divf %201, %202 : vector<8x32xf32>
    %204 = vector.extract_strided_slice %195 {offsets = [0, 128], sizes = [8, 32], strides = [1, 1]} : vector<8x384xf32> to vector<8x32xf32>
    %205 = vector.extract_strided_slice %193 {offsets = [0, 128], sizes = [8, 32], strides = [1, 1]} : vector<8x384xf32> to vector<8x32xf32>
    %206 = arith.addf %204, %205 : vector<8x32xf32>
    %207 = arith.negf %206 : vector<8x32xf32>
    %208 = math.exp %207 : vector<8x32xf32>
    %cst_28 = arith.constant 1.000000e+00 : f32
    %209 = vector.broadcast %cst_28 : f32 to vector<8x32xf32>
    %210 = arith.addf %209, %208 : vector<8x32xf32>
    %211 = arith.divf %209, %210 : vector<8x32xf32>
    %212 = vector.extract_strided_slice %195 {offsets = [0, 256], sizes = [8, 32], strides = [1, 1]} : vector<8x384xf32> to vector<8x32xf32>
    %213 = vector.extract_strided_slice %193 {offsets = [0, 256], sizes = [8, 32], strides = [1, 1]} : vector<8x384xf32> to vector<8x32xf32>
    %214 = arith.mulf %203, %213 : vector<8x32xf32>
    %215 = arith.addf %212, %214 : vector<8x32xf32>
    %216 = math.tanh %215 : vector<8x32xf32>
    %cst_29 = arith.constant 1.000000e+00 : f32
    %217 = vector.broadcast %cst_29 : f32 to vector<8x32xf32>
    %218 = arith.subf %217, %211 : vector<8x32xf32>
    %219 = arith.mulf %218, %216 : vector<8x32xf32>
    %220 = arith.mulf %211, %189 : vector<8x32xf32>
    %221 = arith.addf %219, %220 : vector<8x32xf32>
    %222 = arith.truncf %221 : vector<8x32xf32> to vector<8x32xbf16>
    %cst_30 = arith.constant dense<0.000000e+00> : vector<8x384xf32>
    %223 = tpu.matmul %222, %3, %cst_30 {dimension_numbers = #tpu.dot_dimension_numbers<[1], [0], [0], [1], [0, 0, 1, 1], [], []>} : vector<8x32xbf16>, vector<32x384xbf16>, vector<8x384xf32> -> vector<8x384xf32>
    %224 = vector.broadcast %8 : vector<1x384xf32> to vector<8x384xf32>
    %225 = arith.addf %223, %224 : vector<8x384xf32>
    %226 = vector.extract_strided_slice %225 {offsets = [0, 32], sizes = [8, 1], strides = [1, 1]} : vector<8x384xf32> to vector<8x1xf32>
    %227 = vector.extract_strided_slice %29 {offsets = [48, 0], sizes = [8, 384], strides = [1, 1]} : vector<64x384xf32> to vector<8x384xf32>
    %228 = vector.extract_strided_slice %227 {offsets = [0, 0], sizes = [8, 32], strides = [1, 1]} : vector<8x384xf32> to vector<8x32xf32>
    %229 = vector.extract_strided_slice %225 {offsets = [0, 0], sizes = [8, 32], strides = [1, 1]} : vector<8x384xf32> to vector<8x32xf32>
    %230 = arith.addf %228, %229 : vector<8x32xf32>
    %231 = arith.negf %230 : vector<8x32xf32>
    %232 = math.exp %231 : vector<8x32xf32>
    %cst_31 = arith.constant 1.000000e+00 : f32
    %233 = vector.broadcast %cst_31 : f32 to vector<8x32xf32>
    %234 = arith.addf %233, %232 : vector<8x32xf32>
    %235 = arith.divf %233, %234 : vector<8x32xf32>
    %236 = vector.extract_strided_slice %227 {offsets = [0, 128], sizes = [8, 32], strides = [1, 1]} : vector<8x384xf32> to vector<8x32xf32>
    %237 = vector.extract_strided_slice %225 {offsets = [0, 128], sizes = [8, 32], strides = [1, 1]} : vector<8x384xf32> to vector<8x32xf32>
    %238 = arith.addf %236, %237 : vector<8x32xf32>
    %239 = arith.negf %238 : vector<8x32xf32>
    %240 = math.exp %239 : vector<8x32xf32>
    %cst_32 = arith.constant 1.000000e+00 : f32
    %241 = vector.broadcast %cst_32 : f32 to vector<8x32xf32>
    %242 = arith.addf %241, %240 : vector<8x32xf32>
    %243 = arith.divf %241, %242 : vector<8x32xf32>
    %244 = vector.extract_strided_slice %227 {offsets = [0, 256], sizes = [8, 32], strides = [1, 1]} : vector<8x384xf32> to vector<8x32xf32>
    %245 = vector.extract_strided_slice %225 {offsets = [0, 256], sizes = [8, 32], strides = [1, 1]} : vector<8x384xf32> to vector<8x32xf32>
    %246 = arith.mulf %235, %245 : vector<8x32xf32>
    %247 = arith.addf %244, %246 : vector<8x32xf32>
    %248 = math.tanh %247 : vector<8x32xf32>
    %cst_33 = arith.constant 1.000000e+00 : f32
    %249 = vector.broadcast %cst_33 : f32 to vector<8x32xf32>
    %250 = arith.subf %249, %243 : vector<8x32xf32>
    %251 = arith.mulf %250, %248 : vector<8x32xf32>
    %252 = arith.mulf %243, %221 : vector<8x32xf32>
    %253 = arith.addf %251, %252 : vector<8x32xf32>
    %254 = arith.truncf %253 : vector<8x32xf32> to vector<8x32xbf16>
    %cst_34 = arith.constant dense<0.000000e+00> : vector<8x384xf32>
    %255 = tpu.matmul %254, %3, %cst_34 {dimension_numbers = #tpu.dot_dimension_numbers<[1], [0], [0], [1], [0, 0, 1, 1], [], []>} : vector<8x32xbf16>, vector<32x384xbf16>, vector<8x384xf32> -> vector<8x384xf32>
    %256 = vector.broadcast %8 : vector<1x384xf32> to vector<8x384xf32>
    %257 = arith.addf %255, %256 : vector<8x384xf32>
    %258 = vector.extract_strided_slice %257 {offsets = [0, 32], sizes = [8, 1], strides = [1, 1]} : vector<8x384xf32> to vector<8x1xf32>
    %259 = vector.extract_strided_slice %29 {offsets = [56, 0], sizes = [8, 384], strides = [1, 1]} : vector<64x384xf32> to vector<8x384xf32>
    %260 = vector.extract_strided_slice %259 {offsets = [0, 0], sizes = [8, 32], strides = [1, 1]} : vector<8x384xf32> to vector<8x32xf32>
    %261 = vector.extract_strided_slice %257 {offsets = [0, 0], sizes = [8, 32], strides = [1, 1]} : vector<8x384xf32> to vector<8x32xf32>
    %262 = arith.addf %260, %261 : vector<8x32xf32>
    %263 = arith.negf %262 : vector<8x32xf32>
    %264 = math.exp %263 : vector<8x32xf32>
    %cst_35 = arith.constant 1.000000e+00 : f32
    %265 = vector.broadcast %cst_35 : f32 to vector<8x32xf32>
    %266 = arith.addf %265, %264 : vector<8x32xf32>
    %267 = arith.divf %265, %266 : vector<8x32xf32>
    %268 = vector.extract_strided_slice %259 {offsets = [0, 128], sizes = [8, 32], strides = [1, 1]} : vector<8x384xf32> to vector<8x32xf32>
    %269 = vector.extract_strided_slice %257 {offsets = [0, 128], sizes = [8, 32], strides = [1, 1]} : vector<8x384xf32> to vector<8x32xf32>
    %270 = arith.addf %268, %269 : vector<8x32xf32>
    %271 = arith.negf %270 : vector<8x32xf32>
    %272 = math.exp %271 : vector<8x32xf32>
    %cst_36 = arith.constant 1.000000e+00 : f32
    %273 = vector.broadcast %cst_36 : f32 to vector<8x32xf32>
    %274 = arith.addf %273, %272 : vector<8x32xf32>
    %275 = arith.divf %273, %274 : vector<8x32xf32>
    %276 = vector.extract_strided_slice %259 {offsets = [0, 256], sizes = [8, 32], strides = [1, 1]} : vector<8x384xf32> to vector<8x32xf32>
    %277 = vector.extract_strided_slice %257 {offsets = [0, 256], sizes = [8, 32], strides = [1, 1]} : vector<8x384xf32> to vector<8x32xf32>
    %278 = arith.mulf %267, %277 : vector<8x32xf32>
    %279 = arith.addf %276, %278 : vector<8x32xf32>
    %280 = math.tanh %279 : vector<8x32xf32>
    %cst_37 = arith.constant 1.000000e+00 : f32
    %281 = vector.broadcast %cst_37 : f32 to vector<8x32xf32>
    %282 = arith.subf %281, %275 : vector<8x32xf32>
    %283 = arith.mulf %282, %280 : vector<8x32xf32>
    %284 = arith.mulf %275, %253 : vector<8x32xf32>
    %285 = arith.addf %283, %284 : vector<8x32xf32>
    %286 = vector.broadcast %11 : vector<1x32xf32> to vector<8x32xf32>
    %287 = arith.mulf %285, %286 : vector<8x32xf32>
    %cst_38 = arith.constant dense<0.000000e+00> : vector<8xf32>
    %288 = vector.multi_reduction <add>, %287, %cst_38 [1] : vector<8x32xf32> to vector<8xf32>
    %289 = vector.shape_cast %288 : vector<8xf32> to vector<8x1xf32>
    %290 = tpu.concatenate %66, %98, %130, %162, %194, %226, %258, %289 in 1 : vector<8x1xf32>, vector<8x1xf32>, vector<8x1xf32>, vector<8x1xf32>, vector<8x1xf32>, vector<8x1xf32>, vector<8x1xf32>, vector<8x1xf32> -> vector<8x8xf32>
    %291 = vector.broadcast %12 : vector<1x1xf32> to vector<8x8xf32>
    %292 = arith.addf %290, %291 : vector<8x8xf32>
    %293 = vector.extract_strided_slice %14 {offsets = [8, 0], sizes = [1, 8], strides = [1, 1]} : vector<16x8xi32> to vector<1x8xi32>
    %294 = vector.shape_cast %293 : vector<1x8xi32> to vector<1x8x1xi32>
    %295 = vector.shape_cast %16 : vector<8x16xi32> to vector<1x8x16xi32>
    %296 = vector.broadcast %294 : vector<1x8x1xi32> to vector<1x8x16xi32>
    %297 = arith.cmpi eq, %296, %295 : vector<1x8x16xi32>
    %298 = arith.extui %297 : vector<1x8x16xi1> to vector<1x8x16xi32>
    %299 = arith.sitofp %298 : vector<1x8x16xi32> to vector<1x8x16xf32>
    %300 = arith.truncf %299 : vector<1x8x16xf32> to vector<1x8x16xbf16>
    %301 = vector.shape_cast %300 : vector<1x8x16xbf16> to vector<8x16xbf16>
    %cst_39 = arith.constant 0.000000e+00 : f32
    %302 = vector.broadcast %cst_39 : f32 to vector<8x16xf32>
    %303 = arith.truncf %285 : vector<8x32xf32> to vector<8x32xbf16>
    %cst_40 = arith.constant dense<0.000000e+00> : vector<8x384xf32>
    %304 = tpu.matmul %303, %5, %cst_40 {dimension_numbers = #tpu.dot_dimension_numbers<[1], [0], [0], [1], [0, 0, 1, 1], [], []>} : vector<8x32xbf16>, vector<32x384xbf16>, vector<8x384xf32> -> vector<8x384xf32>
    %305 = vector.broadcast %10 : vector<1x384xf32> to vector<8x384xf32>
    %306 = arith.addf %304, %305 : vector<8x384xf32>
    %307 = vector.extract_strided_slice %306 {offsets = [0, 32], sizes = [8, 1], strides = [1, 1]} : vector<8x384xf32> to vector<8x1xf32>
    %308 = vector.broadcast %307 : vector<8x1xf32> to vector<8x8xf32>
    %309 = arith.addf %292, %308 : vector<8x8xf32>
    %cst_41 = arith.constant 0.000000e+00 : f32
    %310 = vector.broadcast %cst_41 : f32 to vector<8x8xf32>
    %311 = arith.maximumf %309, %310 : vector<8x8xf32>
    %cst_42 = arith.constant dense<0xFF800000> : vector<8xf32>
    %312 = vector.multi_reduction <maximumf>, %311, %cst_42 [1] : vector<8x8xf32> to vector<8xf32>
    %313 = vector.shape_cast %312 : vector<8xf32> to vector<8x1xf32>
    %314 = vector.broadcast %313 : vector<8x1xf32> to vector<8x8xf32>
    %315 = arith.subf %311, %314 : vector<8x8xf32>
    %316 = math.exp %315 : vector<8x8xf32>
    %cst_43 = arith.constant dense<0.000000e+00> : vector<8xf32>
    %317 = vector.multi_reduction <add>, %316, %cst_43 [1] : vector<8x8xf32> to vector<8xf32>
    %318 = vector.shape_cast %317 : vector<8xf32> to vector<8x1xf32>
    %319 = tpu.reciprocal %318 {approx = true} : vector<8x1xf32> -> vector<8x1xf32>
    %320 = vector.broadcast %319 : vector<8x1xf32> to vector<8x8xf32>
    %321 = arith.mulf %316, %320 : vector<8x8xf32>
    %322 = vector.extract_strided_slice %321 {offsets = [0, 0], sizes = [8, 1], strides = [1, 1]} : vector<8x8xf32> to vector<8x1xf32>
    %323 = vector.broadcast %322 : vector<8x1xf32> to vector<8x32xf32>
    %324 = arith.mulf %323, %61 : vector<8x32xf32>
    %325 = vector.extract_strided_slice %321 {offsets = [0, 1], sizes = [8, 1], strides = [1, 1]} : vector<8x8xf32> to vector<8x1xf32>
    %326 = vector.broadcast %325 : vector<8x1xf32> to vector<8x32xf32>
    %327 = arith.mulf %326, %93 : vector<8x32xf32>
    %328 = arith.addf %324, %327 : vector<8x32xf32>
    %329 = vector.extract_strided_slice %321 {offsets = [0, 2], sizes = [8, 1], strides = [1, 1]} : vector<8x8xf32> to vector<8x1xf32>
    %330 = vector.broadcast %329 : vector<8x1xf32> to vector<8x32xf32>
    %331 = arith.mulf %330, %125 : vector<8x32xf32>
    %332 = arith.addf %328, %331 : vector<8x32xf32>
    %333 = vector.extract_strided_slice %321 {offsets = [0, 3], sizes = [8, 1], strides = [1, 1]} : vector<8x8xf32> to vector<8x1xf32>
    %334 = vector.broadcast %333 : vector<8x1xf32> to vector<8x32xf32>
    %335 = arith.mulf %334, %157 : vector<8x32xf32>
    %336 = arith.addf %332, %335 : vector<8x32xf32>
    %337 = vector.extract_strided_slice %321 {offsets = [0, 4], sizes = [8, 1], strides = [1, 1]} : vector<8x8xf32> to vector<8x1xf32>
    %338 = vector.broadcast %337 : vector<8x1xf32> to vector<8x32xf32>
    %339 = arith.mulf %338, %189 : vector<8x32xf32>
    %340 = arith.addf %336, %339 : vector<8x32xf32>
    %341 = vector.extract_strided_slice %321 {offsets = [0, 5], sizes = [8, 1], strides = [1, 1]} : vector<8x8xf32> to vector<8x1xf32>
    %342 = vector.broadcast %341 : vector<8x1xf32> to vector<8x32xf32>
    %343 = arith.mulf %342, %221 : vector<8x32xf32>
    %344 = arith.addf %340, %343 : vector<8x32xf32>
    %345 = vector.extract_strided_slice %321 {offsets = [0, 6], sizes = [8, 1], strides = [1, 1]} : vector<8x8xf32> to vector<8x1xf32>
    %346 = vector.broadcast %345 : vector<8x1xf32> to vector<8x32xf32>
    %347 = arith.mulf %346, %253 : vector<8x32xf32>
    %348 = arith.addf %344, %347 : vector<8x32xf32>
    %349 = vector.extract_strided_slice %321 {offsets = [0, 7], sizes = [8, 1], strides = [1, 1]} : vector<8x8xf32> to vector<8x1xf32>
    %350 = vector.broadcast %349 : vector<8x1xf32> to vector<8x32xf32>
    %351 = arith.mulf %350, %285 : vector<8x32xf32>
    %352 = arith.addf %348, %351 : vector<8x32xf32>
    %353 = arith.truncf %352 : vector<8x32xf32> to vector<8x32xbf16>
    %354 = tpu.concatenate %353, %301 in 1 : vector<8x32xbf16>, vector<8x16xbf16> -> vector<8x48xbf16>
    %cst_44 = arith.constant dense<0.000000e+00> : vector<8x384xf32>
    %355 = tpu.matmul %354, %4, %cst_44 {dimension_numbers = #tpu.dot_dimension_numbers<[1], [0], [0], [1], [0, 0, 1, 1], [], []>} : vector<8x48xbf16>, vector<48x384xbf16>, vector<8x384xf32> -> vector<8x384xf32>
    %356 = vector.broadcast %9 : vector<1x384xf32> to vector<8x384xf32>
    %357 = arith.addf %355, %356 : vector<8x384xf32>
    %358 = vector.extract_strided_slice %357 {offsets = [0, 0], sizes = [8, 32], strides = [1, 1]} : vector<8x384xf32> to vector<8x32xf32>
    %359 = vector.extract_strided_slice %306 {offsets = [0, 0], sizes = [8, 32], strides = [1, 1]} : vector<8x384xf32> to vector<8x32xf32>
    %360 = arith.addf %358, %359 : vector<8x32xf32>
    %361 = arith.negf %360 : vector<8x32xf32>
    %362 = math.exp %361 : vector<8x32xf32>
    %cst_45 = arith.constant 1.000000e+00 : f32
    %363 = vector.broadcast %cst_45 : f32 to vector<8x32xf32>
    %364 = arith.addf %363, %362 : vector<8x32xf32>
    %365 = arith.divf %363, %364 : vector<8x32xf32>
    %366 = vector.extract_strided_slice %357 {offsets = [0, 128], sizes = [8, 32], strides = [1, 1]} : vector<8x384xf32> to vector<8x32xf32>
    %367 = vector.extract_strided_slice %306 {offsets = [0, 128], sizes = [8, 32], strides = [1, 1]} : vector<8x384xf32> to vector<8x32xf32>
    %368 = arith.addf %366, %367 : vector<8x32xf32>
    %369 = arith.negf %368 : vector<8x32xf32>
    %370 = math.exp %369 : vector<8x32xf32>
    %cst_46 = arith.constant 1.000000e+00 : f32
    %371 = vector.broadcast %cst_46 : f32 to vector<8x32xf32>
    %372 = arith.addf %371, %370 : vector<8x32xf32>
    %373 = arith.divf %371, %372 : vector<8x32xf32>
    %374 = vector.extract_strided_slice %357 {offsets = [0, 256], sizes = [8, 32], strides = [1, 1]} : vector<8x384xf32> to vector<8x32xf32>
    %375 = vector.extract_strided_slice %306 {offsets = [0, 256], sizes = [8, 32], strides = [1, 1]} : vector<8x384xf32> to vector<8x32xf32>
    %376 = arith.mulf %365, %375 : vector<8x32xf32>
    %377 = arith.addf %374, %376 : vector<8x32xf32>
    %378 = math.tanh %377 : vector<8x32xf32>
    %cst_47 = arith.constant 1.000000e+00 : f32
    %379 = vector.broadcast %cst_47 : f32 to vector<8x32xf32>
    %380 = arith.subf %379, %373 : vector<8x32xf32>
    %381 = arith.mulf %380, %378 : vector<8x32xf32>
    %382 = arith.mulf %373, %285 : vector<8x32xf32>
    %383 = arith.addf %381, %382 : vector<8x32xf32>
    %384 = arith.truncf %383 : vector<8x32xf32> to vector<8x32xbf16>
    %cst_48 = arith.constant dense<0.000000e+00> : vector<8x384xf32>
    %385 = tpu.matmul %384, %5, %cst_48 {dimension_numbers = #tpu.dot_dimension_numbers<[1], [0], [0], [1], [0, 0, 1, 1], [], []>} : vector<8x32xbf16>, vector<32x384xbf16>, vector<8x384xf32> -> vector<8x384xf32>
    %386 = vector.broadcast %10 : vector<1x384xf32> to vector<8x384xf32>
    %387 = arith.addf %385, %386 : vector<8x384xf32>
    %388 = vector.extract_strided_slice %387 {offsets = [0, 64], sizes = [8, 16], strides = [1, 1]} : vector<8x384xf32> to vector<8x16xf32>
    %389 = vector.broadcast %13 : vector<1x16xf32> to vector<8x16xf32>
    %390 = arith.addf %388, %389 : vector<8x16xf32>
    %cst_49 = arith.constant dense<0xFF800000> : vector<8xf32>
    %391 = vector.multi_reduction <maximumf>, %390, %cst_49 [1] : vector<8x16xf32> to vector<8xf32>
    %392 = vector.shape_cast %391 : vector<8xf32> to vector<8x1xf32>
    %393 = vector.broadcast %392 : vector<8x1xf32> to vector<8x16xf32>
    %394 = arith.cmpf oeq, %390, %393 : vector<8x16xf32>
    %395 = arith.extui %394 : vector<8x16xi1> to vector<8x16xi32>
    %396 = arith.sitofp %395 : vector<8x16xi32> to vector<8x16xf32>
    %397 = arith.truncf %396 : vector<8x16xf32> to vector<8x16xbf16>
    %398 = vector.extract_strided_slice %387 {offsets = [0, 32], sizes = [8, 1], strides = [1, 1]} : vector<8x384xf32> to vector<8x1xf32>
    %399 = vector.broadcast %398 : vector<8x1xf32> to vector<8x8xf32>
    %400 = arith.addf %292, %399 : vector<8x8xf32>
    %cst_50 = arith.constant 0.000000e+00 : f32
    %401 = vector.broadcast %cst_50 : f32 to vector<8x8xf32>
    %402 = arith.maximumf %400, %401 : vector<8x8xf32>
    %cst_51 = arith.constant dense<0xFF800000> : vector<8xf32>
    %403 = vector.multi_reduction <maximumf>, %402, %cst_51 [1] : vector<8x8xf32> to vector<8xf32>
    %404 = vector.shape_cast %403 : vector<8xf32> to vector<8x1xf32>
    %405 = vector.broadcast %404 : vector<8x1xf32> to vector<8x8xf32>
    %406 = arith.subf %402, %405 : vector<8x8xf32>
    %407 = math.exp %406 : vector<8x8xf32>
    %cst_52 = arith.constant dense<0.000000e+00> : vector<8xf32>
    %408 = vector.multi_reduction <add>, %407, %cst_52 [1] : vector<8x8xf32> to vector<8xf32>
    %409 = vector.shape_cast %408 : vector<8xf32> to vector<8x1xf32>
    %410 = tpu.reciprocal %409 {approx = true} : vector<8x1xf32> -> vector<8x1xf32>
    %411 = vector.broadcast %410 : vector<8x1xf32> to vector<8x8xf32>
    %412 = arith.mulf %407, %411 : vector<8x8xf32>
    %413 = vector.extract_strided_slice %412 {offsets = [0, 0], sizes = [8, 1], strides = [1, 1]} : vector<8x8xf32> to vector<8x1xf32>
    %414 = vector.broadcast %413 : vector<8x1xf32> to vector<8x32xf32>
    %415 = arith.mulf %414, %61 : vector<8x32xf32>
    %416 = vector.extract_strided_slice %412 {offsets = [0, 1], sizes = [8, 1], strides = [1, 1]} : vector<8x8xf32> to vector<8x1xf32>
    %417 = vector.broadcast %416 : vector<8x1xf32> to vector<8x32xf32>
    %418 = arith.mulf %417, %93 : vector<8x32xf32>
    %419 = arith.addf %415, %418 : vector<8x32xf32>
    %420 = vector.extract_strided_slice %412 {offsets = [0, 2], sizes = [8, 1], strides = [1, 1]} : vector<8x8xf32> to vector<8x1xf32>
    %421 = vector.broadcast %420 : vector<8x1xf32> to vector<8x32xf32>
    %422 = arith.mulf %421, %125 : vector<8x32xf32>
    %423 = arith.addf %419, %422 : vector<8x32xf32>
    %424 = vector.extract_strided_slice %412 {offsets = [0, 3], sizes = [8, 1], strides = [1, 1]} : vector<8x8xf32> to vector<8x1xf32>
    %425 = vector.broadcast %424 : vector<8x1xf32> to vector<8x32xf32>
    %426 = arith.mulf %425, %157 : vector<8x32xf32>
    %427 = arith.addf %423, %426 : vector<8x32xf32>
    %428 = vector.extract_strided_slice %412 {offsets = [0, 4], sizes = [8, 1], strides = [1, 1]} : vector<8x8xf32> to vector<8x1xf32>
    %429 = vector.broadcast %428 : vector<8x1xf32> to vector<8x32xf32>
    %430 = arith.mulf %429, %189 : vector<8x32xf32>
    %431 = arith.addf %427, %430 : vector<8x32xf32>
    %432 = vector.extract_strided_slice %412 {offsets = [0, 5], sizes = [8, 1], strides = [1, 1]} : vector<8x8xf32> to vector<8x1xf32>
    %433 = vector.broadcast %432 : vector<8x1xf32> to vector<8x32xf32>
    %434 = arith.mulf %433, %221 : vector<8x32xf32>
    %435 = arith.addf %431, %434 : vector<8x32xf32>
    %436 = vector.extract_strided_slice %412 {offsets = [0, 6], sizes = [8, 1], strides = [1, 1]} : vector<8x8xf32> to vector<8x1xf32>
    %437 = vector.broadcast %436 : vector<8x1xf32> to vector<8x32xf32>
    %438 = arith.mulf %437, %253 : vector<8x32xf32>
    %439 = arith.addf %435, %438 : vector<8x32xf32>
    %440 = vector.extract_strided_slice %412 {offsets = [0, 7], sizes = [8, 1], strides = [1, 1]} : vector<8x8xf32> to vector<8x1xf32>
    %441 = vector.broadcast %440 : vector<8x1xf32> to vector<8x32xf32>
    %442 = arith.mulf %441, %285 : vector<8x32xf32>
    %443 = arith.addf %439, %442 : vector<8x32xf32>
    %444 = arith.truncf %443 : vector<8x32xf32> to vector<8x32xbf16>
    %445 = tpu.concatenate %444, %397 in 1 : vector<8x32xbf16>, vector<8x16xbf16> -> vector<8x48xbf16>
    %cst_53 = arith.constant dense<0.000000e+00> : vector<8x384xf32>
    %446 = tpu.matmul %445, %4, %cst_53 {dimension_numbers = #tpu.dot_dimension_numbers<[1], [0], [0], [1], [0, 0, 1, 1], [], []>} : vector<8x48xbf16>, vector<48x384xbf16>, vector<8x384xf32> -> vector<8x384xf32>
    %447 = vector.broadcast %9 : vector<1x384xf32> to vector<8x384xf32>
    %448 = arith.addf %446, %447 : vector<8x384xf32>
    %449 = vector.extract_strided_slice %448 {offsets = [0, 0], sizes = [8, 32], strides = [1, 1]} : vector<8x384xf32> to vector<8x32xf32>
    %450 = vector.extract_strided_slice %387 {offsets = [0, 0], sizes = [8, 32], strides = [1, 1]} : vector<8x384xf32> to vector<8x32xf32>
    %451 = arith.addf %449, %450 : vector<8x32xf32>
    %452 = arith.negf %451 : vector<8x32xf32>
    %453 = math.exp %452 : vector<8x32xf32>
    %cst_54 = arith.constant 1.000000e+00 : f32
    %454 = vector.broadcast %cst_54 : f32 to vector<8x32xf32>
    %455 = arith.addf %454, %453 : vector<8x32xf32>
    %456 = arith.divf %454, %455 : vector<8x32xf32>
    %457 = vector.extract_strided_slice %448 {offsets = [0, 128], sizes = [8, 32], strides = [1, 1]} : vector<8x384xf32> to vector<8x32xf32>
    %458 = vector.extract_strided_slice %387 {offsets = [0, 128], sizes = [8, 32], strides = [1, 1]} : vector<8x384xf32> to vector<8x32xf32>
    %459 = arith.addf %457, %458 : vector<8x32xf32>
    %460 = arith.negf %459 : vector<8x32xf32>
    %461 = math.exp %460 : vector<8x32xf32>
    %cst_55 = arith.constant 1.000000e+00 : f32
    %462 = vector.broadcast %cst_55 : f32 to vector<8x32xf32>
    %463 = arith.addf %462, %461 : vector<8x32xf32>
    %464 = arith.divf %462, %463 : vector<8x32xf32>
    %465 = vector.extract_strided_slice %448 {offsets = [0, 256], sizes = [8, 32], strides = [1, 1]} : vector<8x384xf32> to vector<8x32xf32>
    %466 = vector.extract_strided_slice %387 {offsets = [0, 256], sizes = [8, 32], strides = [1, 1]} : vector<8x384xf32> to vector<8x32xf32>
    %467 = arith.mulf %456, %466 : vector<8x32xf32>
    %468 = arith.addf %465, %467 : vector<8x32xf32>
    %469 = math.tanh %468 : vector<8x32xf32>
    %cst_56 = arith.constant 1.000000e+00 : f32
    %470 = vector.broadcast %cst_56 : f32 to vector<8x32xf32>
    %471 = arith.subf %470, %464 : vector<8x32xf32>
    %472 = arith.mulf %471, %469 : vector<8x32xf32>
    %473 = arith.mulf %464, %383 : vector<8x32xf32>
    %474 = arith.addf %472, %473 : vector<8x32xf32>
    %475 = arith.truncf %474 : vector<8x32xf32> to vector<8x32xbf16>
    %cst_57 = arith.constant dense<0.000000e+00> : vector<8x384xf32>
    %476 = tpu.matmul %475, %5, %cst_57 {dimension_numbers = #tpu.dot_dimension_numbers<[1], [0], [0], [1], [0, 0, 1, 1], [], []>} : vector<8x32xbf16>, vector<32x384xbf16>, vector<8x384xf32> -> vector<8x384xf32>
    %477 = vector.broadcast %10 : vector<1x384xf32> to vector<8x384xf32>
    %478 = arith.addf %476, %477 : vector<8x384xf32>
    %479 = vector.extract_strided_slice %478 {offsets = [0, 64], sizes = [8, 16], strides = [1, 1]} : vector<8x384xf32> to vector<8x16xf32>
    %480 = vector.broadcast %13 : vector<1x16xf32> to vector<8x16xf32>
    %481 = arith.addf %479, %480 : vector<8x16xf32>
    %cst_58 = arith.constant dense<0xFF800000> : vector<8xf32>
    %482 = vector.multi_reduction <maximumf>, %481, %cst_58 [1] : vector<8x16xf32> to vector<8xf32>
    %483 = vector.shape_cast %482 : vector<8xf32> to vector<8x1xf32>
    %484 = vector.broadcast %483 : vector<8x1xf32> to vector<8x16xf32>
    %485 = arith.cmpf oeq, %481, %484 : vector<8x16xf32>
    %486 = arith.extui %485 : vector<8x16xi1> to vector<8x16xi32>
    %487 = arith.sitofp %486 : vector<8x16xi32> to vector<8x16xf32>
    %488 = arith.truncf %487 : vector<8x16xf32> to vector<8x16xbf16>
    %489 = vector.extract_strided_slice %478 {offsets = [0, 32], sizes = [8, 1], strides = [1, 1]} : vector<8x384xf32> to vector<8x1xf32>
    %490 = vector.broadcast %489 : vector<8x1xf32> to vector<8x8xf32>
    %491 = arith.addf %292, %490 : vector<8x8xf32>
    %cst_59 = arith.constant 0.000000e+00 : f32
    %492 = vector.broadcast %cst_59 : f32 to vector<8x8xf32>
    %493 = arith.maximumf %491, %492 : vector<8x8xf32>
    %cst_60 = arith.constant dense<0xFF800000> : vector<8xf32>
    %494 = vector.multi_reduction <maximumf>, %493, %cst_60 [1] : vector<8x8xf32> to vector<8xf32>
    %495 = vector.shape_cast %494 : vector<8xf32> to vector<8x1xf32>
    %496 = vector.broadcast %495 : vector<8x1xf32> to vector<8x8xf32>
    %497 = arith.subf %493, %496 : vector<8x8xf32>
    %498 = math.exp %497 : vector<8x8xf32>
    %cst_61 = arith.constant dense<0.000000e+00> : vector<8xf32>
    %499 = vector.multi_reduction <add>, %498, %cst_61 [1] : vector<8x8xf32> to vector<8xf32>
    %500 = vector.shape_cast %499 : vector<8xf32> to vector<8x1xf32>
    %501 = tpu.reciprocal %500 {approx = true} : vector<8x1xf32> -> vector<8x1xf32>
    %502 = vector.broadcast %501 : vector<8x1xf32> to vector<8x8xf32>
    %503 = arith.mulf %498, %502 : vector<8x8xf32>
    %504 = vector.extract_strided_slice %503 {offsets = [0, 0], sizes = [8, 1], strides = [1, 1]} : vector<8x8xf32> to vector<8x1xf32>
    %505 = vector.broadcast %504 : vector<8x1xf32> to vector<8x32xf32>
    %506 = arith.mulf %505, %61 : vector<8x32xf32>
    %507 = vector.extract_strided_slice %503 {offsets = [0, 1], sizes = [8, 1], strides = [1, 1]} : vector<8x8xf32> to vector<8x1xf32>
    %508 = vector.broadcast %507 : vector<8x1xf32> to vector<8x32xf32>
    %509 = arith.mulf %508, %93 : vector<8x32xf32>
    %510 = arith.addf %506, %509 : vector<8x32xf32>
    %511 = vector.extract_strided_slice %503 {offsets = [0, 2], sizes = [8, 1], strides = [1, 1]} : vector<8x8xf32> to vector<8x1xf32>
    %512 = vector.broadcast %511 : vector<8x1xf32> to vector<8x32xf32>
    %513 = arith.mulf %512, %125 : vector<8x32xf32>
    %514 = arith.addf %510, %513 : vector<8x32xf32>
    %515 = vector.extract_strided_slice %503 {offsets = [0, 3], sizes = [8, 1], strides = [1, 1]} : vector<8x8xf32> to vector<8x1xf32>
    %516 = vector.broadcast %515 : vector<8x1xf32> to vector<8x32xf32>
    %517 = arith.mulf %516, %157 : vector<8x32xf32>
    %518 = arith.addf %514, %517 : vector<8x32xf32>
    %519 = vector.extract_strided_slice %503 {offsets = [0, 4], sizes = [8, 1], strides = [1, 1]} : vector<8x8xf32> to vector<8x1xf32>
    %520 = vector.broadcast %519 : vector<8x1xf32> to vector<8x32xf32>
    %521 = arith.mulf %520, %189 : vector<8x32xf32>
    %522 = arith.addf %518, %521 : vector<8x32xf32>
    %523 = vector.extract_strided_slice %503 {offsets = [0, 5], sizes = [8, 1], strides = [1, 1]} : vector<8x8xf32> to vector<8x1xf32>
    %524 = vector.broadcast %523 : vector<8x1xf32> to vector<8x32xf32>
    %525 = arith.mulf %524, %221 : vector<8x32xf32>
    %526 = arith.addf %522, %525 : vector<8x32xf32>
    %527 = vector.extract_strided_slice %503 {offsets = [0, 6], sizes = [8, 1], strides = [1, 1]} : vector<8x8xf32> to vector<8x1xf32>
    %528 = vector.broadcast %527 : vector<8x1xf32> to vector<8x32xf32>
    %529 = arith.mulf %528, %253 : vector<8x32xf32>
    %530 = arith.addf %526, %529 : vector<8x32xf32>
    %531 = vector.extract_strided_slice %503 {offsets = [0, 7], sizes = [8, 1], strides = [1, 1]} : vector<8x8xf32> to vector<8x1xf32>
    %532 = vector.broadcast %531 : vector<8x1xf32> to vector<8x32xf32>
    %533 = arith.mulf %532, %285 : vector<8x32xf32>
    %534 = arith.addf %530, %533 : vector<8x32xf32>
    %535 = arith.truncf %534 : vector<8x32xf32> to vector<8x32xbf16>
    %536 = tpu.concatenate %535, %488 in 1 : vector<8x32xbf16>, vector<8x16xbf16> -> vector<8x48xbf16>
    %cst_62 = arith.constant dense<0.000000e+00> : vector<8x384xf32>
    %537 = tpu.matmul %536, %4, %cst_62 {dimension_numbers = #tpu.dot_dimension_numbers<[1], [0], [0], [1], [0, 0, 1, 1], [], []>} : vector<8x48xbf16>, vector<48x384xbf16>, vector<8x384xf32> -> vector<8x384xf32>
    %538 = vector.broadcast %9 : vector<1x384xf32> to vector<8x384xf32>
    %539 = arith.addf %537, %538 : vector<8x384xf32>
    %540 = vector.extract_strided_slice %539 {offsets = [0, 0], sizes = [8, 32], strides = [1, 1]} : vector<8x384xf32> to vector<8x32xf32>
    %541 = vector.extract_strided_slice %478 {offsets = [0, 0], sizes = [8, 32], strides = [1, 1]} : vector<8x384xf32> to vector<8x32xf32>
    %542 = arith.addf %540, %541 : vector<8x32xf32>
    %543 = arith.negf %542 : vector<8x32xf32>
    %544 = math.exp %543 : vector<8x32xf32>
    %cst_63 = arith.constant 1.000000e+00 : f32
    %545 = vector.broadcast %cst_63 : f32 to vector<8x32xf32>
    %546 = arith.addf %545, %544 : vector<8x32xf32>
    %547 = arith.divf %545, %546 : vector<8x32xf32>
    %548 = vector.extract_strided_slice %539 {offsets = [0, 128], sizes = [8, 32], strides = [1, 1]} : vector<8x384xf32> to vector<8x32xf32>
    %549 = vector.extract_strided_slice %478 {offsets = [0, 128], sizes = [8, 32], strides = [1, 1]} : vector<8x384xf32> to vector<8x32xf32>
    %550 = arith.addf %548, %549 : vector<8x32xf32>
    %551 = arith.negf %550 : vector<8x32xf32>
    %552 = math.exp %551 : vector<8x32xf32>
    %cst_64 = arith.constant 1.000000e+00 : f32
    %553 = vector.broadcast %cst_64 : f32 to vector<8x32xf32>
    %554 = arith.addf %553, %552 : vector<8x32xf32>
    %555 = arith.divf %553, %554 : vector<8x32xf32>
    %556 = vector.extract_strided_slice %539 {offsets = [0, 256], sizes = [8, 32], strides = [1, 1]} : vector<8x384xf32> to vector<8x32xf32>
    %557 = vector.extract_strided_slice %478 {offsets = [0, 256], sizes = [8, 32], strides = [1, 1]} : vector<8x384xf32> to vector<8x32xf32>
    %558 = arith.mulf %547, %557 : vector<8x32xf32>
    %559 = arith.addf %556, %558 : vector<8x32xf32>
    %560 = math.tanh %559 : vector<8x32xf32>
    %cst_65 = arith.constant 1.000000e+00 : f32
    %561 = vector.broadcast %cst_65 : f32 to vector<8x32xf32>
    %562 = arith.subf %561, %555 : vector<8x32xf32>
    %563 = arith.mulf %562, %560 : vector<8x32xf32>
    %564 = arith.mulf %555, %474 : vector<8x32xf32>
    %565 = arith.addf %563, %564 : vector<8x32xf32>
    %566 = arith.truncf %565 : vector<8x32xf32> to vector<8x32xbf16>
    %cst_66 = arith.constant dense<0.000000e+00> : vector<8x384xf32>
    %567 = tpu.matmul %566, %5, %cst_66 {dimension_numbers = #tpu.dot_dimension_numbers<[1], [0], [0], [1], [0, 0, 1, 1], [], []>} : vector<8x32xbf16>, vector<32x384xbf16>, vector<8x384xf32> -> vector<8x384xf32>
    %568 = vector.broadcast %10 : vector<1x384xf32> to vector<8x384xf32>
    %569 = arith.addf %567, %568 : vector<8x384xf32>
    %570 = vector.extract_strided_slice %569 {offsets = [0, 64], sizes = [8, 16], strides = [1, 1]} : vector<8x384xf32> to vector<8x16xf32>
    %571 = vector.broadcast %13 : vector<1x16xf32> to vector<8x16xf32>
    %572 = arith.addf %570, %571 : vector<8x16xf32>
    %cst_67 = arith.constant dense<0xFF800000> : vector<8xf32>
    %573 = vector.multi_reduction <maximumf>, %572, %cst_67 [1] : vector<8x16xf32> to vector<8xf32>
    %574 = vector.shape_cast %573 : vector<8xf32> to vector<8x1xf32>
    %575 = vector.broadcast %574 : vector<8x1xf32> to vector<8x16xf32>
    %576 = arith.cmpf oeq, %572, %575 : vector<8x16xf32>
    %577 = arith.extui %576 : vector<8x16xi1> to vector<8x16xi32>
    %578 = arith.sitofp %577 : vector<8x16xi32> to vector<8x16xf32>
    %579 = arith.truncf %578 : vector<8x16xf32> to vector<8x16xbf16>
    %580 = vector.extract_strided_slice %569 {offsets = [0, 32], sizes = [8, 1], strides = [1, 1]} : vector<8x384xf32> to vector<8x1xf32>
    %581 = vector.broadcast %580 : vector<8x1xf32> to vector<8x8xf32>
    %582 = arith.addf %292, %581 : vector<8x8xf32>
    %cst_68 = arith.constant 0.000000e+00 : f32
    %583 = vector.broadcast %cst_68 : f32 to vector<8x8xf32>
    %584 = arith.maximumf %582, %583 : vector<8x8xf32>
    %cst_69 = arith.constant dense<0xFF800000> : vector<8xf32>
    %585 = vector.multi_reduction <maximumf>, %584, %cst_69 [1] : vector<8x8xf32> to vector<8xf32>
    %586 = vector.shape_cast %585 : vector<8xf32> to vector<8x1xf32>
    %587 = vector.broadcast %586 : vector<8x1xf32> to vector<8x8xf32>
    %588 = arith.subf %584, %587 : vector<8x8xf32>
    %589 = math.exp %588 : vector<8x8xf32>
    %cst_70 = arith.constant dense<0.000000e+00> : vector<8xf32>
    %590 = vector.multi_reduction <add>, %589, %cst_70 [1] : vector<8x8xf32> to vector<8xf32>
    %591 = vector.shape_cast %590 : vector<8xf32> to vector<8x1xf32>
    %592 = tpu.reciprocal %591 {approx = true} : vector<8x1xf32> -> vector<8x1xf32>
    %593 = vector.broadcast %592 : vector<8x1xf32> to vector<8x8xf32>
    %594 = arith.mulf %589, %593 : vector<8x8xf32>
    %595 = vector.extract_strided_slice %594 {offsets = [0, 0], sizes = [8, 1], strides = [1, 1]} : vector<8x8xf32> to vector<8x1xf32>
    %596 = vector.broadcast %595 : vector<8x1xf32> to vector<8x32xf32>
    %597 = arith.mulf %596, %61 : vector<8x32xf32>
    %598 = vector.extract_strided_slice %594 {offsets = [0, 1], sizes = [8, 1], strides = [1, 1]} : vector<8x8xf32> to vector<8x1xf32>
    %599 = vector.broadcast %598 : vector<8x1xf32> to vector<8x32xf32>
    %600 = arith.mulf %599, %93 : vector<8x32xf32>
    %601 = arith.addf %597, %600 : vector<8x32xf32>
    %602 = vector.extract_strided_slice %594 {offsets = [0, 2], sizes = [8, 1], strides = [1, 1]} : vector<8x8xf32> to vector<8x1xf32>
    %603 = vector.broadcast %602 : vector<8x1xf32> to vector<8x32xf32>
    %604 = arith.mulf %603, %125 : vector<8x32xf32>
    %605 = arith.addf %601, %604 : vector<8x32xf32>
    %606 = vector.extract_strided_slice %594 {offsets = [0, 3], sizes = [8, 1], strides = [1, 1]} : vector<8x8xf32> to vector<8x1xf32>
    %607 = vector.broadcast %606 : vector<8x1xf32> to vector<8x32xf32>
    %608 = arith.mulf %607, %157 : vector<8x32xf32>
    %609 = arith.addf %605, %608 : vector<8x32xf32>
    %610 = vector.extract_strided_slice %594 {offsets = [0, 4], sizes = [8, 1], strides = [1, 1]} : vector<8x8xf32> to vector<8x1xf32>
    %611 = vector.broadcast %610 : vector<8x1xf32> to vector<8x32xf32>
    %612 = arith.mulf %611, %189 : vector<8x32xf32>
    %613 = arith.addf %609, %612 : vector<8x32xf32>
    %614 = vector.extract_strided_slice %594 {offsets = [0, 5], sizes = [8, 1], strides = [1, 1]} : vector<8x8xf32> to vector<8x1xf32>
    %615 = vector.broadcast %614 : vector<8x1xf32> to vector<8x32xf32>
    %616 = arith.mulf %615, %221 : vector<8x32xf32>
    %617 = arith.addf %613, %616 : vector<8x32xf32>
    %618 = vector.extract_strided_slice %594 {offsets = [0, 6], sizes = [8, 1], strides = [1, 1]} : vector<8x8xf32> to vector<8x1xf32>
    %619 = vector.broadcast %618 : vector<8x1xf32> to vector<8x32xf32>
    %620 = arith.mulf %619, %253 : vector<8x32xf32>
    %621 = arith.addf %617, %620 : vector<8x32xf32>
    %622 = vector.extract_strided_slice %594 {offsets = [0, 7], sizes = [8, 1], strides = [1, 1]} : vector<8x8xf32> to vector<8x1xf32>
    %623 = vector.broadcast %622 : vector<8x1xf32> to vector<8x32xf32>
    %624 = arith.mulf %623, %285 : vector<8x32xf32>
    %625 = arith.addf %621, %624 : vector<8x32xf32>
    %626 = arith.truncf %625 : vector<8x32xf32> to vector<8x32xbf16>
    %627 = tpu.concatenate %626, %579 in 1 : vector<8x32xbf16>, vector<8x16xbf16> -> vector<8x48xbf16>
    %cst_71 = arith.constant dense<0.000000e+00> : vector<8x384xf32>
    %628 = tpu.matmul %627, %4, %cst_71 {dimension_numbers = #tpu.dot_dimension_numbers<[1], [0], [0], [1], [0, 0, 1, 1], [], []>} : vector<8x48xbf16>, vector<48x384xbf16>, vector<8x384xf32> -> vector<8x384xf32>
    %629 = vector.broadcast %9 : vector<1x384xf32> to vector<8x384xf32>
    %630 = arith.addf %628, %629 : vector<8x384xf32>
    %631 = vector.extract_strided_slice %630 {offsets = [0, 0], sizes = [8, 32], strides = [1, 1]} : vector<8x384xf32> to vector<8x32xf32>
    %632 = vector.extract_strided_slice %569 {offsets = [0, 0], sizes = [8, 32], strides = [1, 1]} : vector<8x384xf32> to vector<8x32xf32>
    %633 = arith.addf %631, %632 : vector<8x32xf32>
    %634 = arith.negf %633 : vector<8x32xf32>
    %635 = math.exp %634 : vector<8x32xf32>
    %cst_72 = arith.constant 1.000000e+00 : f32
    %636 = vector.broadcast %cst_72 : f32 to vector<8x32xf32>
    %637 = arith.addf %636, %635 : vector<8x32xf32>
    %638 = arith.divf %636, %637 : vector<8x32xf32>
    %639 = vector.extract_strided_slice %630 {offsets = [0, 128], sizes = [8, 32], strides = [1, 1]} : vector<8x384xf32> to vector<8x32xf32>
    %640 = vector.extract_strided_slice %569 {offsets = [0, 128], sizes = [8, 32], strides = [1, 1]} : vector<8x384xf32> to vector<8x32xf32>
    %641 = arith.addf %639, %640 : vector<8x32xf32>
    %642 = arith.negf %641 : vector<8x32xf32>
    %643 = math.exp %642 : vector<8x32xf32>
    %cst_73 = arith.constant 1.000000e+00 : f32
    %644 = vector.broadcast %cst_73 : f32 to vector<8x32xf32>
    %645 = arith.addf %644, %643 : vector<8x32xf32>
    %646 = arith.divf %644, %645 : vector<8x32xf32>
    %647 = vector.extract_strided_slice %630 {offsets = [0, 256], sizes = [8, 32], strides = [1, 1]} : vector<8x384xf32> to vector<8x32xf32>
    %648 = vector.extract_strided_slice %569 {offsets = [0, 256], sizes = [8, 32], strides = [1, 1]} : vector<8x384xf32> to vector<8x32xf32>
    %649 = arith.mulf %638, %648 : vector<8x32xf32>
    %650 = arith.addf %647, %649 : vector<8x32xf32>
    %651 = math.tanh %650 : vector<8x32xf32>
    %cst_74 = arith.constant 1.000000e+00 : f32
    %652 = vector.broadcast %cst_74 : f32 to vector<8x32xf32>
    %653 = arith.subf %652, %646 : vector<8x32xf32>
    %654 = arith.mulf %653, %651 : vector<8x32xf32>
    %655 = arith.mulf %646, %565 : vector<8x32xf32>
    %656 = arith.addf %654, %655 : vector<8x32xf32>
    %657 = arith.truncf %656 : vector<8x32xf32> to vector<8x32xbf16>
    %cst_75 = arith.constant dense<0.000000e+00> : vector<8x384xf32>
    %658 = tpu.matmul %657, %5, %cst_75 {dimension_numbers = #tpu.dot_dimension_numbers<[1], [0], [0], [1], [0, 0, 1, 1], [], []>} : vector<8x32xbf16>, vector<32x384xbf16>, vector<8x384xf32> -> vector<8x384xf32>
    %659 = vector.broadcast %10 : vector<1x384xf32> to vector<8x384xf32>
    %660 = arith.addf %658, %659 : vector<8x384xf32>
    %661 = vector.extract_strided_slice %660 {offsets = [0, 64], sizes = [8, 16], strides = [1, 1]} : vector<8x384xf32> to vector<8x16xf32>
    %662 = vector.broadcast %13 : vector<1x16xf32> to vector<8x16xf32>
    %663 = arith.addf %661, %662 : vector<8x16xf32>
    %cst_76 = arith.constant dense<0xFF800000> : vector<8xf32>
    %664 = vector.multi_reduction <maximumf>, %663, %cst_76 [1] : vector<8x16xf32> to vector<8xf32>
    %665 = vector.shape_cast %664 : vector<8xf32> to vector<8x1xf32>
    %666 = vector.broadcast %665 : vector<8x1xf32> to vector<8x16xf32>
    %667 = arith.cmpf oeq, %663, %666 : vector<8x16xf32>
    %668 = arith.extui %667 : vector<8x16xi1> to vector<8x16xi32>
    %669 = arith.sitofp %668 : vector<8x16xi32> to vector<8x16xf32>
    %670 = arith.truncf %669 : vector<8x16xf32> to vector<8x16xbf16>
    %671 = vector.extract_strided_slice %660 {offsets = [0, 32], sizes = [8, 1], strides = [1, 1]} : vector<8x384xf32> to vector<8x1xf32>
    %672 = vector.broadcast %671 : vector<8x1xf32> to vector<8x8xf32>
    %673 = arith.addf %292, %672 : vector<8x8xf32>
    %cst_77 = arith.constant 0.000000e+00 : f32
    %674 = vector.broadcast %cst_77 : f32 to vector<8x8xf32>
    %675 = arith.maximumf %673, %674 : vector<8x8xf32>
    %cst_78 = arith.constant dense<0xFF800000> : vector<8xf32>
    %676 = vector.multi_reduction <maximumf>, %675, %cst_78 [1] : vector<8x8xf32> to vector<8xf32>
    %677 = vector.shape_cast %676 : vector<8xf32> to vector<8x1xf32>
    %678 = vector.broadcast %677 : vector<8x1xf32> to vector<8x8xf32>
    %679 = arith.subf %675, %678 : vector<8x8xf32>
    %680 = math.exp %679 : vector<8x8xf32>
    %cst_79 = arith.constant dense<0.000000e+00> : vector<8xf32>
    %681 = vector.multi_reduction <add>, %680, %cst_79 [1] : vector<8x8xf32> to vector<8xf32>
    %682 = vector.shape_cast %681 : vector<8xf32> to vector<8x1xf32>
    %683 = tpu.reciprocal %682 {approx = true} : vector<8x1xf32> -> vector<8x1xf32>
    %684 = vector.broadcast %683 : vector<8x1xf32> to vector<8x8xf32>
    %685 = arith.mulf %680, %684 : vector<8x8xf32>
    %686 = vector.extract_strided_slice %685 {offsets = [0, 0], sizes = [8, 1], strides = [1, 1]} : vector<8x8xf32> to vector<8x1xf32>
    %687 = vector.broadcast %686 : vector<8x1xf32> to vector<8x32xf32>
    %688 = arith.mulf %687, %61 : vector<8x32xf32>
    %689 = vector.extract_strided_slice %685 {offsets = [0, 1], sizes = [8, 1], strides = [1, 1]} : vector<8x8xf32> to vector<8x1xf32>
    %690 = vector.broadcast %689 : vector<8x1xf32> to vector<8x32xf32>
    %691 = arith.mulf %690, %93 : vector<8x32xf32>
    %692 = arith.addf %688, %691 : vector<8x32xf32>
    %693 = vector.extract_strided_slice %685 {offsets = [0, 2], sizes = [8, 1], strides = [1, 1]} : vector<8x8xf32> to vector<8x1xf32>
    %694 = vector.broadcast %693 : vector<8x1xf32> to vector<8x32xf32>
    %695 = arith.mulf %694, %125 : vector<8x32xf32>
    %696 = arith.addf %692, %695 : vector<8x32xf32>
    %697 = vector.extract_strided_slice %685 {offsets = [0, 3], sizes = [8, 1], strides = [1, 1]} : vector<8x8xf32> to vector<8x1xf32>
    %698 = vector.broadcast %697 : vector<8x1xf32> to vector<8x32xf32>
    %699 = arith.mulf %698, %157 : vector<8x32xf32>
    %700 = arith.addf %696, %699 : vector<8x32xf32>
    %701 = vector.extract_strided_slice %685 {offsets = [0, 4], sizes = [8, 1], strides = [1, 1]} : vector<8x8xf32> to vector<8x1xf32>
    %702 = vector.broadcast %701 : vector<8x1xf32> to vector<8x32xf32>
    %703 = arith.mulf %702, %189 : vector<8x32xf32>
    %704 = arith.addf %700, %703 : vector<8x32xf32>
    %705 = vector.extract_strided_slice %685 {offsets = [0, 5], sizes = [8, 1], strides = [1, 1]} : vector<8x8xf32> to vector<8x1xf32>
    %706 = vector.broadcast %705 : vector<8x1xf32> to vector<8x32xf32>
    %707 = arith.mulf %706, %221 : vector<8x32xf32>
    %708 = arith.addf %704, %707 : vector<8x32xf32>
    %709 = vector.extract_strided_slice %685 {offsets = [0, 6], sizes = [8, 1], strides = [1, 1]} : vector<8x8xf32> to vector<8x1xf32>
    %710 = vector.broadcast %709 : vector<8x1xf32> to vector<8x32xf32>
    %711 = arith.mulf %710, %253 : vector<8x32xf32>
    %712 = arith.addf %708, %711 : vector<8x32xf32>
    %713 = vector.extract_strided_slice %685 {offsets = [0, 7], sizes = [8, 1], strides = [1, 1]} : vector<8x8xf32> to vector<8x1xf32>
    %714 = vector.broadcast %713 : vector<8x1xf32> to vector<8x32xf32>
    %715 = arith.mulf %714, %285 : vector<8x32xf32>
    %716 = arith.addf %712, %715 : vector<8x32xf32>
    %717 = arith.truncf %716 : vector<8x32xf32> to vector<8x32xbf16>
    %718 = tpu.concatenate %717, %670 in 1 : vector<8x32xbf16>, vector<8x16xbf16> -> vector<8x48xbf16>
    %cst_80 = arith.constant dense<0.000000e+00> : vector<8x384xf32>
    %719 = tpu.matmul %718, %4, %cst_80 {dimension_numbers = #tpu.dot_dimension_numbers<[1], [0], [0], [1], [0, 0, 1, 1], [], []>} : vector<8x48xbf16>, vector<48x384xbf16>, vector<8x384xf32> -> vector<8x384xf32>
    %720 = vector.broadcast %9 : vector<1x384xf32> to vector<8x384xf32>
    %721 = arith.addf %719, %720 : vector<8x384xf32>
    %722 = vector.extract_strided_slice %721 {offsets = [0, 0], sizes = [8, 32], strides = [1, 1]} : vector<8x384xf32> to vector<8x32xf32>
    %723 = vector.extract_strided_slice %660 {offsets = [0, 0], sizes = [8, 32], strides = [1, 1]} : vector<8x384xf32> to vector<8x32xf32>
    %724 = arith.addf %722, %723 : vector<8x32xf32>
    %725 = arith.negf %724 : vector<8x32xf32>
    %726 = math.exp %725 : vector<8x32xf32>
    %cst_81 = arith.constant 1.000000e+00 : f32
    %727 = vector.broadcast %cst_81 : f32 to vector<8x32xf32>
    %728 = arith.addf %727, %726 : vector<8x32xf32>
    %729 = arith.divf %727, %728 : vector<8x32xf32>
    %730 = vector.extract_strided_slice %721 {offsets = [0, 128], sizes = [8, 32], strides = [1, 1]} : vector<8x384xf32> to vector<8x32xf32>
    %731 = vector.extract_strided_slice %660 {offsets = [0, 128], sizes = [8, 32], strides = [1, 1]} : vector<8x384xf32> to vector<8x32xf32>
    %732 = arith.addf %730, %731 : vector<8x32xf32>
    %733 = arith.negf %732 : vector<8x32xf32>
    %734 = math.exp %733 : vector<8x32xf32>
    %cst_82 = arith.constant 1.000000e+00 : f32
    %735 = vector.broadcast %cst_82 : f32 to vector<8x32xf32>
    %736 = arith.addf %735, %734 : vector<8x32xf32>
    %737 = arith.divf %735, %736 : vector<8x32xf32>
    %738 = vector.extract_strided_slice %721 {offsets = [0, 256], sizes = [8, 32], strides = [1, 1]} : vector<8x384xf32> to vector<8x32xf32>
    %739 = vector.extract_strided_slice %660 {offsets = [0, 256], sizes = [8, 32], strides = [1, 1]} : vector<8x384xf32> to vector<8x32xf32>
    %740 = arith.mulf %729, %739 : vector<8x32xf32>
    %741 = arith.addf %738, %740 : vector<8x32xf32>
    %742 = math.tanh %741 : vector<8x32xf32>
    %cst_83 = arith.constant 1.000000e+00 : f32
    %743 = vector.broadcast %cst_83 : f32 to vector<8x32xf32>
    %744 = arith.subf %743, %737 : vector<8x32xf32>
    %745 = arith.mulf %744, %742 : vector<8x32xf32>
    %746 = arith.mulf %737, %656 : vector<8x32xf32>
    %747 = arith.addf %745, %746 : vector<8x32xf32>
    %748 = arith.truncf %747 : vector<8x32xf32> to vector<8x32xbf16>
    %cst_84 = arith.constant dense<0.000000e+00> : vector<8x384xf32>
    %749 = tpu.matmul %748, %5, %cst_84 {dimension_numbers = #tpu.dot_dimension_numbers<[1], [0], [0], [1], [0, 0, 1, 1], [], []>} : vector<8x32xbf16>, vector<32x384xbf16>, vector<8x384xf32> -> vector<8x384xf32>
    %750 = vector.broadcast %10 : vector<1x384xf32> to vector<8x384xf32>
    %751 = arith.addf %749, %750 : vector<8x384xf32>
    %752 = vector.extract_strided_slice %751 {offsets = [0, 64], sizes = [8, 16], strides = [1, 1]} : vector<8x384xf32> to vector<8x16xf32>
    %753 = vector.broadcast %13 : vector<1x16xf32> to vector<8x16xf32>
    %754 = arith.addf %752, %753 : vector<8x16xf32>
    %cst_85 = arith.constant dense<0xFF800000> : vector<8xf32>
    %755 = vector.multi_reduction <maximumf>, %754, %cst_85 [1] : vector<8x16xf32> to vector<8xf32>
    %756 = vector.shape_cast %755 : vector<8xf32> to vector<8x1xf32>
    %757 = vector.broadcast %756 : vector<8x1xf32> to vector<8x16xf32>
    %758 = arith.cmpf oeq, %754, %757 : vector<8x16xf32>
    %759 = arith.extui %758 : vector<8x16xi1> to vector<8x16xi32>
    %760 = arith.sitofp %759 : vector<8x16xi32> to vector<8x16xf32>
    %761 = arith.truncf %760 : vector<8x16xf32> to vector<8x16xbf16>
    %762 = vector.extract_strided_slice %751 {offsets = [0, 32], sizes = [8, 1], strides = [1, 1]} : vector<8x384xf32> to vector<8x1xf32>
    %763 = vector.broadcast %762 : vector<8x1xf32> to vector<8x8xf32>
    %764 = arith.addf %292, %763 : vector<8x8xf32>
    %cst_86 = arith.constant 0.000000e+00 : f32
    %765 = vector.broadcast %cst_86 : f32 to vector<8x8xf32>
    %766 = arith.maximumf %764, %765 : vector<8x8xf32>
    %cst_87 = arith.constant dense<0xFF800000> : vector<8xf32>
    %767 = vector.multi_reduction <maximumf>, %766, %cst_87 [1] : vector<8x8xf32> to vector<8xf32>
    %768 = vector.shape_cast %767 : vector<8xf32> to vector<8x1xf32>
    %769 = vector.broadcast %768 : vector<8x1xf32> to vector<8x8xf32>
    %770 = arith.subf %766, %769 : vector<8x8xf32>
    %771 = math.exp %770 : vector<8x8xf32>
    %cst_88 = arith.constant dense<0.000000e+00> : vector<8xf32>
    %772 = vector.multi_reduction <add>, %771, %cst_88 [1] : vector<8x8xf32> to vector<8xf32>
    %773 = vector.shape_cast %772 : vector<8xf32> to vector<8x1xf32>
    %774 = tpu.reciprocal %773 {approx = true} : vector<8x1xf32> -> vector<8x1xf32>
    %775 = vector.broadcast %774 : vector<8x1xf32> to vector<8x8xf32>
    %776 = arith.mulf %771, %775 : vector<8x8xf32>
    %777 = vector.extract_strided_slice %776 {offsets = [0, 0], sizes = [8, 1], strides = [1, 1]} : vector<8x8xf32> to vector<8x1xf32>
    %778 = vector.broadcast %777 : vector<8x1xf32> to vector<8x32xf32>
    %779 = arith.mulf %778, %61 : vector<8x32xf32>
    %780 = vector.extract_strided_slice %776 {offsets = [0, 1], sizes = [8, 1], strides = [1, 1]} : vector<8x8xf32> to vector<8x1xf32>
    %781 = vector.broadcast %780 : vector<8x1xf32> to vector<8x32xf32>
    %782 = arith.mulf %781, %93 : vector<8x32xf32>
    %783 = arith.addf %779, %782 : vector<8x32xf32>
    %784 = vector.extract_strided_slice %776 {offsets = [0, 2], sizes = [8, 1], strides = [1, 1]} : vector<8x8xf32> to vector<8x1xf32>
    %785 = vector.broadcast %784 : vector<8x1xf32> to vector<8x32xf32>
    %786 = arith.mulf %785, %125 : vector<8x32xf32>
    %787 = arith.addf %783, %786 : vector<8x32xf32>
    %788 = vector.extract_strided_slice %776 {offsets = [0, 3], sizes = [8, 1], strides = [1, 1]} : vector<8x8xf32> to vector<8x1xf32>
    %789 = vector.broadcast %788 : vector<8x1xf32> to vector<8x32xf32>
    %790 = arith.mulf %789, %157 : vector<8x32xf32>
    %791 = arith.addf %787, %790 : vector<8x32xf32>
    %792 = vector.extract_strided_slice %776 {offsets = [0, 4], sizes = [8, 1], strides = [1, 1]} : vector<8x8xf32> to vector<8x1xf32>
    %793 = vector.broadcast %792 : vector<8x1xf32> to vector<8x32xf32>
    %794 = arith.mulf %793, %189 : vector<8x32xf32>
    %795 = arith.addf %791, %794 : vector<8x32xf32>
    %796 = vector.extract_strided_slice %776 {offsets = [0, 5], sizes = [8, 1], strides = [1, 1]} : vector<8x8xf32> to vector<8x1xf32>
    %797 = vector.broadcast %796 : vector<8x1xf32> to vector<8x32xf32>
    %798 = arith.mulf %797, %221 : vector<8x32xf32>
    %799 = arith.addf %795, %798 : vector<8x32xf32>
    %800 = vector.extract_strided_slice %776 {offsets = [0, 6], sizes = [8, 1], strides = [1, 1]} : vector<8x8xf32> to vector<8x1xf32>
    %801 = vector.broadcast %800 : vector<8x1xf32> to vector<8x32xf32>
    %802 = arith.mulf %801, %253 : vector<8x32xf32>
    %803 = arith.addf %799, %802 : vector<8x32xf32>
    %804 = vector.extract_strided_slice %776 {offsets = [0, 7], sizes = [8, 1], strides = [1, 1]} : vector<8x8xf32> to vector<8x1xf32>
    %805 = vector.broadcast %804 : vector<8x1xf32> to vector<8x32xf32>
    %806 = arith.mulf %805, %285 : vector<8x32xf32>
    %807 = arith.addf %803, %806 : vector<8x32xf32>
    %808 = arith.truncf %807 : vector<8x32xf32> to vector<8x32xbf16>
    %809 = tpu.concatenate %808, %761 in 1 : vector<8x32xbf16>, vector<8x16xbf16> -> vector<8x48xbf16>
    %cst_89 = arith.constant dense<0.000000e+00> : vector<8x384xf32>
    %810 = tpu.matmul %809, %4, %cst_89 {dimension_numbers = #tpu.dot_dimension_numbers<[1], [0], [0], [1], [0, 0, 1, 1], [], []>} : vector<8x48xbf16>, vector<48x384xbf16>, vector<8x384xf32> -> vector<8x384xf32>
    %811 = vector.broadcast %9 : vector<1x384xf32> to vector<8x384xf32>
    %812 = arith.addf %810, %811 : vector<8x384xf32>
    %813 = vector.extract_strided_slice %812 {offsets = [0, 0], sizes = [8, 32], strides = [1, 1]} : vector<8x384xf32> to vector<8x32xf32>
    %814 = vector.extract_strided_slice %751 {offsets = [0, 0], sizes = [8, 32], strides = [1, 1]} : vector<8x384xf32> to vector<8x32xf32>
    %815 = arith.addf %813, %814 : vector<8x32xf32>
    %816 = arith.negf %815 : vector<8x32xf32>
    %817 = math.exp %816 : vector<8x32xf32>
    %cst_90 = arith.constant 1.000000e+00 : f32
    %818 = vector.broadcast %cst_90 : f32 to vector<8x32xf32>
    %819 = arith.addf %818, %817 : vector<8x32xf32>
    %820 = arith.divf %818, %819 : vector<8x32xf32>
    %821 = vector.extract_strided_slice %812 {offsets = [0, 128], sizes = [8, 32], strides = [1, 1]} : vector<8x384xf32> to vector<8x32xf32>
    %822 = vector.extract_strided_slice %751 {offsets = [0, 128], sizes = [8, 32], strides = [1, 1]} : vector<8x384xf32> to vector<8x32xf32>
    %823 = arith.addf %821, %822 : vector<8x32xf32>
    %824 = arith.negf %823 : vector<8x32xf32>
    %825 = math.exp %824 : vector<8x32xf32>
    %cst_91 = arith.constant 1.000000e+00 : f32
    %826 = vector.broadcast %cst_91 : f32 to vector<8x32xf32>
    %827 = arith.addf %826, %825 : vector<8x32xf32>
    %828 = arith.divf %826, %827 : vector<8x32xf32>
    %829 = vector.extract_strided_slice %812 {offsets = [0, 256], sizes = [8, 32], strides = [1, 1]} : vector<8x384xf32> to vector<8x32xf32>
    %830 = vector.extract_strided_slice %751 {offsets = [0, 256], sizes = [8, 32], strides = [1, 1]} : vector<8x384xf32> to vector<8x32xf32>
    %831 = arith.mulf %820, %830 : vector<8x32xf32>
    %832 = arith.addf %829, %831 : vector<8x32xf32>
    %833 = math.tanh %832 : vector<8x32xf32>
    %cst_92 = arith.constant 1.000000e+00 : f32
    %834 = vector.broadcast %cst_92 : f32 to vector<8x32xf32>
    %835 = arith.subf %834, %828 : vector<8x32xf32>
    %836 = arith.mulf %835, %833 : vector<8x32xf32>
    %837 = arith.mulf %828, %747 : vector<8x32xf32>
    %838 = arith.addf %836, %837 : vector<8x32xf32>
    %839 = arith.truncf %838 : vector<8x32xf32> to vector<8x32xbf16>
    %cst_93 = arith.constant dense<0.000000e+00> : vector<8x384xf32>
    %840 = tpu.matmul %839, %5, %cst_93 {dimension_numbers = #tpu.dot_dimension_numbers<[1], [0], [0], [1], [0, 0, 1, 1], [], []>} : vector<8x32xbf16>, vector<32x384xbf16>, vector<8x384xf32> -> vector<8x384xf32>
    %841 = vector.broadcast %10 : vector<1x384xf32> to vector<8x384xf32>
    %842 = arith.addf %840, %841 : vector<8x384xf32>
    %843 = vector.extract_strided_slice %842 {offsets = [0, 64], sizes = [8, 16], strides = [1, 1]} : vector<8x384xf32> to vector<8x16xf32>
    %844 = vector.broadcast %13 : vector<1x16xf32> to vector<8x16xf32>
    %845 = arith.addf %843, %844 : vector<8x16xf32>
    %cst_94 = arith.constant dense<0xFF800000> : vector<8xf32>
    %846 = vector.multi_reduction <maximumf>, %845, %cst_94 [1] : vector<8x16xf32> to vector<8xf32>
    %847 = vector.shape_cast %846 : vector<8xf32> to vector<8x1xf32>
    %848 = vector.broadcast %847 : vector<8x1xf32> to vector<8x16xf32>
    %849 = arith.cmpf oeq, %845, %848 : vector<8x16xf32>
    %850 = arith.extui %849 : vector<8x16xi1> to vector<8x16xi32>
    %851 = arith.sitofp %850 : vector<8x16xi32> to vector<8x16xf32>
    %852 = arith.truncf %851 : vector<8x16xf32> to vector<8x16xbf16>
    %853 = vector.extract_strided_slice %842 {offsets = [0, 32], sizes = [8, 1], strides = [1, 1]} : vector<8x384xf32> to vector<8x1xf32>
    %854 = vector.broadcast %853 : vector<8x1xf32> to vector<8x8xf32>
    %855 = arith.addf %292, %854 : vector<8x8xf32>
    %cst_95 = arith.constant 0.000000e+00 : f32
    %856 = vector.broadcast %cst_95 : f32 to vector<8x8xf32>
    %857 = arith.maximumf %855, %856 : vector<8x8xf32>
    %cst_96 = arith.constant dense<0xFF800000> : vector<8xf32>
    %858 = vector.multi_reduction <maximumf>, %857, %cst_96 [1] : vector<8x8xf32> to vector<8xf32>
    %859 = vector.shape_cast %858 : vector<8xf32> to vector<8x1xf32>
    %860 = vector.broadcast %859 : vector<8x1xf32> to vector<8x8xf32>
    %861 = arith.subf %857, %860 : vector<8x8xf32>
    %862 = math.exp %861 : vector<8x8xf32>
    %cst_97 = arith.constant dense<0.000000e+00> : vector<8xf32>
    %863 = vector.multi_reduction <add>, %862, %cst_97 [1] : vector<8x8xf32> to vector<8xf32>
    %864 = vector.shape_cast %863 : vector<8xf32> to vector<8x1xf32>
    %865 = tpu.reciprocal %864 {approx = true} : vector<8x1xf32> -> vector<8x1xf32>
    %866 = vector.broadcast %865 : vector<8x1xf32> to vector<8x8xf32>
    %867 = arith.mulf %862, %866 : vector<8x8xf32>
    %868 = vector.extract_strided_slice %867 {offsets = [0, 0], sizes = [8, 1], strides = [1, 1]} : vector<8x8xf32> to vector<8x1xf32>
    %869 = vector.broadcast %868 : vector<8x1xf32> to vector<8x32xf32>
    %870 = arith.mulf %869, %61 : vector<8x32xf32>
    %871 = vector.extract_strided_slice %867 {offsets = [0, 1], sizes = [8, 1], strides = [1, 1]} : vector<8x8xf32> to vector<8x1xf32>
    %872 = vector.broadcast %871 : vector<8x1xf32> to vector<8x32xf32>
    %873 = arith.mulf %872, %93 : vector<8x32xf32>
    %874 = arith.addf %870, %873 : vector<8x32xf32>
    %875 = vector.extract_strided_slice %867 {offsets = [0, 2], sizes = [8, 1], strides = [1, 1]} : vector<8x8xf32> to vector<8x1xf32>
    %876 = vector.broadcast %875 : vector<8x1xf32> to vector<8x32xf32>
    %877 = arith.mulf %876, %125 : vector<8x32xf32>
    %878 = arith.addf %874, %877 : vector<8x32xf32>
    %879 = vector.extract_strided_slice %867 {offsets = [0, 3], sizes = [8, 1], strides = [1, 1]} : vector<8x8xf32> to vector<8x1xf32>
    %880 = vector.broadcast %879 : vector<8x1xf32> to vector<8x32xf32>
    %881 = arith.mulf %880, %157 : vector<8x32xf32>
    %882 = arith.addf %878, %881 : vector<8x32xf32>
    %883 = vector.extract_strided_slice %867 {offsets = [0, 4], sizes = [8, 1], strides = [1, 1]} : vector<8x8xf32> to vector<8x1xf32>
    %884 = vector.broadcast %883 : vector<8x1xf32> to vector<8x32xf32>
    %885 = arith.mulf %884, %189 : vector<8x32xf32>
    %886 = arith.addf %882, %885 : vector<8x32xf32>
    %887 = vector.extract_strided_slice %867 {offsets = [0, 5], sizes = [8, 1], strides = [1, 1]} : vector<8x8xf32> to vector<8x1xf32>
    %888 = vector.broadcast %887 : vector<8x1xf32> to vector<8x32xf32>
    %889 = arith.mulf %888, %221 : vector<8x32xf32>
    %890 = arith.addf %886, %889 : vector<8x32xf32>
    %891 = vector.extract_strided_slice %867 {offsets = [0, 6], sizes = [8, 1], strides = [1, 1]} : vector<8x8xf32> to vector<8x1xf32>
    %892 = vector.broadcast %891 : vector<8x1xf32> to vector<8x32xf32>
    %893 = arith.mulf %892, %253 : vector<8x32xf32>
    %894 = arith.addf %890, %893 : vector<8x32xf32>
    %895 = vector.extract_strided_slice %867 {offsets = [0, 7], sizes = [8, 1], strides = [1, 1]} : vector<8x8xf32> to vector<8x1xf32>
    %896 = vector.broadcast %895 : vector<8x1xf32> to vector<8x32xf32>
    %897 = arith.mulf %896, %285 : vector<8x32xf32>
    %898 = arith.addf %894, %897 : vector<8x32xf32>
    %899 = arith.truncf %898 : vector<8x32xf32> to vector<8x32xbf16>
    %900 = tpu.concatenate %899, %852 in 1 : vector<8x32xbf16>, vector<8x16xbf16> -> vector<8x48xbf16>
    %cst_98 = arith.constant dense<0.000000e+00> : vector<8x384xf32>
    %901 = tpu.matmul %900, %4, %cst_98 {dimension_numbers = #tpu.dot_dimension_numbers<[1], [0], [0], [1], [0, 0, 1, 1], [], []>} : vector<8x48xbf16>, vector<48x384xbf16>, vector<8x384xf32> -> vector<8x384xf32>
    %902 = vector.broadcast %9 : vector<1x384xf32> to vector<8x384xf32>
    %903 = arith.addf %901, %902 : vector<8x384xf32>
    %904 = vector.extract_strided_slice %903 {offsets = [0, 0], sizes = [8, 32], strides = [1, 1]} : vector<8x384xf32> to vector<8x32xf32>
    %905 = vector.extract_strided_slice %842 {offsets = [0, 0], sizes = [8, 32], strides = [1, 1]} : vector<8x384xf32> to vector<8x32xf32>
    %906 = arith.addf %904, %905 : vector<8x32xf32>
    %907 = arith.negf %906 : vector<8x32xf32>
    %908 = math.exp %907 : vector<8x32xf32>
    %cst_99 = arith.constant 1.000000e+00 : f32
    %909 = vector.broadcast %cst_99 : f32 to vector<8x32xf32>
    %910 = arith.addf %909, %908 : vector<8x32xf32>
    %911 = arith.divf %909, %910 : vector<8x32xf32>
    %912 = vector.extract_strided_slice %903 {offsets = [0, 128], sizes = [8, 32], strides = [1, 1]} : vector<8x384xf32> to vector<8x32xf32>
    %913 = vector.extract_strided_slice %842 {offsets = [0, 128], sizes = [8, 32], strides = [1, 1]} : vector<8x384xf32> to vector<8x32xf32>
    %914 = arith.addf %912, %913 : vector<8x32xf32>
    %915 = arith.negf %914 : vector<8x32xf32>
    %916 = math.exp %915 : vector<8x32xf32>
    %cst_100 = arith.constant 1.000000e+00 : f32
    %917 = vector.broadcast %cst_100 : f32 to vector<8x32xf32>
    %918 = arith.addf %917, %916 : vector<8x32xf32>
    %919 = arith.divf %917, %918 : vector<8x32xf32>
    %920 = vector.extract_strided_slice %903 {offsets = [0, 256], sizes = [8, 32], strides = [1, 1]} : vector<8x384xf32> to vector<8x32xf32>
    %921 = vector.extract_strided_slice %842 {offsets = [0, 256], sizes = [8, 32], strides = [1, 1]} : vector<8x384xf32> to vector<8x32xf32>
    %922 = arith.mulf %911, %921 : vector<8x32xf32>
    %923 = arith.addf %920, %922 : vector<8x32xf32>
    %924 = math.tanh %923 : vector<8x32xf32>
    %cst_101 = arith.constant 1.000000e+00 : f32
    %925 = vector.broadcast %cst_101 : f32 to vector<8x32xf32>
    %926 = arith.subf %925, %919 : vector<8x32xf32>
    %927 = arith.mulf %926, %924 : vector<8x32xf32>
    %928 = arith.mulf %919, %838 : vector<8x32xf32>
    %929 = arith.addf %927, %928 : vector<8x32xf32>
    %930 = arith.truncf %929 : vector<8x32xf32> to vector<8x32xbf16>
    %cst_102 = arith.constant dense<0.000000e+00> : vector<8x16xf32>
    %931 = tpu.matmul %930, %6, %cst_102 {dimension_numbers = #tpu.dot_dimension_numbers<[1], [0], [0], [1], [0, 0, 1, 1], [], []>} : vector<8x32xbf16>, vector<32x16xbf16>, vector<8x16xf32> -> vector<8x16xf32>
    %932 = vector.broadcast %13 : vector<1x16xf32> to vector<8x16xf32>
    %933 = arith.addf %931, %932 : vector<8x16xf32>
    %934 = vector.shape_cast %302 : vector<8x16xf32> to vector<1x8x16xf32>
    %935 = vector.shape_cast %390 : vector<8x16xf32> to vector<1x8x16xf32>
    %936 = vector.shape_cast %481 : vector<8x16xf32> to vector<1x8x16xf32>
    %937 = vector.shape_cast %572 : vector<8x16xf32> to vector<1x8x16xf32>
    %938 = vector.shape_cast %663 : vector<8x16xf32> to vector<1x8x16xf32>
    %939 = vector.shape_cast %754 : vector<8x16xf32> to vector<1x8x16xf32>
    %940 = vector.shape_cast %845 : vector<8x16xf32> to vector<1x8x16xf32>
    %941 = vector.shape_cast %933 : vector<8x16xf32> to vector<1x8x16xf32>
    %942 = tpu.concatenate %934, %935, %936, %937, %938, %939, %940, %941 in 0 : vector<1x8x16xf32>, vector<1x8x16xf32>, vector<1x8x16xf32>, vector<1x8x16xf32>, vector<1x8x16xf32>, vector<1x8x16xf32>, vector<1x8x16xf32>, vector<1x8x16xf32> -> vector<8x8x16xf32>
    %c0_103 = arith.constant 0 : index
    %c0_104 = arith.constant 0 : index
    %c0_105 = arith.constant 0 : index
    %943 = vector.load %arg4[%c0_103, %c0_104, %c0_105] : memref<8x8x16xf32, #tpu.memory_space<vmem>>, vector<8x8x16xf32>
    tpu.vector_store %arg4[%c0_103, %c0_104, %c0_105], %942 {strides = array<i32>} : memref<8x8x16xf32, #tpu.memory_space<vmem>>, vector<8x8x16xf32>,
    return
  }
  func.func @transform_0(%arg0: i32) -> (i32, i32) {
    %c0_i32 = arith.constant 0 : i32
    %c0_i32_0 = arith.constant 0 : i32
    %c0_i32_1 = arith.constant 0 : i32
    return %c0_i32, %c0_i32_0 : i32, i32
  }
  func.func @transform_1(%arg0: i32) -> (i32, i32) {
    %c0_i32 = arith.constant 0 : i32
    %c0_i32_0 = arith.constant 0 : i32
    %c0_i32_1 = arith.constant 0 : i32
    return %c0_i32, %c0_i32_0 : i32, i32
  }
  func.func @transform_2(%arg0: i32) -> (i32, i32) {
    %c0_i32 = arith.constant 0 : i32
    %c0_i32_0 = arith.constant 0 : i32
    %c0_i32_1 = arith.constant 0 : i32
    return %c0_i32, %c0_i32_0 : i32, i32
  }
  func.func @transform_3(%arg0: i32) -> (i32, i32, i32) {
    %c0_i32 = arith.constant 0 : i32
    %c0_i32_0 = arith.constant 0 : i32
    %c0_i32_1 = arith.constant 0 : i32
    %c0_i32_2 = arith.constant 0 : i32
    return %c0_i32, %c0_i32_0, %c0_i32_1 : i32, i32, i32
  }
}

</mosaic_0001>

<bundles_post_ra>
// kernel: seq2seq_attention_forward.1
= control target key start
LH: loop header
LB: loop body
LE: loop exit
PB: predicated region body
PF: predicated region fallthrough
CT: control target
= control target key end

     0   :  { %8 = vsyncpa [#allocation3], 0  ;;  %s5283_s0 = inlined_call_operand.vmem [shape: s32[16,8], index: 0, kind: input, shape index: {}]   ;;  %s5284_s1 = inlined_call_operand.hbm [shape: bf16[128,384], index: 1, kind: input, shape index: {}]   ;;  %s5285_s2 = inlined_call_operand.vmem [shape: f32[8,384], index: 2, kind: input, shape index: {}]   ;;  %s5286_s3 = inlined_call_operand.hbm [shape: f32[8,8,16], index: 3, kind: output, shape index: {}]  }
   0x1   :  { %9 = vsyncpa [#allocation4], 0  ;;  %s4191_s12 = smov [#allocation2]   ;;  %s4143_s16 = scalar_lea.hbm %s5284_s1, 3072 }
   0x2   :  { %s17_s13 = sshll.u32 %s4191_s12, 4  ;;  %p4144_p0 = scmp.ne.s32.totalorder %s5284_s1, %s4143_s16  ;;  %s18_s13 = int_to_ptr.vmem [resolvable:$true] %s17_s13 }
   0x3   :  { %p4147_p1 = scmp.lt.u32.totalorder %s4143_s16, %s5284_s1 }
   0x5   :  { %p4149_p2 = pnand %p4147_p1, %p4144_p0 }
   0x7   :  { %4152 = shalt.err (!%p4149_p2)
}
   0x8   :  { %s4153_s21 = scalar_lea.vmem %s18_s13, 3072  ;;  %p4158_p4 = scmp.lt.s32.totalorder %s18_s13, %s18_s13 }
   0x9   :  { %p4154_p3 = scmp.ne.s32.totalorder %s18_s13, %s4153_s21  ;;  %p4159_p5 = scmp.lt.s32.totalorder %s4153_s21, %s4153_s21 }
   0xb   :  { %p4160_p6 = por %p4159_p5, %p4158_p4 }
   0xd   :  { %p4161_p7 = pnand %p4160_p6, %p4154_p3 }
   0xf   :  { %4164 = shalt.err (!%p4161_p7)
}
  0x10   :  { %s4192_s22 = smov 192   ;;  %s4193_s23 = smov 12  }
  0x11   :  { %23 = dma.hbm_to_vmem [thread:$0]  %s5284_s1, 3072, %s18_s13, [#allocation3], %s4192_s22, %s4192_s22, %s4193_s23  }
  0x12   :  { %4187 = dma.done.wait [#allocation3], 3072  }
  0x13   :  { %4188 = vsyncadd [#allocation3], 4294964224  ;;  %v67_v0 = vlaneseq  ;;  %v5303_v4 = vmov 0   ;;  %vm205_vm0 = vcmask 130048   ;;  %v65_v7 = vld [vmem:[%s5283_s0] sm:$0xff]  ;;  %v4271_v8 = vld [vmem:[%s5285_s2 + $0x8] sm:$0xff] }
  0x14   :  { %250 = vmatprep.mubr.bf16.mxu0 %v5303_v4  ;;  %3855 = vset.pattern.permute.xlu1 %v5303_v4  ;;  %v4276_v9 = vld [vmem:[%s5285_s2 + $0x10] sm:$0xff]  ;;  %v5305_v12 = vmov 0.0   ;;  %v3920_v23 = vld [vmem:[#allocation2] ss:$12 sps:$4 sm:$0xff]   ;;  %v4302_v24 = vld [vmem:[#allocation2 + $0x1c] ss:$12 sps:$4 sm:$0xff]  }
  0x15   :  { %v4249_v1 = vshrl.u32 %v67_v0, 7  ;;  %3384 = vst.msk [vmem:[#allocation5] sm:$0xff] %vm205_vm0, %v5305_v12  ;;  %v3917_v18 = vld [vmem:[#allocation2 + $0x4] ss:$12 sps:$4 sm:$0xff]   ;;  %v3919_v22 = vld [vmem:[#allocation2 + $0x8] ss:$12 sps:$4 sm:$0xff]  }
  0x16   :  { %218 = vmatprep.subr.bf16.mxu0 %v3917_v18  ;;  %3618 = vmatprep.subr.bf16.mxu1 %v3919_v22  ;;  %v4310_v31 = vand.u32 127, %v67_v0  ;;  %v4320_v42 = vld [vmem:[#allocation2 + $0x18] ss:$12 sps:$4 sm:$0xff]   ;;  %v4322_v45 = vld [vmem:[#allocation2 + $0x34] ss:$12 sps:$4 sm:$0xff]   ;;  %vm4196_vm9 = vmmov 0  }
  0x17   :  { %v4252_v2 = vsub.s32 2, %v4249_v1  ;;  %v4255_v3 = vsub.s32 0, %v4249_v1  ;;  %v4260_v5 = vsub.s32 3, %v4249_v1  ;;  %v4263_v6 = vsub.s32 1, %v4249_v1  ;;  %219 = vmatpush1.bf16.msra.mxu0 %v3920_v23  ;;  %3619 = vmatpush3.bf16.msra.mxu1 %v3919_v22  ;;  %v4333_v49 = vld [vmem:[#allocation2 + $0x30] ss:$12 sps:$4 sm:$0xff]  }
  0x18   :  { %v106_v10 = vsub.s32 5, %v4249_v1  ;;  %v99_v11 = vsub.s32 4, %v4249_v1  ;;  %v120_v27 = vsub.s32 7, %v4249_v1  ;;  %v113_v28 = vsub.s32 6, %v4249_v1  ;;  %404 = vmatprep.subr.bf16.mxu1 %v4302_v24  ;;  %510 = vmatprep.subr.bf16.mxu0 %v4302_v24  ;;  %v4351_v55 = vld [vmem:[#allocation2 + $0x20] ss:$12 sps:$4 sm:$0xff]  }
  0x19   :  { %v86_v13 = vrot.slane %v65_v7, %v4252_v2  ;;  %v4285_v14 = vrot.slane %v4271_v8, %v4252_v2  ;;  %v4289_v15 = vrot.slane %v4276_v9, %v4252_v2  ;;  %v72_v16 = vrot.slane %v65_v7, %v4255_v3  ;;  %v4357_v56 = vld [vmem:[#allocation2 + $0x38] ss:$12 sps:$4 sm:$0xff]   ;;  %s4197_s6 = smov 96   ;;  %s4198_s7 = smov 97  }
  0x1a   :  { %v4294_v17 = vrot.slane %v4271_v8, %v4260_v5  ;;  %v93_v19 = vrot.slane %v65_v7, %v4260_v5  ;;  %v4299_v20 = vrot.slane %v4276_v9, %v4260_v5  ;;  %v79_v21 = vrot.slane %v65_v7, %v4263_v6  ;;  %v4376_v57 = vld [vmem:[%s5285_s2] sm:$0xff]  ;;  %s4199_s8 = smov 98   ;;  %s4200_s9 = smov 99  }
  0x1b   :  { %88 = vbcast.lane.b32.xlu1 %v86_v13, 256  ;;  %74 = vbcast.lane.b32.xlu0 %v72_v16, 256  ;;  %v107_v25 = vrot.slane %v65_v7, %v106_v10  ;;  %v100_v26 = vrot.slane %v65_v7, %v99_v11  ;;  %v121_v29 = vrot.slane %v65_v7, %v120_v27  ;;  %v1299_v58 = vrot.slane %v4376_v57, 4  ;;  %s4201_s10 = smov 100   ;;  %s4202_s11 = smov 101  }
  0x1c   :  { %v114_v30 = vrot.slane %v65_v7, %v113_v28  ;;  %v4382_v59 = vrot.slane %v4276_v9, %v4255_v3  ;;  %v160_v61 = vrot.slane %v4376_v57, %v4255_v3  ;;  %v164_v0 = vrot.slane %v4271_v8, %v4255_v3  ;;  %s4204_s12 = smov 102   ;;  %s4214_s18 = smov [#allocation5]  }
  0x1d   :  { %vm400_vm10 = vcmask 261120   ;;  %vm1284_vm11 = vcmask 7168   ;;  %vm1286_vm12 = vcmask 15360   ;;  %vm1288_vm13 = vcmask 23552   ;;  %s3397_s19 = sshll.u32 %s4214_s18, 4  ;;  %s3398_s19 = int_to_ptr.vmem [resolvable:$true] %s3397_s19 }
  0x1e   :  { %vm1290_vm14 = vcmask 31744   ;;  %vm1292_vm15 = vcmask 39936   ;;  %s4165_s20 = scalar_lea.vmem %s3398_s19, 1024  ;;  %p4170_p9 = scmp.lt.s32.totalorder %s3398_s19, %s3398_s19 }
  0x1f   :  { %95 = vbcast.lane.b32.xlu1 %v93_v19, 256  ;;  %81 = vbcast.lane.b32.xlu0 %v79_v21, 256  ;;  %p4166_p8 = scmp.ne.s32.totalorder %s3398_s19, %s4165_s20  ;;  %p4171_p10 = scmp.lt.s32.totalorder %s4165_s20, %s4165_s20 }
  0x21   :  { %p4172_p11 = por %p4171_p10, %p4170_p9 }
  0x23   :  { %109 = vbcast.lane.b32.xlu1 %v107_v25, 256  ;;  %102 = vbcast.lane.b32.xlu0 %v100_v26, 256  ;;  %p4173_p12 = pnand %p4172_p11, %p4166_p8 }
  0x27   :  { %123 = vbcast.lane.b32.xlu1 %v121_v29, 256  ;;  %116 = vbcast.lane.b32.xlu0 %v114_v30, 256 }
  0x2b   :  { %1300 = vrot.lane.b32.xlu0 %v1299_v58, %s4197_s6 }
  0x8d   :  { %v89_v32 = vpop.permute.xlu1 %88  ;;  %v75_v33 = vpop.permute.xlu0 %74 }
  0x8e   :  { %vm127_vm1 = vcmp.eq.s32.totalorder %v89_v32, %v4310_v31  ;;  %vm125_vm2 = vcmp.eq.s32.totalorder %v75_v33, %v4310_v31 }
  0x8f   :  { %v3411_v36 = vsel %vm127_vm1, 1.0, %v5305_v12  ;;  %v3409_v37 = vsel %vm125_vm2, 1.0, %v5305_v12  ;;  %vm1294_vm1 = vcmask 48128   ;;  %vm1296_vm2 = vcmask 56320  }
  0x91   :  { %v96_v34 = vpop.permute.xlu1 %95  ;;  %v82_v35 = vpop.permute.xlu0 %81 }
  0x92   :  { %vm128_vm3 = vcmp.eq.s32.totalorder %v96_v34, %v4310_v31  ;;  %vm126_vm4 = vcmp.eq.s32.totalorder %v82_v35, %v4310_v31 }
  0x93   :  { %v3412_v38 = vsel %vm128_vm3, 1.0, %v5305_v12  ;;  %v3410_v39 = vsel %vm126_vm4, 1.0, %v5305_v12  ;;  %vm1453_vm3 = vcmask 64512  }
  0x94   :  { %v3534_v40 = vpack.c.bf16 %v3412_v38, %v3411_v36  ;;  %v3533_v41 = vpack.c.bf16 %v3410_v39, %v3409_v37 }
  0x95   :  { %v110_v43 = vpop.permute.xlu1 %109  ;;  %v103_v44 = vpop.permute.xlu0 %102 }
  0x96   :  { %vm130_vm5 = vcmp.eq.s32.totalorder %v110_v43, %v4310_v31  ;;  %3620 = vmatprep.mubr.msk.bf16.mxu1 %vm205_vm0, %v3533_v41  ;;  %vm129_vm6 = vcmp.eq.s32.totalorder %v103_v44, %v4310_v31  ;;  %3424 = vmatmul.mubr.msk.bf16.vlgmr.msra.gmra.mrb[0].mxu0 %vm205_vm0, %v3533_v41  ;;  %v4425_v44 = vrot.slane %v4376_v57, %v4263_v6 }
  0x97   :  { %v3414_v46 = vsel %vm130_vm5, 1.0, %v5305_v12  ;;  %v3413_v47 = vsel %vm129_vm6, 1.0, %v5305_v12  ;;  %3621 = vmatmul.mubr.msk.bf16.vlgmr.msra.gmra.mrb[0].mxu1 %vm205_vm0, %v3534_v40  ;;  %260 = vmatprep.mubr.bf16.mxu0 %v5303_v4  ;;  %vm1580_vm5 = vcmask 392192   ;;  %vm1771_vm6 = vcmask 654848  }
  0x98   :  { %v3535_v48 = vpack.c.bf16 %v3414_v46, %v3413_v47  ;;  %405 = vmatpush1.bf16.msra.mxu1 %v4320_v42  ;;  %511 = vmatpush1.bf16.msra.mxu0 %v4320_v42  ;;  %v4429_v46 = vrot.slane %v4271_v8, %v4263_v6 }
  0x99   :  { %v124_v50 = vpop.permute.xlu1 %123  ;;  %v117_v51 = vpop.permute.xlu0 %116  ;;  %406 = vmatprep.subr.bf16.mxu1 %v4322_v45  ;;  %512 = vmatprep.subr.bf16.mxu0 %v4322_v45 }
  0x9a   :  { %vm132_vm7 = vcmp.eq.s32.totalorder %v124_v50, %v4310_v31  ;;  %vm131_vm8 = vcmp.eq.s32.totalorder %v117_v51, %v4310_v31  ;;  %3624 = vmatprep.mubr.msk.bf16.mxu1 %vm205_vm0, %v3535_v48 }
  0x9b   :  { %v3416_v52 = vsel %vm132_vm7, 1.0, %v5305_v12  ;;  %v3415_v53 = vsel %vm131_vm8, 1.0, %v5305_v12 }
  0x9c   :  { %v3536_v54 = vpack.c.bf16 %v3416_v52, %v3415_v53  ;;  %407 = vmatpush1.bf16.msra.mxu1 %v4333_v49  ;;  %513 = vmatpush1.bf16.msra.mxu0 %v4333_v49 }
  0x9d   :  { %3628 = vmatprep.subr.bf16.mxu1 %v5305_v12  ;;  %616 = vmatprep.subr.bf16.mxu0 %v4302_v24 }
  0x9e   :  { %3425 = vmatmul.mubr.msk.bf16.gmra.mrb[4].mxu0 %vm205_vm0, %v3534_v40 }
  0x9f   :  { %3625 = vmatmul.mubr.msk.bf16.gmra.mrb[4].mxu1 %vm205_vm0, %v3536_v54  ;;  %270 = vmatprep.mubr.bf16.mxu0 %v5303_v4 }
  0xa0   :  { %436 = vmatprep.mubr.bf16.mxu1 %v5303_v4 }
  0xa6   :  { %3426 = vmatmul.mubr.msk.bf16.gmra.mrb[8].mxu0 %vm205_vm0, %v3535_v48 }
  0xa7   :  { %437 = vmatmul.mubr.bf16.vlgmr.msra.gmra.mrb[8].mxu1 %v5303_v4  ;;  %280 = vmatprep.mubr.bf16.mxu0 %v5303_v4 }
  0xa8   :  { %3629 = vmatpush3.bf16.msra.mxu1 %v4351_v55  ;;  %3632 = vmatprep.mubr.msk.bf16.mxu1 %vm4196_vm9, %v5305_v12 }
  0xa9   :  { %3630 = vmatprep.subr.bf16.mxu1 %v5305_v12 }
  0xac   :  { %3631 = vmatpush3.bf16.msra.mxu1 %v4357_v56 }
  0xad   :  { %3636 = vmatprep.subr.bf16.mxu1 %v5305_v12 }
  0xae   :  { %3427 = vmatmul.mubr.msk.bf16.gmra.mrb[12].mxu0 %vm205_vm0, %v3536_v54 }
  0xaf   :  { %3633 = vmatmul.mubr.bf16.vlgmr.msra.gmra.mrb[12].mxu1 %v5303_v4  ;;  %542 = vmatprep.mubr.bf16.mxu0 %v5303_v4 }
  0xb0   :  { %3637 = vmatpush3.bf16.msra.mxu1 %v4351_v55  ;;  %3640 = vmatprep.mubr.msk.bf16.mxu1 %vm4196_vm9, %v5305_v12 }
  0xb1   :  { %3638 = vmatprep.subr.bf16.mxu1 %v5305_v12 }
  0xb4   :  { %3639 = vmatpush3.bf16.msra.mxu1 %v4357_v56 }
  0xb5   :  { %3644 = vmatprep.subr.bf16.mxu1 %v5305_v12 }
 0x169   :  { %v252_v60 = vpop.f32.mrb[0].mxu0 }
 0x16a   :  { %v254_v62 = vpop.f32.mrb[1].mxu0  ;;  %v3622_v63 = vpop.f32.mrb[0].mxu1  ;;  %v253_v52 = vadd.f32 %v252_v60, %v160_v61 }
 0x16b   :  { %v4389_v7 = vadd.f32 %v3622_v63, %v4382_v59  ;;  %v256_v10 = vpop.f32.mrb[2].mxu0  ;;  %v4391_v13 = vpop.f32.mrb[1].mxu1 }
 0x16c   :  { %v4393_v16 = vadd.f32 %v256_v10, %v160_v61  ;;  %v258_v18 = vpop.f32.mrb[3].mxu0  ;;  %v3623_v19 = vpop.f32.mrb[2].mxu1  ;;  %v255_v10 = vadd.f32 %v254_v62, %v164_v0 }
 0x16d   :  { %v4395_v21 = vadd.f32 %v258_v18, %v164_v0  ;;  %v4398_v22 = vadd.f32 %v3623_v19, %v4382_v59  ;;  %v328_v23 = vpop.f32.mrb[3].mxu1 }
 0x16e   :  { %v4401_v25 = vadd.f32 %v328_v23, %v4382_v59 }
 0x171   :  { %v262_v26 = vpop.f32.mrb[4].mxu0 }
 0x172   :  { %v4403_v27 = vadd.f32 %v262_v26, %v160_v61  ;;  %v264_v28 = vpop.f32.mrb[5].mxu0  ;;  %v3626_v29 = vpop.f32.mrb[4].mxu1 }
 0x173   :  { %v4405_v30 = vadd.f32 %v264_v28, %v164_v0  ;;  %v4408_v32 = vadd.f32 %v3626_v29, %v4382_v59  ;;  %v266_v33 = vpop.f32.mrb[6].mxu0  ;;  %v341_v34 = vpop.f32.mrb[5].mxu1 }
 0x174   :  { %v4410_v35 = vadd.f32 %v266_v33, %v160_v61  ;;  %v4413_v36 = vadd.f32 %v341_v34, %v4382_v59  ;;  %v268_v37 = vpop.f32.mrb[7].mxu0  ;;  %v3627_v38 = vpop.f32.mrb[6].mxu1 }
 0x175   :  { %v4415_v39 = vadd.f32 %v268_v37, %v164_v0  ;;  %v4418_v40 = vadd.f32 %v3627_v38, %v4382_v59  ;;  %v344_v41 = vpop.f32.mrb[7].mxu1 }
 0x176   :  { %v4421_v43 = vadd.f32 %v344_v41, %v4382_v59 }
 0x179   :  { %v272_v47 = vpop.f32.mrb[8].mxu0 }
 0x17a   :  { %v4431_v48 = vadd.f32 %v272_v47, %v160_v61  ;;  %v274_v50 = vpop.f32.mrb[9].mxu0  ;;  %v438_v51 = vpop.f32.mrb[8].mxu1 }
 0x17b   :  { %v4433_v53 = vadd.f32 %v274_v50, %v164_v0  ;;  %v439_v54 = vadd.f32 %v438_v51, %v4425_v44  ;;  %v276_v58 = vpop.f32.mrb[10].mxu0  ;;  %v440_v63 = vpop.f32.mrb[9].mxu1 }
 0x17c   :  { %v4436_v18 = vadd.f32 %v276_v58, %v160_v61  ;;  %v441_v19 = vadd.f32 %v440_v63, %v4429_v46  ;;  %v278_v23 = vpop.f32.mrb[11].mxu0  ;;  %v442_v8 = vpop.f32.mrb[10].mxu1 }
 0x17d   :  { %v485_v26 = vadd.f32 %v439_v54, %v253_v52  ;;  %v4439_v28 = vadd.f32 %v278_v23, %v164_v0  ;;  %v443_v29 = vpop.f32.mrb[11].mxu1  ;;  %v4451_v8 = vrot.slane %v4276_v9, %v4263_v6  ;;  %v1301_v9 = vpop.permute.xlu0 %1300 }
 0x17e   :  { %v492_v33 = vadd.f32 %v441_v19, %v255_v10  ;;  %3826 = vpush %v1301_v9 }
 0x17f   :  { %v3438_v34 = vmul.f32 -1.442695, %v485_v26 }
 0x180   :  { %v3439_v51 = vmul.f32 -1.442695, %v492_v33 }
 0x181   :  { %3949 = vpow2.f32 %v3438_v34  ;;  %v282_v60 = vpop.f32.mrb[12].mxu0 }
 0x182   :  { %v4441_v37 = vadd.f32 %v282_v60, %v160_v61  ;;  %v284_v38 = vpop.f32.mrb[13].mxu0  ;;  %v479_v41 = vpop.f32.mrb[12].mxu1  ;;  %3951 = vpow2.f32 %v3439_v51 }
 0x183   :  { %v4443_v47 = vadd.f32 %v284_v38, %v164_v0  ;;  %v286_v62 = vpop.f32.mrb[14].mxu0  ;;  %v3634_v50 = vpop.f32.mrb[13].mxu1  ;;  %v480_v34 = vadd.f32 %v479_v41, %v4451_v8 }
 0x184   :  { %v4445_v58 = vadd.f32 %v286_v62, %v160_v61  ;;  %v288_v63 = vpop.f32.mrb[15].mxu0  ;;  %v482_v52 = vpop.f32.mrb[14].mxu1  ;;  %v326_v61 = vadd.f32 %v4391_v13, %v4382_v59 }
 0x185   :  { %v4447_v54 = vadd.f32 %v288_v63, %v164_v0  ;;  %v3635_v23 = vpop.f32.mrb[15].mxu1 }
 0x18b   :  { %v3950_v10 = vpop.eup %3949 }
 0x18c   :  { %v489_v19 = vadd.f32 1.0, %v3950_v10  ;;  %v3952_v26 = vpop.eup %3951 }
 0x18d   :  { %v496_v29 = vadd.f32 1.0, %v3952_v26 }
 0x18e   :  { %3953 = vrcp.f32 %v489_v19 }
 0x18f   :  { %3955 = vrcp.f32 %v496_v29 }
 0x198   :  { %v3954_v33 = vpop.eup %3953 }
 0x199   :  { %v499_v0 = vmul.f32 %v3954_v33, %v480_v34  ;;  %v3956_v38 = vpop.eup %3955 }
 0x19a   :  { %v502_v62 = vsub.f32 1.0, %v3956_v38  ;;  %v504_v51 = vmul.f32 0.0, %v3956_v38 }
 0x19b   :  { %v500_v60 = vadd.f32 %v499_v0, %v326_v61 }
 0x19d   :  { %3957 = vtanh.f32 %v500_v60 }
 0x1a7   :  { %v3958_v50 = vpop.eup %3957 }
 0x1a8   :  { %v503_v63 = vmul.f32 %v3958_v50, %v502_v62 }
 0x1aa   :  { %v4456_v52 = vadd.f32 %v504_v51, %v503_v63 }
 0x1ac   :  { %5309 = vst [vmem:[#allocation8_spill] sm:$0xff] %v4456_v52  ;;  %v506_v6 = vpack.c.bf16 %v4456_v52, %v4456_v52 }
 0x1ae   :  { %3440 = vmatmul.mubr.msk.bf16.vlgmr.msra.gmra.mrb[16].mxu0 %vm400_vm10, %v506_v6  ;;  %3641 = vmatmul.mubr.msk.bf16.vlgmr.msra.gmra.mrb[16].mxu1 %vm400_vm10, %v506_v6 }
 0x1af   :  { %617 = vmatpush1.bf16.msra.mxu0 %v4320_v42  ;;  %3645 = vmatpush3.bf16.msra.mxu1 %v4351_v55  ;;  %s3827_s13 = spop %3826 }
 0x1b0   :  { %618 = vmatprep.subr.bf16.mxu0 %v4322_v45  ;;  %3646 = vmatprep.subr.bf16.mxu1 %v5305_v12 }
 0x1b1   :  { %648 = vmatprep.mubr.bf16.mxu0 %v5303_v4  ;;  %3648 = vmatprep.mubr.msk.bf16.mxu1 %vm4196_vm9, %v5305_v12 }
 0x1b3   :  { %619 = vmatpush1.bf16.msra.mxu0 %v4333_v49  ;;  %3647 = vmatpush3.bf16.msra.mxu1 %v4357_v56 }
 0x1b4   :  { %722 = vmatprep.subr.bf16.mxu0 %v4302_v24  ;;  %3652 = vmatprep.subr.bf16.mxu1 %v5305_v12 }
 0x281   :  { %v544_v59 = vpop.f32.mrb[16].mxu0  ;;  %v585_v13 = vpop.f32.mrb[16].mxu1 }
 0x282   :  { %v545_v41 = vadd.f32 %v544_v59, %v4425_v44  ;;  %v546_v23 = vpop.f32.mrb[17].mxu0  ;;  %v3642_v10 = vpop.f32.mrb[17].mxu1  ;;  %v586_v6 = vadd.f32 %v585_v13, %v4451_v8 }
 0x283   :  { %v547_v19 = vadd.f32 %v546_v23, %v4429_v46  ;;  %v548_v26 = vpop.f32.mrb[18].mxu0  ;;  %v588_v29 = vpop.f32.mrb[18].mxu1 }
 0x284   :  { %v591_v34 = vadd.f32 %v545_v41, %v4393_v16  ;;  %v549_v33 = vpop.f32.mrb[19].mxu0  ;;  %v3643_v61 = vpop.f32.mrb[19].mxu1  ;;  %1257 = vrot.lane.b32.xlu0 %v545_v41, %s4197_s6 }
 0x285   :  { %v598_v0 = vadd.f32 %v547_v19, %v4395_v21 }
 0x286   :  { %v3442_v60 = vmul.f32 -1.442695, %v591_v34 }
 0x287   :  { %v3443_v38 = vmul.f32 -1.442695, %v598_v0 }
 0x288   :  { %3959 = vpow2.f32 %v3442_v60 }
 0x289   :  { %3961 = vpow2.f32 %v3443_v38 }
 0x292   :  { %v3960_v62 = vpop.eup %3959 }
 0x293   :  { %v595_v50 = vadd.f32 1.0, %v3960_v62  ;;  %v3962_v51 = vpop.eup %3961 }
 0x294   :  { %v602_v63 = vadd.f32 1.0, %v3962_v51 }
 0x295   :  { %3963 = vrcp.f32 %v595_v50 }
 0x296   :  { %3965 = vrcp.f32 %v602_v63 }
 0x29f   :  { %v3964_v9 = vpop.eup %3963 }
 0x2a0   :  { %v605_v59 = vmul.f32 %v3964_v9, %v586_v6  ;;  %v3966_v41 = vpop.eup %3965 }
 0x2a1   :  { %v608_v23 = vsub.f32 1.0, %v3966_v41  ;;  %v610_v19 = vmul.f32 %v3966_v41, %v4456_v52 }
 0x2a2   :  { %v606_v16 = vadd.f32 %v605_v59, %v4401_v25 }
 0x2a4   :  { %3967 = vtanh.f32 %v606_v16 }
 0x2ae   :  { %v3968_v21 = vpop.eup %3967 }
 0x2af   :  { %v609_v10 = vmul.f32 %v3968_v21, %v608_v23 }
 0x2b1   :  { %v4481_v26 = vadd.f32 %v610_v19, %v609_v10 }
 0x2b3   :  { %v612_v29 = vpack.c.bf16 %v4481_v26, %v4481_v26 }
 0x2b5   :  { %3444 = vmatmul.mubr.msk.bf16.vlgmr.msra.gmra.mrb[20].mxu0 %vm400_vm10, %v612_v29  ;;  %3649 = vmatmul.mubr.msk.bf16.vlgmr.msra.gmra.mrb[20].mxu1 %vm400_vm10, %v612_v29 }
 0x2b6   :  { %723 = vmatpush1.bf16.msra.mxu0 %v4320_v42  ;;  %3653 = vmatpush3.bf16.msra.mxu1 %v4351_v55 }
 0x2b7   :  { %724 = vmatprep.subr.bf16.mxu0 %v4322_v45  ;;  %3654 = vmatprep.subr.bf16.mxu1 %v5305_v12 }
 0x2b8   :  { %754 = vmatprep.mubr.bf16.mxu0 %v5303_v4  ;;  %3656 = vmatprep.mubr.msk.bf16.mxu1 %vm4196_vm9, %v5305_v12 }
 0x2ba   :  { %725 = vmatpush1.bf16.msra.mxu0 %v4333_v49  ;;  %3655 = vmatpush3.bf16.msra.mxu1 %v4357_v56 }
 0x2bb   :  { %828 = vmatprep.subr.bf16.mxu0 %v4302_v24  ;;  %3660 = vmatprep.subr.bf16.mxu1 %v5305_v12 }
 0x388   :  { %v650_v25 = vpop.f32.mrb[20].mxu0  ;;  %v691_v13 = vpop.f32.mrb[20].mxu1 }
 0x389   :  { %v651_v34 = vadd.f32 %v650_v25, %v4425_v44  ;;  %v652_v33 = vpop.f32.mrb[21].mxu0  ;;  %v3650_v61 = vpop.f32.mrb[21].mxu1  ;;  %v692_v21 = vadd.f32 %v691_v13, %v4451_v8 }
 0x38a   :  { %v653_v0 = vadd.f32 %v652_v33, %v4429_v46  ;;  %v654_v60 = vpop.f32.mrb[22].mxu0  ;;  %v694_v38 = vpop.f32.mrb[22].mxu1 }
 0x38b   :  { %v697_v62 = vadd.f32 %v651_v34, %v4403_v27  ;;  %v655_v50 = vpop.f32.mrb[23].mxu0  ;;  %v3651_v51 = vpop.f32.mrb[23].mxu1  ;;  %1261 = vrot.lane.b32.xlu0 %v651_v34, %s4198_s7 }
 0x38c   :  { %v704_v63 = vadd.f32 %v653_v0, %v4405_v30 }
 0x38d   :  { %v3446_v6 = vmul.f32 -1.442695, %v697_v62 }
 0x38e   :  { %v3447_v9 = vmul.f32 -1.442695, %v704_v63 }
 0x38f   :  { %3969 = vpow2.f32 %v3446_v6 }
 0x390   :  { %3971 = vpow2.f32 %v3447_v9 }
 0x399   :  { %v3970_v59 = vpop.eup %3969 }
 0x39a   :  { %v701_v16 = vadd.f32 1.0, %v3970_v59  ;;  %v3972_v41 = vpop.eup %3971 }
 0x39b   :  { %v708_v23 = vadd.f32 1.0, %v3972_v41 }
 0x39c   :  { %3973 = vrcp.f32 %v701_v16 }
 0x39d   :  { %3975 = vrcp.f32 %v708_v23 }
 0x3a6   :  { %v3974_v10 = vpop.eup %3973 }
 0x3a7   :  { %v711_v19 = vmul.f32 %v3974_v10, %v692_v21  ;;  %v3976_v29 = vpop.eup %3975 }
 0x3a8   :  { %v714_v25 = vsub.f32 1.0, %v3976_v29  ;;  %v716_v33 = vmul.f32 %v3976_v29, %v4481_v26 }
 0x3a9   :  { %v712_v27 = vadd.f32 %v711_v19, %v4389_v7 }
 0x3ab   :  { %3977 = vtanh.f32 %v712_v27 }
 0x3b5   :  { %v3978_v30 = vpop.eup %3977 }
 0x3b6   :  { %v715_v34 = vmul.f32 %v3978_v30, %v714_v25 }
 0x3b8   :  { %v4505_v61 = vadd.f32 %v716_v33, %v715_v34 }
 0x3ba   :  { %5310 = vst [vmem:[#allocation9_spill] sm:$0xff] %v4505_v61  ;;  %v718_v0 = vpack.c.bf16 %v4505_v61, %v4505_v61 }
 0x3bc   :  { %3448 = vmatmul.mubr.msk.bf16.vlgmr.msra.gmra.mrb[24].mxu0 %vm400_vm10, %v718_v0  ;;  %3657 = vmatmul.mubr.msk.bf16.vlgmr.msra.gmra.mrb[24].mxu1 %vm400_vm10, %v718_v0 }
 0x3bd   :  { %829 = vmatpush1.bf16.msra.mxu0 %v4320_v42  ;;  %3661 = vmatpush3.bf16.msra.mxu1 %v4351_v55 }
 0x3be   :  { %830 = vmatprep.subr.bf16.mxu0 %v4322_v45  ;;  %3662 = vmatprep.subr.bf16.mxu1 %v5305_v12 }
 0x3bf   :  { %860 = vmatprep.mubr.bf16.mxu0 %v5303_v4  ;;  %3664 = vmatprep.mubr.msk.bf16.mxu1 %vm4196_vm9, %v5305_v12 }
 0x3c1   :  { %831 = vmatpush1.bf16.msra.mxu0 %v4333_v49  ;;  %3663 = vmatpush3.bf16.msra.mxu1 %v4357_v56 }
 0x3c2   :  { %934 = vmatprep.subr.bf16.mxu0 %v4302_v24  ;;  %3668 = vmatprep.subr.bf16.mxu1 %v5305_v12 }
 0x48f   :  { %v756_v7 = vpop.f32.mrb[24].mxu0  ;;  %v797_v13 = vpop.f32.mrb[24].mxu1 }
 0x490   :  { %v757_v60 = vadd.f32 %v756_v7, %v4425_v44  ;;  %v758_v38 = vpop.f32.mrb[25].mxu0  ;;  %v3658_v62 = vpop.f32.mrb[25].mxu1  ;;  %v798_v29 = vadd.f32 %v797_v13, %v4451_v8 }
 0x491   :  { %v759_v50 = vadd.f32 %v758_v38, %v4429_v46  ;;  %v760_v51 = vpop.f32.mrb[26].mxu0  ;;  %v800_v63 = vpop.f32.mrb[26].mxu1 }
 0x492   :  { %v803_v6 = vadd.f32 %v757_v60, %v4410_v35  ;;  %v761_v9 = vpop.f32.mrb[27].mxu0  ;;  %v3659_v59 = vpop.f32.mrb[27].mxu1  ;;  %1265 = vrot.lane.b32.xlu0 %v757_v60, %s4199_s8 }
 0x493   :  { %v810_v16 = vadd.f32 %v759_v50, %v4415_v39 }
 0x494   :  { %v3450_v41 = vmul.f32 -1.442695, %v803_v6 }
 0x495   :  { %v3451_v23 = vmul.f32 -1.442695, %v810_v16 }
 0x496   :  { %3979 = vpow2.f32 %v3450_v41 }
 0x497   :  { %3981 = vpow2.f32 %v3451_v23 }
 0x4a0   :  { %v3980_v21 = vpop.eup %3979 }
 0x4a1   :  { %v807_v10 = vadd.f32 1.0, %v3980_v21  ;;  %v3982_v19 = vpop.eup %3981 }
 0x4a2   :  { %v814_v27 = vadd.f32 1.0, %v3982_v19 }
 0x4a3   :  { %3983 = vrcp.f32 %v807_v10 }
 0x4a4   :  { %3985 = vrcp.f32 %v814_v27 }
 0x4ad   :  { %v3984_v25 = vpop.eup %3983 }
 0x4ae   :  { %v817_v30 = vmul.f32 %v3984_v25, %v798_v29  ;;  %v3986_v34 = vpop.eup %3985 }
 0x4af   :  { %v820_v33 = vsub.f32 1.0, %v3986_v34  ;;  %v822_v7 = vmul.f32 %v3986_v34, %v4505_v61 }
 0x4b0   :  { %v818_v35 = vadd.f32 %v817_v30, %v4398_v22 }
 0x4b2   :  { %3987 = vtanh.f32 %v818_v35 }
 0x4bc   :  { %v3988_v39 = vpop.eup %3987 }
 0x4bd   :  { %v821_v0 = vmul.f32 %v3988_v39, %v820_v33 }
 0x4bf   :  { %v4529_v60 = vadd.f32 %v822_v7, %v821_v0 }
 0x4c1   :  { %v824_v38 = vpack.c.bf16 %v4529_v60, %v4529_v60 }
 0x4c3   :  { %3452 = vmatmul.mubr.msk.bf16.vlgmr.msra.gmra.mrb[28].mxu0 %vm400_vm10, %v824_v38  ;;  %3665 = vmatmul.mubr.msk.bf16.vlgmr.msra.gmra.mrb[28].mxu1 %vm400_vm10, %v824_v38 }
 0x4c4   :  { %935 = vmatpush1.bf16.msra.mxu0 %v4320_v42  ;;  %3669 = vmatpush3.bf16.msra.mxu1 %v4351_v55 }
 0x4c5   :  { %936 = vmatprep.subr.bf16.mxu0 %v4322_v45  ;;  %3670 = vmatprep.subr.bf16.mxu1 %v5305_v12 }
 0x4c6   :  { %966 = vmatprep.mubr.bf16.mxu0 %v5303_v4  ;;  %3672 = vmatprep.mubr.msk.bf16.mxu1 %vm4196_vm9, %v5305_v12 }
 0x4c8   :  { %937 = vmatpush1.bf16.msra.mxu0 %v4333_v49  ;;  %3671 = vmatpush3.bf16.msra.mxu1 %v4357_v56 }
 0x4c9   :  { %1040 = vmatprep.subr.bf16.mxu0 %v4302_v24  ;;  %3676 = vmatprep.subr.bf16.mxu1 %v5305_v12 }
 0x596   :  { %v862_v22 = vpop.f32.mrb[28].mxu0  ;;  %v903_v13 = vpop.f32.mrb[28].mxu1 }
 0x597   :  { %v863_v62 = vadd.f32 %v862_v22, %v4425_v44  ;;  %v864_v50 = vpop.f32.mrb[29].mxu0  ;;  %v3666_v51 = vpop.f32.mrb[29].mxu1  ;;  %v904_v30 = vadd.f32 %v903_v13, %v4451_v8 }
 0x598   :  { %v865_v63 = vadd.f32 %v864_v50, %v4429_v46  ;;  %v866_v6 = vpop.f32.mrb[30].mxu0  ;;  %v906_v9 = vpop.f32.mrb[30].mxu1 }
 0x599   :  { %v909_v59 = vadd.f32 %v863_v62, %v4431_v48  ;;  %v867_v16 = vpop.f32.mrb[31].mxu0  ;;  %v3667_v41 = vpop.f32.mrb[31].mxu1  ;;  %1269 = vrot.lane.b32.xlu0 %v863_v62, %s4200_s9 }
 0x59a   :  { %v916_v23 = vadd.f32 %v865_v63, %v4433_v53 }
 0x59b   :  { %v3454_v21 = vmul.f32 -1.442695, %v909_v59 }
 0x59c   :  { %v3455_v10 = vmul.f32 -1.442695, %v916_v23 }
 0x59d   :  { %3989 = vpow2.f32 %v3454_v21 }
 0x59e   :  { %3991 = vpow2.f32 %v3455_v10 }
 0x5a7   :  { %v3990_v19 = vpop.eup %3989 }
 0x5a8   :  { %v913_v27 = vadd.f32 1.0, %v3990_v19  ;;  %v3992_v29 = vpop.eup %3991 }
 0x5a9   :  { %v920_v25 = vadd.f32 1.0, %v3992_v29 }
 0x5aa   :  { %3993 = vrcp.f32 %v913_v27 }
 0x5ab   :  { %3995 = vrcp.f32 %v920_v25 }
 0x5b4   :  { %v3994_v35 = vpop.eup %3993 }
 0x5b5   :  { %v923_v34 = vmul.f32 %v3994_v35, %v904_v30  ;;  %v3996_v33 = vpop.eup %3995 }
 0x5b6   :  { %v926_v39 = vsub.f32 1.0, %v3996_v33  ;;  %v928_v7 = vmul.f32 %v3996_v33, %v4529_v60 }
 0x5b7   :  { %v924_v48 = vadd.f32 %v923_v34, %v4413_v36 }
 0x5b9   :  { %3997 = vtanh.f32 %v924_v48 }
 0x5c3   :  { %v3998_v53 = vpop.eup %3997 }
 0x5c4   :  { %v927_v0 = vmul.f32 %v3998_v53, %v926_v39 }
 0x5c6   :  { %v4553_v38 = vadd.f32 %v928_v7, %v927_v0 }
 0x5c8   :  { %v930_v22 = vpack.c.bf16 %v4553_v38, %v4553_v38 }
 0x5ca   :  { %3456 = vmatmul.mubr.msk.bf16.vlgmr.msra.gmra.mrb[32].mxu0 %vm400_vm10, %v930_v22  ;;  %3673 = vmatmul.mubr.msk.bf16.vlgmr.msra.gmra.mrb[32].mxu1 %vm400_vm10, %v930_v22 }
 0x5cb   :  { %1041 = vmatpush1.bf16.msra.mxu0 %v4320_v42  ;;  %3677 = vmatpush3.bf16.msra.mxu1 %v4351_v55 }
 0x5cc   :  { %1042 = vmatprep.subr.bf16.mxu0 %v4322_v45  ;;  %3678 = vmatprep.subr.bf16.mxu1 %v5305_v12 }
 0x5cd   :  { %1072 = vmatprep.mubr.bf16.mxu0 %v5303_v4  ;;  %3680 = vmatprep.mubr.msk.bf16.mxu1 %vm4196_vm9, %v5305_v12 }
 0x5cf   :  { %1043 = vmatpush1.bf16.msra.mxu0 %v4333_v49  ;;  %3679 = vmatpush3.bf16.msra.mxu1 %v4357_v56 }
 0x5d0   :  { %1146 = vmatprep.subr.bf16.mxu0 %v4302_v24  ;;  %3684 = vmatprep.subr.bf16.mxu1 %v5305_v12 }
 0x69d   :  { %v968_v36 = vpop.f32.mrb[32].mxu0  ;;  %v1009_v13 = vpop.f32.mrb[32].mxu1 }
 0x69e   :  { %v969_v62 = vadd.f32 %v968_v36, %v4425_v44  ;;  %v970_v50 = vpop.f32.mrb[33].mxu0  ;;  %v3674_v51 = vpop.f32.mrb[33].mxu1  ;;  %v1010_v25 = vadd.f32 %v1009_v13, %v4451_v8 }
 0x69f   :  { %v971_v63 = vadd.f32 %v970_v50, %v4429_v46  ;;  %v972_v6 = vpop.f32.mrb[34].mxu0  ;;  %v1012_v9 = vpop.f32.mrb[34].mxu1 }
 0x6a0   :  { %v1015_v59 = vadd.f32 %v969_v62, %v4436_v18  ;;  %v973_v16 = vpop.f32.mrb[35].mxu0  ;;  %v3675_v41 = vpop.f32.mrb[35].mxu1  ;;  %1273 = vrot.lane.b32.xlu0 %v969_v62, %s4201_s10 }
 0x6a1   :  { %v1022_v24 = vadd.f32 %v971_v63, %v4439_v28 }
 0x6a2   :  { %v3458_v23 = vmul.f32 -1.442695, %v1015_v59 }
 0x6a3   :  { %v3459_v21 = vmul.f32 -1.442695, %v1022_v24 }
 0x6a4   :  { %3999 = vpow2.f32 %v3458_v23 }
 0x6a5   :  { %4001 = vpow2.f32 %v3459_v21 }
 0x6ae   :  { %v4000_v10 = vpop.eup %3999 }
 0x6af   :  { %v1019_v19 = vadd.f32 1.0, %v4000_v10  ;;  %v4002_v27 = vpop.eup %4001 }
 0x6b0   :  { %v1026_v29 = vadd.f32 1.0, %v4002_v27 }
 0x6b1   :  { %4003 = vrcp.f32 %v1019_v19 }
 0x6b2   :  { %4005 = vrcp.f32 %v1026_v29 }
 0x6bb   :  { %v4004_v30 = vpop.eup %4003 }
 0x6bc   :  { %v1029_v35 = vmul.f32 %v4004_v30, %v1010_v25  ;;  %v4006_v34 = vpop.eup %4005  ;;  %v4611_v30 = vld [vmem:[#allocation2 + $0x90] ss:$12 sps:$4 sm:$0xff]  }
 0x6bd   :  { %v1032_v48 = vsub.f32 1.0, %v4006_v34  ;;  %v1034_v39 = vmul.f32 %v4006_v34, %v4553_v38  ;;  %v4621_v34 = vld [vmem:[#allocation2 + $0xa8] ss:$12 sps:$4 sm:$0xff]  }
 0x6be   :  { %v1030_v18 = vadd.f32 %v1029_v35, %v4421_v43  ;;  %v4613_v35 = vld [vmem:[#allocation2 + $0x98] ss:$12 sps:$4 sm:$0xff]  }
 0x6c0   :  { %4007 = vtanh.f32 %v1030_v18  ;;  %v4618_v18 = vld [vmem:[#allocation2 + $0xac] ss:$12 sps:$4 sm:$0xff]  }
 0x6ca   :  { %v4008_v28 = vpop.eup %4007 }
 0x6cb   :  { %v1033_v33 = vmul.f32 %v4008_v28, %v1032_v48  ;;  %v4623_v48 = vld [vmem:[#allocation2 + $0xb0] ss:$12 sps:$4 sm:$0xff]  }
 0x6cd   :  { %v4577_v53 = vadd.f32 %v1034_v39, %v1033_v33 }
 0x6cf   :  { %v1036_v0 = vpack.c.bf16 %v4577_v53, %v4577_v53 }
 0x6d1   :  { %3460 = vmatmul.mubr.msk.bf16.vlgmr.msra.gmra.mrb[36].mxu0 %vm400_vm10, %v1036_v0  ;;  %3681 = vmatmul.mubr.msk.bf16.vlgmr.msra.gmra.mrb[36].mxu1 %vm400_vm10, %v1036_v0 }
 0x6d2   :  { %1147 = vmatpush1.bf16.msra.mxu0 %v4320_v42  ;;  %3685 = vmatpush3.bf16.msra.mxu1 %v4351_v55 }
 0x6d3   :  { %1148 = vmatprep.subr.bf16.mxu0 %v4322_v45  ;;  %3686 = vmatprep.subr.bf16.mxu1 %v5305_v12 }
 0x6d4   :  { %1178 = vmatprep.mubr.bf16.mxu0 %v5303_v4  ;;  %3688 = vmatprep.mubr.msk.bf16.mxu1 %vm4196_vm9, %v5305_v12 }
 0x6d6   :  { %1149 = vmatpush1.bf16.msra.mxu0 %v4333_v49  ;;  %3687 = vmatpush3.bf16.msra.mxu1 %v4357_v56 }
 0x6d7   :  { %3692 = vmatprep.subr.bf16.mxu1 %v5305_v12 }
 0x7a4   :  { %v1074_v43 = vpop.f32.mrb[36].mxu0  ;;  %v1115_v7 = vpop.f32.mrb[36].mxu1 }
 0x7a5   :  { %v1075_v42 = vadd.f32 %v1074_v43, %v4425_v44  ;;  %v1076_v55 = vpop.f32.mrb[37].mxu0  ;;  %v3682_v22 = vpop.f32.mrb[37].mxu1  ;;  %v1116_v41 = vadd.f32 %v1115_v7, %v4451_v8 }
 0x7a6   :  { %v1077_v45 = vadd.f32 %v1076_v55, %v4429_v46  ;;  %v1078_v36 = vpop.f32.mrb[38].mxu0  ;;  %v1118_v13 = vpop.f32.mrb[38].mxu1 }
 0x7a7   :  { %v1121_v62 = vadd.f32 %v1075_v42, %v4441_v37  ;;  %v1079_v50 = vpop.f32.mrb[39].mxu0  ;;  %v3683_v51 = vpop.f32.mrb[39].mxu1  ;;  %1277 = vrot.lane.b32.xlu0 %v1075_v42, %s4202_s11 }
 0x7a8   :  { %v1128_v49 = vadd.f32 %v1077_v45, %v4443_v47 }
 0x7a9   :  { %v3462_v56 = vmul.f32 -1.442695, %v1121_v62 }
 0x7aa   :  { %v3463_v63 = vmul.f32 -1.442695, %v1128_v49 }
 0x7ab   :  { %4009 = vpow2.f32 %v3462_v56 }
 0x7ac   :  { %4011 = vpow2.f32 %v3463_v63 }
 0x7b5   :  { %v4010_v6 = vpop.eup %4009 }
 0x7b6   :  { %v1125_v9 = vadd.f32 1.0, %v4010_v6  ;;  %v4012_v59 = vpop.eup %4011 }
 0x7b7   :  { %v1132_v16 = vadd.f32 1.0, %v4012_v59 }
 0x7b8   :  { %4013 = vrcp.f32 %v1125_v9 }
 0x7b9   :  { %4015 = vrcp.f32 %v1132_v16  ;;  %v4638_v16 = vrot.slane %v4376_v57, %v99_v11  ;;  %v5295_v11 = vmov 32  }
 0x7ba   :  { %3854 = vset.pattern.permute.xlu0 %v5295_v11 }
 0x7c2   :  { %v4014_v24 = vpop.eup %4013 }
 0x7c3   :  { %v1135_v23 = vmul.f32 %v4014_v24, %v1116_v41  ;;  %v4016_v21 = vpop.eup %4015 }
 0x7c4   :  { %v1138_v10 = vsub.f32 1.0, %v4016_v21  ;;  %v1140_v27 = vmul.f32 %v4016_v21, %v4577_v53 }
 0x7c5   :  { %v1136_v37 = vadd.f32 %v1135_v23, %v4408_v32  ;;  %v4609_v32 = vld [vmem:[#allocation2 + $0x94] ss:$12 sps:$4 sm:$0xff]  }
 0x7c6   :  { %1365 = vmatprep.subr.bf16.mxu0 %v4609_v32 }
 0x7c7   :  { %4017 = vtanh.f32 %v1136_v37  ;;  %v4656_v37 = vrot.slane %v4376_v57, %v4260_v5 }
 0x7d1   :  { %v4018_v47 = vpop.eup %4017 }
 0x7d2   :  { %v1139_v19 = vmul.f32 %v4018_v47, %v1138_v10 }
 0x7d4   :  { %v4600_v29 = vadd.f32 %v1140_v27, %v1139_v19 }
 0x7d6   :  { %v1142_v25 = vpack.c.bf16 %v4600_v29, %v4600_v29 }
 0x7d8   :  { %3464 = vmatmul.mubr.msk.bf16.vlgmr.msra.gmra.mrb[40].mxu0 %vm400_vm10, %v1142_v25  ;;  %3689 = vmatmul.mubr.msk.bf16.vlgmr.msra.gmra.mrb[40].mxu1 %vm400_vm10, %v1142_v25 }
 0x7d9   :  { %1397 = vmatprep.mubr.bf16.mxu0 %v5303_v4  ;;  %3696 = vmatprep.mubr.msk.bf16.mxu1 %vm4196_vm9, %v5305_v12 }
 0x7da   :  { %1366 = vmatpush1.bf16.msra.mxu0 %v4611_v30  ;;  %3693 = vmatpush3.bf16.msra.mxu1 %v4613_v35 }
 0x7db   :  { %3694 = vmatprep.subr.bf16.mxu1 %v5305_v12  ;;  %1367 = vmatprep.subr.bf16.mxu0 %v4618_v18 }
 0x7de   :  { %1368 = vmatpush1.bf16.msra.mxu0 %v4621_v34  ;;  %3695 = vmatpush3.bf16.msra.mxu1 %v4623_v48 }
 0x7df   :  { %3700 = vmatprep.subr.bf16.mxu1 %v5305_v12 }
 0x8ab   :  { %v1180_v28 = vpop.f32.mrb[40].mxu0  ;;  %v1221_v33 = vpop.f32.mrb[40].mxu1 }
 0x8ac   :  { %v1181_v39 = vadd.f32 %v1180_v28, %v4425_v44  ;;  %v1182_v0 = vpop.f32.mrb[41].mxu0  ;;  %v3690_v43 = vpop.f32.mrb[41].mxu1  ;;  %v1222_v63 = vadd.f32 %v1221_v33, %v4451_v8 }
 0x8ad   :  { %v1183_v7 = vadd.f32 %v1182_v0, %v4429_v46  ;;  %v1184_v42 = vpop.f32.mrb[42].mxu0  ;;  %v1224_v55 = vpop.f32.mrb[42].mxu1 }
 0x8ae   :  { %v1227_v22 = vadd.f32 %v1181_v39, %v4445_v58  ;;  %v1185_v45 = vpop.f32.mrb[43].mxu0  ;;  %v3691_v36 = vpop.f32.mrb[43].mxu1 }
 0x8af   :  { %v1234_v13 = vadd.f32 %v1183_v7, %v4447_v54  ;;  %v1258_v43 = vpop.permute.xlu0 %1257 }
 0x8b0   :  { %v3466_v62 = vmul.f32 -1.442695, %v1227_v22 }
 0x8b1   :  { %v3467_v50 = vmul.f32 -1.442695, %v1234_v13 }
 0x8b2   :  { %4019 = vpow2.f32 %v3466_v62 }
 0x8b3   :  { %4021 = vpow2.f32 %v3467_v50  ;;  %v1262_v5 = vpop.permute.xlu0 %1261 }
 0x8b4   :  { %v1285_v22 = vsel %vm1284_vm11, %v1258_v43, %v1262_v5  ;;  %v4681_v5 = vld [vmem:[#allocation2 + $0x4c] ss:$12 sps:$4 sm:$0xff]  }
 0x8b5   :  { %1583 = vmatprep.subr.bf16.mxu0 %v4681_v5 }
 0x8b7   :  { %v1266_v57 = vpop.permute.xlu0 %1265 }
 0x8b8   :  { %v1287_v36 = vsel %vm1286_vm12, %v1285_v22, %v1266_v57  ;;  %v5289_v57 = vmov 6   ;;  %v4693_v22 = vld [vmem:[#allocation2 + $0x64] ss:$12 sps:$4 sm:$0xff]  }
 0x8bb   :  { %v1270_v7 = vpop.permute.xlu0 %1269 }
 0x8bc   :  { %v4020_v51 = vpop.eup %4019  ;;  %v1289_v13 = vsel %vm1288_vm13, %v1287_v36, %v1270_v7  ;;  %v4685_v7 = vld [vmem:[#allocation2 + $0x48] ss:$12 sps:$4 sm:$0xff]   ;;  %v5287_v36 = vmov 7  }
 0x8bd   :  { %v1231_v49 = vadd.f32 1.0, %v4020_v51  ;;  %v4022_v44 = vpop.eup %4021  ;;  %v1303_v51 = vstv %s3827_s13 }
 0x8be   :  { %v1238_v56 = vadd.f32 1.0, %v4022_v44 }
 0x8bf   :  { %4023 = vrcp.f32 %v1231_v49  ;;  %v1274_v42 = vpop.permute.xlu0 %1273 }
 0x8c0   :  { %4025 = vrcp.f32 %v1238_v56  ;;  %v1291_v62 = vsel %vm1290_vm14, %v1289_v13, %v1274_v42  ;;  %v4687_v42 = vld [vmem:[#allocation2 + $0x50] ss:$12 sps:$4 sm:$0xff]  }
 0x8c3   :  { %v1278_v55 = vpop.permute.xlu0 %1277 }
 0x8c9   :  { %v4024_v46 = vpop.eup %4023 }
 0x8ca   :  { %v1241_v6 = vmul.f32 %v4024_v46, %v1222_v63  ;;  %v4026_v9 = vpop.eup %4025 }
 0x8cb   :  { %v1244_v59 = vsub.f32 1.0, %v4026_v9  ;;  %v1246_v24 = vmul.f32 %v4026_v9, %v4600_v29  ;;  %v66_v9 = vld [vmem:[%s5283_s0 + $0x8] sm:$0xff]  ;;  %s4212_s0 = smov 32  }
 0x8cc   :  { %v1242_v58 = vadd.f32 %v1241_v6, %v4418_v40 }
 0x8ce   :  { %4027 = vtanh.f32 %v1242_v58 }
 0x8d8   :  { %v4028_v54 = vpop.eup %4027 }
 0x8d9   :  { %v1245_v41 = vmul.f32 %v4028_v54, %v1244_v59  ;;  %v1309_v59 = vrot.slane %v66_v9, %v4255_v3  ;;  %v5301_v3 = vmov 2  }
 0x8db   :  { %v4641_v23 = vadd.f32 %v1246_v24, %v1245_v41 }
 0x8dd   :  { %v1317_v8 = vpack.c.bf16 %v4641_v23, %v4641_v23  ;;  %v1252_v40 = vmul.f32 %v4638_v16, %v4641_v23 }
 0x8df   :  { %3475 = vmatmul.mubr.msk.bf16.vlgmr.msra.gmra.mrb[44].mxu0 %vm400_vm10, %v1317_v8  ;;  %3697 = vmatmul.mubr.msk.bf16.vlgmr.msra.gmra.mrb[44].mxu1 %vm400_vm10, %v1317_v8  ;;  %v1253_v1 = vsel %vm400_vm10, %v1252_v40, 0.0 }
 0x8e0   :  { %1254 = vadd.xlane.f32.xlu1 %v1253_v1  ;;  %1615 = vmatprep.mubr.bf16.mxu0 %v5303_v4  ;;  %v5297_v1 = vmov 4  }
 0x8e1   :  { %3706 = vmatprep.mubr.msk.bf16.mxu1 %vm4196_vm9, %v5305_v12  ;;  %1584 = vmatpush1.bf16.msra.mxu0 %v4685_v7 }
 0x8e2   :  { %3701 = vmatpush3.bf16.msra.mxu1 %v4687_v42  ;;  %1585 = vmatprep.subr.bf16.mxu0 %v4693_v22 }
 0x8e3   :  { %3702 = vmatprep.subr.bf16.mxu1 %v5305_v12 }
 0x96d   :  { %v1255_v49 = vpop.xlane.xlu1 %1254 }
 0x9b2   :  { %v1399_v21 = vpop.f32.mrb[44].mxu0  ;;  %v4658_v10 = vpop.f32.mrb[44].mxu1 }
 0x9b3   :  { %v4661_v47 = vadd.f32 %v1399_v21, %v4656_v37  ;;  %v4663_v19 = vpop.f32.mrb[45].mxu0  ;;  %v3698_v27 = vpop.f32.mrb[45].mxu1 }
 0x9b4   :  { %v1403_v25 = vpop.f32.mrb[46].mxu0  ;;  %v1443_v28 = vpop.f32.mrb[46].mxu1 }
 0x9b5   :  { %v1404_v33 = vpop.f32.mrb[47].mxu0  ;;  %v3699_v0 = vpop.f32.mrb[47].mxu1  ;;  %1448 = vperm.xlu0 %3854, %v4661_v47   ;;  %v5293_v28 = vmov 1  }
 0x9b6   :  { %v5299_v33 = vmov 3   ;;  %v5291_v0 = vmov 5  }
 0x9b9   :  { %1281 = vrot.lane.b32.xlu0 %v1181_v39, %s4204_s12  ;;  %v1293_v39 = vsel %vm1292_vm15, %v1291_v62, %v1278_v55  ;;  %v4704_v62 = vld [vmem:[#allocation2 + $0x7c] ss:$12 sps:$4 sm:$0xff]  }
 0x9ba   :  { %3859 = vset.pattern.permute.xlu0 %v5297_v1 }
 0xa34   :  { %v1449_v45 = vpop.permute.xlu0 %1448 }
 0xa38   :  { %v1282_v50 = vpop.permute.xlu0 %1281 }
 0xa39   :  { %v1295_v44 = vsel %vm1294_vm1, %v1293_v39, %v1282_v50  ;;  %v4707_v39 = vld [vmem:[#allocation2 + $0x78] ss:$12 sps:$4 sm:$0xff]   ;;  %v4709_v50 = vld [vmem:[#allocation2 + $0x80] ss:$12 sps:$4 sm:$0xff]  }
 0xa3a   :  { %v1297_v56 = vsel %vm1296_vm2, %v1295_v44, %v1255_v49 }
 0xa3b   :  { %v4666_v63 = vadd.f32 %v1303_v51, %v1297_v56 }
 0xa3d   :  { %v1451_v46 = vadd.f32 %v1449_v45, %v4666_v63  ;;  %v4696_v45 = vld [vmem:[#allocation2 + $0x60] ss:$12 sps:$4 sm:$0xff]  }
 0xa3e   :  { %1586 = vmatpush1.bf16.msra.mxu0 %v4696_v45 }
 0xa3f   :  { %v1452_v6 = vmax.f32 %v1451_v46, 0.0  ;;  %1587 = vmatprep.subr.bf16.mxu0 %v4704_v62 }
 0xa41   :  { %v1454_v58 = vsel %vm1453_vm3, %v1452_v6, -inf }
 0xa42   :  { %1455 = vmax.xlane.f32.xlu1 %v1454_v58  ;;  %1588 = vmatpush1.bf16.msra.mxu0 %v4707_v39 }
 0xa43   :  { %1689 = vmatprep.subr.bf16.mxu0 %v4609_v32 }
 0xa53   :  { %1311 = vbcast.lane.b32.xlu1 %v1309_v59, 256 }
 0xacf   :  { %v1456_v54 = vpop.xlane.xlu1 %1455 }
 0xad0   :  { %v1457_v41 = vsub.f32 %v1452_v6, %v1456_v54 }
 0xad2   :  { %v1458_v24 = vmul.f32 1.442695, %v1457_v41 }
 0xad3   :  { %v1312_v43 = vpop.permute.xlu1 %1311 }
 0xad4   :  { %4029 = vpow2.f32 %v1458_v24  ;;  %vm1313_vm4 = vcmp.eq.s32.totalorder %v1312_v43, %v4310_v31  ;;  %v4698_v31 = vld [vmem:[#allocation2 + $0x68] ss:$12 sps:$4 sm:$0xff]  }
 0xad5   :  { %v3468_v55 = vsel %vm1313_vm4, 1.0, %v5305_v12  ;;  %3703 = vmatpush3.bf16.msra.mxu1 %v4698_v31 }
 0xad6   :  { %v1316_v13 = vpack.c.bf16 %v3468_v55, %v3468_v55  ;;  %3704 = vmatprep.subr.bf16.mxu1 %v5305_v12 }
 0xad9   :  { %3705 = vmatpush3.bf16.msra.mxu1 %v4709_v50 }
 0xada   :  { %3710 = vmatprep.subr.bf16.mxu1 %v5305_v12 }
 0xade   :  { %v4030_v8 = vpop.eup %4029 }
 0xadf   :  { %v1460_v40 = vsel %vm1453_vm3, %v4030_v8, 0.0 }
 0xae0   :  { %1461 = vadd.xlane.f32.xlu0 %v1460_v40 }
 0xb6d   :  { %v1462_v21 = vpop.xlane.xlu0 %1461 }
 0xb6e   :  { %4031 = vrcp.f32 %v1462_v21 }
 0xb78   :  { %v4032_v27 = vpop.eup %4031 }
 0xb79   :  { %v1464_v25 = vmul.f32 %v4032_v27, %v4030_v8 }
 0xb7b   :  { %1490 = vperm.xlu0 %3859, %v1464_v25   ;;  %1467 = vperm.xlu1 %3855, %v1464_v25  }
 0xb7f   :  { %3856 = vset.pattern.permute.xlu1 %v5293_v28  ;;  %3865 = vset.pattern.permute.xlu0 %v5293_v28 }
 0xb80   :  { %1472 = vperm.xlu1 %3856, %v1464_v25  }
 0xb84   :  { %3857 = vset.pattern.permute.xlu1 %v5301_v3 }
 0xb85   :  { %1478 = vperm.xlu1 %3857, %v1464_v25  }
 0xb89   :  { %3858 = vset.pattern.permute.xlu1 %v5299_v33 }
 0xb8a   :  { %1484 = vperm.xlu1 %3858, %v1464_v25  }
 0xb8e   :  { %3860 = vset.pattern.permute.xlu1 %v5291_v0 }
 0xb8f   :  { %1496 = vperm.xlu1 %3860, %v1464_v25  }
 0xb93   :  { %3861 = vset.pattern.permute.xlu1 %v5289_v57 }
 0xb94   :  { %1502 = vperm.xlu1 %3861, %v1464_v25  }
 0xb98   :  { %3862 = vset.pattern.permute.xlu1 %v5287_v36 }
 0xb99   :  { %1508 = vperm.xlu1 %3862, %v1464_v25  }
 0xb9d   :  { %1515 = vrot.lane.b32.xlu1 %v1316_v13, %s4212_s0 }
 0xb9e   :  { %3863 = vset.pattern.permute.xlu1 %v5295_v11 }
 0xbfa   :  { %v1468_v51 = vpop.permute.xlu1 %1467  ;;  %v1491_v41 = vpop.permute.xlu0 %1490 }
 0xbfb   :  { %v1470_v46 = vmul.f32 %v1468_v51, %v4456_v52  ;;  %v1493_v40 = vmul.f32 %v1491_v41, %v4553_v38 }
 0xbff   :  { %v1473_v49 = vpop.permute.xlu1 %1472 }
 0xc00   :  { %v1475_v56 = vmul.f32 %v1473_v49, %v4481_v26 }
 0xc02   :  { %v1476_v9 = vadd.f32 %v1475_v56, %v1470_v46 }
 0xc04   :  { %v1479_v44 = vpop.permute.xlu1 %1478 }
 0xc05   :  { %v1481_v6 = vmul.f32 %v1479_v44, %v4505_v61 }
 0xc07   :  { %v1482_v54 = vadd.f32 %v1481_v6, %v1476_v9 }
 0xc09   :  { %v1485_v58 = vpop.permute.xlu1 %1484 }
 0xc0a   :  { %v1487_v59 = vmul.f32 %v1485_v58, %v4529_v60  ;;  %v4127_v58 = vld [vmem:[%s5285_s2] sm:$0xff]  ;;  %s4213_s2 = smov 64  }
 0xc0b   :  { %v4743_v9 = vrot.slane %v4127_v58, %v4252_v2 }
 0xc0c   :  { %v1488_v8 = vadd.f32 %v1487_v59, %v1482_v54 }
 0xc0e   :  { %v1497_v24 = vpop.permute.xlu1 %1496  ;;  %v1494_v21 = vadd.f32 %v1493_v40, %v1488_v8  ;;  %v1402_v40 = vadd.f32 %v4663_v19, %v4294_v17  ;;  %v1441_v19 = vadd.f32 %v4658_v10, %v4299_v20 }
 0xc0f   :  { %v1499_v27 = vmul.f32 %v1497_v24, %v4577_v53 }
 0xc11   :  { %v1500_v55 = vadd.f32 %v1499_v27, %v1494_v21 }
 0xc13   :  { %v1503_v25 = vpop.permute.xlu1 %1502 }
 0xc14   :  { %v1505_v43 = vmul.f32 %v1503_v25, %v4600_v29 }
 0xc16   :  { %v1506_v51 = vadd.f32 %v1505_v43, %v1500_v55 }
 0xc18   :  { %v1509_v13 = vpop.permute.xlu1 %1508 }
 0xc19   :  { %v1511_v49 = vmul.f32 %v1509_v13, %v4641_v23 }
 0xc1b   :  { %v1512_v44 = vadd.f32 %v1511_v49, %v1506_v51 }
 0xc1c   :  { %v1516_v56 = vpop.permute.xlu1 %1515 }
 0xc1d   :  { %v1513_v46 = vpack.c.bf16 %v1512_v44, %v1512_v44 }
 0xc1f   :  { %v1519_v6 = vsel %vm400_vm10, %v1513_v46, %v1516_v56 }
 0xc20   :  { %3486 = vmatmul.mubr.msk.bf16.vlgmr.msra.gmra.mrb[48].mxu0 %vm1580_vm5, %v1519_v6  ;;  %3707 = vmatmul.mubr.msk.bf16.vlgmr.msra.gmra.mrb[48].mxu1 %vm1580_vm5, %v1519_v6 }
 0xc21   :  { %1690 = vmatpush1.bf16.msra.mxu0 %v4611_v30  ;;  %3711 = vmatpush3.bf16.msra.mxu1 %v4613_v35 }
 0xc22   :  { %1691 = vmatprep.subr.bf16.mxu0 %v4618_v18  ;;  %3712 = vmatprep.subr.bf16.mxu1 %v5305_v12 }
 0xc23   :  { %1721 = vmatprep.mubr.bf16.mxu0 %v5303_v4  ;;  %3714 = vmatprep.mubr.msk.bf16.mxu1 %vm4196_vm9, %v5305_v12 }
 0xc25   :  { %1692 = vmatpush1.bf16.msra.mxu0 %v4621_v34  ;;  %3713 = vmatpush3.bf16.msra.mxu1 %v4623_v48 }
 0xc26   :  { %1854 = vmatprep.subr.bf16.mxu0 %v4681_v5  ;;  %3718 = vmatprep.subr.bf16.mxu1 %v5305_v12 }
 0xcf3   :  { %v1617_v59 = vpop.f32.mrb[48].mxu0  ;;  %v1658_v54 = vpop.f32.mrb[48].mxu1 }
 0xcf4   :  { %v1618_v41 = vadd.f32 %v1617_v59, %v4743_v9  ;;  %v1619_v24 = vpop.f32.mrb[49].mxu0  ;;  %v3708_v8 = vpop.f32.mrb[49].mxu1  ;;  %v1659_v59 = vadd.f32 %v1658_v54, %v4289_v15 }
 0xcf5   :  { %v1620_v21 = vadd.f32 %v1619_v24, %v4285_v14  ;;  %v1621_v27 = vpop.f32.mrb[50].mxu0  ;;  %v1661_v25 = vpop.f32.mrb[50].mxu1 }
 0xcf6   :  { %v1664_v43 = vadd.f32 %v1618_v41, %v4661_v47  ;;  %v1622_v55 = vpop.f32.mrb[51].mxu0  ;;  %v3709_v13 = vpop.f32.mrb[51].mxu1 }
 0xcf7   :  { %v1671_v51 = vadd.f32 %v1620_v21, %v1402_v40 }
 0xcf8   :  { %v3488_v2 = vmul.f32 -1.442695, %v1664_v43 }
 0xcf9   :  { %v3489_v49 = vmul.f32 -1.442695, %v1671_v51 }
 0xcfa   :  { %4033 = vpow2.f32 %v3488_v2 }
 0xcfb   :  { %4035 = vpow2.f32 %v3489_v49 }
 0xd04   :  { %v4034_v44 = vpop.eup %4033 }
 0xd05   :  { %v1668_v56 = vadd.f32 1.0, %v4034_v44  ;;  %v4036_v46 = vpop.eup %4035 }
 0xd06   :  { %v1675_v6 = vadd.f32 1.0, %v4036_v46 }
 0xd07   :  { %4037 = vrcp.f32 %v1668_v56 }
 0xd08   :  { %4039 = vrcp.f32 %v1675_v6 }
 0xd11   :  { %v4038_v58 = vpop.eup %4037 }
 0xd12   :  { %v1678_v24 = vmul.f32 %v4038_v58, %v1441_v19  ;;  %v4040_v41 = vpop.eup %4039 }
 0xd13   :  { %v1681_v8 = vsub.f32 1.0, %v4040_v41  ;;  %v1683_v27 = vmul.f32 %v4040_v41, %v4641_v23 }
 0xd14   :  { %v1679_v47 = vadd.f32 %v1678_v24, %v1659_v59 }
 0xd16   :  { %4041 = vtanh.f32 %v1679_v47 }
 0xd20   :  { %v4042_v40 = vpop.eup %4041 }
 0xd21   :  { %v1682_v21 = vmul.f32 %v4042_v40, %v1681_v8 }
 0xd23   :  { %v4754_v25 = vadd.f32 %v1683_v27, %v1682_v21 }
 0xd25   :  { %v1685_v43 = vpack.c.bf16 %v4754_v25, %v4754_v25 }
 0xd27   :  { %3490 = vmatmul.mubr.msk.bf16.vlgmr.msra.gmra.mrb[52].mxu0 %vm400_vm10, %v1685_v43  ;;  %3715 = vmatmul.mubr.msk.bf16.vlgmr.msra.gmra.mrb[52].mxu1 %vm400_vm10, %v1685_v43 }
 0xd28   :  { %1855 = vmatpush1.bf16.msra.mxu0 %v4685_v7  ;;  %3719 = vmatpush3.bf16.msra.mxu1 %v4687_v42 }
 0xd29   :  { %1856 = vmatprep.subr.bf16.mxu0 %v4693_v22  ;;  %3720 = vmatprep.subr.bf16.mxu1 %v5305_v12 }
 0xd2a   :  { %1886 = vmatprep.mubr.bf16.mxu0 %v5303_v4  ;;  %3724 = vmatprep.mubr.msk.bf16.mxu1 %vm4196_vm9, %v5305_v12 }
 0xd2c   :  { %1857 = vmatpush1.bf16.msra.mxu0 %v4696_v45  ;;  %3721 = vmatpush3.bf16.msra.mxu1 %v4698_v31 }
 0xd2d   :  { %1858 = vmatprep.subr.bf16.mxu0 %v4704_v62  ;;  %3722 = vmatprep.subr.bf16.mxu1 %v5305_v12 }
 0xd30   :  { %1859 = vmatpush1.bf16.msra.mxu0 %v4707_v39  ;;  %3723 = vmatpush3.bf16.msra.mxu1 %v4709_v50 }
 0xd31   :  { %1960 = vmatprep.subr.bf16.mxu0 %v4609_v32  ;;  %3728 = vmatprep.subr.bf16.mxu1 %v5305_v12 }
 0xdfa   :  { %v1723_v10 = vpop.f32.mrb[52].mxu0  ;;  %v4775_v54 = vpop.f32.mrb[52].mxu1 }
 0xdfb   :  { %v4778_v55 = vadd.f32 %v1723_v10, %v4656_v37  ;;  %v4780_v13 = vpop.f32.mrb[53].mxu0  ;;  %v3716_v51 = vpop.f32.mrb[53].mxu1 }
 0xdfc   :  { %v1727_v2 = vpop.f32.mrb[54].mxu0  ;;  %v1767_v49 = vpop.f32.mrb[54].mxu1 }
 0xdfd   :  { %v1728_v44 = vpop.f32.mrb[55].mxu0  ;;  %v3717_v56 = vpop.f32.mrb[55].mxu1  ;;  %1781 = vperm.xlu1 %3863, %v4778_v55   ;;  %v4788_v59 = vadd.f32 %v4778_v55, %v4638_v16 }
 0xdff   :  { %v1772_v24 = vsel %vm1771_vm6, %v4788_v59, -inf }
 0xe01   :  { %3864 = vset.pattern.permute.xlu1 %v5303_v4 }
 0xe7c   :  { %v1782_v46 = vpop.permute.xlu1 %1781 }
 0xe7d   :  { %v1784_v6 = vadd.f32 %v1782_v46, %v4666_v63 }
 0xe7f   :  { %v1785_v19 = vmax.f32 %v1784_v6, 0.0 }
 0xe81   :  { %v1786_v58 = vsel %vm1453_vm3, %v1785_v19, -inf }
 0xe82   :  { %1787 = vmax.xlane.f32.xlu1 %v1786_v58 }
 0xe86   :  { %1773 = vmax.xlane.f32.xlu1 %v1772_v24 }
 0xf0f   :  { %v1788_v47 = vpop.xlane.xlu1 %1787 }
 0xf10   :  { %v1789_v41 = vsub.f32 %v1785_v19, %v1788_v47 }
 0xf12   :  { %v1790_v8 = vmul.f32 1.442695, %v1789_v41 }
 0xf13   :  { %v1774_v51 = vpop.xlane.xlu1 %1773 }
 0xf14   :  { %4043 = vpow2.f32 %v1790_v8  ;;  %vm1775_vm7 = vcmp.eq.f32.partialorder %v4788_v59, %v1774_v51 }
 0xf15   :  { %v3492_v2 = vsel %vm1775_vm7, 1.0, %v5305_v12 }
 0xf16   :  { %v1778_v49 = vpack.c.bf16 %v3492_v2, %v3492_v2 }
 0xf1e   :  { %v4044_v40 = vpop.eup %4043 }
 0xf1f   :  { %v1792_v21 = vsel %vm1453_vm3, %v4044_v40, 0.0 }
 0xf20   :  { %1793 = vadd.xlane.f32.xlu0 %v1792_v21 }
 0xfad   :  { %v1794_v27 = vpop.xlane.xlu0 %1793 }
 0xfae   :  { %4045 = vrcp.f32 %v1794_v27 }
 0xfb8   :  { %v4046_v43 = vpop.eup %4045 }
 0xfb9   :  { %v1796_v10 = vmul.f32 %v4046_v43, %v4044_v40 }
 0xfbb   :  { %1804 = vperm.xlu0 %3865, %v1796_v10   ;;  %1799 = vperm.xlu1 %3864, %v1796_v10  }
 0xfbf   :  { %3866 = vset.pattern.permute.xlu1 %v5301_v3  ;;  %3873 = vset.pattern.permute.xlu0 %v5303_v4 }
 0xfc0   :  { %1810 = vperm.xlu1 %3866, %v1796_v10  }
 0xfc4   :  { %3867 = vset.pattern.permute.xlu1 %v5299_v33 }
 0xfc5   :  { %1816 = vperm.xlu1 %3867, %v1796_v10  }
 0xfc9   :  { %3868 = vset.pattern.permute.xlu1 %v5297_v1 }
 0xfca   :  { %1822 = vperm.xlu1 %3868, %v1796_v10  }
 0xfce   :  { %3869 = vset.pattern.permute.xlu1 %v5291_v0 }
 0xfcf   :  { %1828 = vperm.xlu1 %3869, %v1796_v10  }
 0xfd3   :  { %3870 = vset.pattern.permute.xlu1 %v5289_v57 }
 0xfd4   :  { %1834 = vperm.xlu1 %3870, %v1796_v10  }
 0xfd8   :  { %3871 = vset.pattern.permute.xlu1 %v5287_v36 }
 0xfd9   :  { %1840 = vperm.xlu1 %3871, %v1796_v10  }
 0xfdd   :  { %1847 = vrot.lane.b32.xlu1 %v1778_v49, %s4197_s6 }
 0xfde   :  { %3872 = vset.pattern.permute.xlu1 %v5295_v11 }
0x103a   :  { %v1800_v44 = vpop.permute.xlu1 %1799  ;;  %v1805_v6 = vpop.permute.xlu0 %1804 }
0x103b   :  { %v1807_v58 = vmul.f32 %v1805_v6, %v4481_v26  ;;  %v1802_v24 = vmul.f32 %v1800_v44, %v4456_v52 }
0x103d   :  { %v1808_v8 = vadd.f32 %v1807_v58, %v1802_v24 }
0x103f   :  { %v1811_v56 = vpop.permute.xlu1 %1810 }
0x1040   :  { %v1813_v47 = vmul.f32 %v1811_v56, %v4505_v61 }
0x1042   :  { %v1814_v21 = vadd.f32 %v1813_v47, %v1808_v8  ;;  %v1726_v47 = vadd.f32 %v4780_v13, %v4294_v17  ;;  %v1765_v13 = vadd.f32 %v4775_v54, %v4299_v20 }
0x1044   :  { %v1817_v46 = vpop.permute.xlu1 %1816 }
0x1045   :  { %v1819_v40 = vmul.f32 %v1817_v46, %v4529_v60 }
0x1047   :  { %v1820_v43 = vadd.f32 %v1819_v40, %v1814_v21 }
0x1049   :  { %v1823_v19 = vpop.permute.xlu1 %1822 }
0x104a   :  { %v1825_v27 = vmul.f32 %v1823_v19, %v4553_v38 }
0x104c   :  { %v1826_v2 = vadd.f32 %v1825_v27, %v1820_v43 }
0x104e   :  { %v1829_v41 = vpop.permute.xlu1 %1828 }
0x104f   :  { %v1831_v10 = vmul.f32 %v1829_v41, %v4577_v53 }
0x1051   :  { %v1832_v36 = vadd.f32 %v1831_v10, %v1826_v2 }
0x1053   :  { %v1835_v51 = vpop.permute.xlu1 %1834 }
0x1054   :  { %v1837_v49 = vmul.f32 %v1835_v51, %v4600_v29 }
0x1056   :  { %v1838_v57 = vadd.f32 %v1837_v49, %v1832_v36 }
0x1058   :  { %v1841_v6 = vpop.permute.xlu1 %1840 }
0x1059   :  { %v1843_v44 = vmul.f32 %v1841_v6, %v4641_v23 }
0x105b   :  { %v1844_v56 = vadd.f32 %v1843_v44, %v1838_v57 }
0x105c   :  { %v1848_v58 = vpop.permute.xlu1 %1847 }
0x105d   :  { %v1845_v0 = vpack.c.bf16 %v1844_v56, %v1844_v56 }
0x105f   :  { %v1851_v46 = vsel %vm400_vm10, %v1845_v0, %v1848_v58 }
0x1060   :  { %3493 = vmatmul.mubr.msk.bf16.vlgmr.msra.gmra.mrb[56].mxu0 %vm1580_vm5, %v1851_v46  ;;  %3725 = vmatmul.mubr.msk.bf16.vlgmr.msra.gmra.mrb[56].mxu1 %vm1580_vm5, %v1851_v46 }
0x1061   :  { %1961 = vmatpush1.bf16.msra.mxu0 %v4611_v30  ;;  %3729 = vmatpush3.bf16.msra.mxu1 %v4613_v35 }
0x1062   :  { %1962 = vmatprep.subr.bf16.mxu0 %v4618_v18  ;;  %3730 = vmatprep.subr.bf16.mxu1 %v5305_v12 }
0x1063   :  { %1992 = vmatprep.mubr.bf16.mxu0 %v5303_v4  ;;  %3732 = vmatprep.mubr.msk.bf16.mxu1 %vm4196_vm9, %v5305_v12 }
0x1065   :  { %1963 = vmatpush1.bf16.msra.mxu0 %v4621_v34  ;;  %3731 = vmatpush3.bf16.msra.mxu1 %v4623_v48 }
0x1066   :  { %2124 = vmatprep.subr.bf16.mxu0 %v4681_v5  ;;  %3736 = vmatprep.subr.bf16.mxu1 %v5305_v12 }
0x1133   :  { %v1888_v0 = vpop.f32.mrb[56].mxu0  ;;  %v1929_v57 = vpop.f32.mrb[56].mxu1 }
0x1134   :  { %v1889_v36 = vadd.f32 %v1888_v0, %v4743_v9  ;;  %v1890_v19 = vpop.f32.mrb[57].mxu0  ;;  %v3726_v24 = vpop.f32.mrb[57].mxu1  ;;  %v1930_v46 = vadd.f32 %v1929_v57, %v4289_v15 }
0x1135   :  { %v1891_v41 = vadd.f32 %v1890_v19, %v4285_v14  ;;  %v1892_v8 = vpop.f32.mrb[58].mxu0  ;;  %v1932_v40 = vpop.f32.mrb[58].mxu1 }
0x1136   :  { %v1935_v21 = vadd.f32 %v1889_v36, %v4778_v55  ;;  %v1893_v27 = vpop.f32.mrb[59].mxu0  ;;  %v3727_v43 = vpop.f32.mrb[59].mxu1 }
0x1137   :  { %v1942_v10 = vadd.f32 %v1891_v41, %v1726_v47 }
0x1138   :  { %v3495_v51 = vmul.f32 -1.442695, %v1935_v21 }
0x1139   :  { %v3496_v2 = vmul.f32 -1.442695, %v1942_v10 }
0x113a   :  { %4047 = vpow2.f32 %v3495_v51 }
0x113b   :  { %4049 = vpow2.f32 %v3496_v2 }
0x1144   :  { %v4048_v49 = vpop.eup %4047 }
0x1145   :  { %v1939_v6 = vadd.f32 1.0, %v4048_v49  ;;  %v4050_v44 = vpop.eup %4049 }
0x1146   :  { %v1946_v56 = vadd.f32 1.0, %v4050_v44 }
0x1147   :  { %4051 = vrcp.f32 %v1939_v6 }
0x1148   :  { %4053 = vrcp.f32 %v1946_v56 }
0x1151   :  { %v4052_v58 = vpop.eup %4051 }
0x1152   :  { %v1949_v0 = vmul.f32 %v4052_v58, %v1765_v13  ;;  %v4054_v36 = vpop.eup %4053 }
0x1153   :  { %v1952_v19 = vsub.f32 1.0, %v4054_v36  ;;  %v1954_v41 = vmul.f32 %v4054_v36, %v4754_v25 }
0x1154   :  { %v1950_v55 = vadd.f32 %v1949_v0, %v1930_v46 }
0x1156   :  { %4055 = vtanh.f32 %v1950_v55 }
0x1160   :  { %v4056_v24 = vpop.eup %4055 }
0x1161   :  { %v1953_v47 = vmul.f32 %v4056_v24, %v1952_v19 }
0x1163   :  { %v4835_v8 = vadd.f32 %v1954_v41, %v1953_v47  ;;  %v5311_v41 = vmov 5  }
0x1165   :  { %v1956_v40 = vpack.c.bf16 %v4835_v8, %v4835_v8 }
0x1167   :  { %3497 = vmatmul.mubr.msk.bf16.vlgmr.msra.gmra.mrb[60].mxu0 %vm400_vm10, %v1956_v40  ;;  %3733 = vmatmul.mubr.msk.bf16.vlgmr.msra.gmra.mrb[60].mxu1 %vm400_vm10, %v1956_v40 }
0x1168   :  { %2125 = vmatpush1.bf16.msra.mxu0 %v4685_v7  ;;  %3737 = vmatpush3.bf16.msra.mxu1 %v4687_v42 }
0x1169   :  { %2126 = vmatprep.subr.bf16.mxu0 %v4693_v22  ;;  %3738 = vmatprep.subr.bf16.mxu1 %v5305_v12 }
0x116a   :  { %2156 = vmatprep.mubr.bf16.mxu0 %v5303_v4  ;;  %3742 = vmatprep.mubr.msk.bf16.mxu1 %vm4196_vm9, %v5305_v12 }
0x116c   :  { %2127 = vmatpush1.bf16.msra.mxu0 %v4696_v45  ;;  %3739 = vmatpush3.bf16.msra.mxu1 %v4698_v31 }
0x116d   :  { %2128 = vmatprep.subr.bf16.mxu0 %v4704_v62  ;;  %3740 = vmatprep.subr.bf16.mxu1 %v5305_v12 }
0x1170   :  { %2129 = vmatpush1.bf16.msra.mxu0 %v4707_v39  ;;  %3741 = vmatpush3.bf16.msra.mxu1 %v4709_v50 }
0x1171   :  { %2230 = vmatprep.subr.bf16.mxu0 %v4609_v32  ;;  %3746 = vmatprep.subr.bf16.mxu1 %v5305_v12 }
0x123a   :  { %v1994_v25 = vpop.f32.mrb[60].mxu0  ;;  %v4856_v54 = vpop.f32.mrb[60].mxu1 }
0x123b   :  { %v4859_v57 = vadd.f32 %v1994_v25, %v4656_v37  ;;  %v4861_v21 = vpop.f32.mrb[61].mxu0  ;;  %v3734_v27 = vpop.f32.mrb[61].mxu1  ;;  %v5312_v25 = vmov 6  }
0x123c   :  { %v1998_v43 = vpop.f32.mrb[62].mxu0  ;;  %v2038_v10 = vpop.f32.mrb[62].mxu1 }
0x123d   :  { %v1999_v51 = vpop.f32.mrb[63].mxu0  ;;  %v3735_v2 = vpop.f32.mrb[63].mxu1  ;;  %2051 = vperm.xlu1 %3872, %v4859_v57   ;;  %v4869_v56 = vadd.f32 %v4859_v57, %v4638_v16  ;;  %v5313_v43 = vmov 7  }
0x123f   :  { %v2042_v13 = vsel %vm1771_vm6, %v4869_v56, -inf }
0x1241   :  { %3874 = vset.pattern.permute.xlu1 %v5293_v28 }
0x12bc   :  { %v2052_v32 = vpop.permute.xlu1 %2051 }
0x12bd   :  { %v2054_v49 = vadd.f32 %v2052_v32, %v4666_v63 }
0x12bf   :  { %v2055_v6 = vmax.f32 %v2054_v49, 0.0 }
0x12c1   :  { %v2056_v44 = vsel %vm1453_vm3, %v2055_v6, -inf }
0x12c2   :  { %2057 = vmax.xlane.f32.xlu1 %v2056_v44 }
0x12c6   :  { %2043 = vmax.xlane.f32.xlu1 %v2042_v13 }
0x134f   :  { %v2058_v58 = vpop.xlane.xlu1 %2057 }
0x1350   :  { %v2059_v46 = vsub.f32 %v2055_v6, %v2058_v58 }
0x1352   :  { %v2060_v0 = vmul.f32 1.442695, %v2059_v46 }
0x1353   :  { %v2044_v40 = vpop.xlane.xlu1 %2043 }
0x1354   :  { %4057 = vpow2.f32 %v2060_v0  ;;  %vm2045_vm8 = vcmp.eq.f32.partialorder %v4869_v56, %v2044_v40 }
0x1355   :  { %v3499_v27 = vsel %vm2045_vm8, 1.0, %v5305_v12 }
0x1356   :  { %v2048_v10 = vpack.c.bf16 %v3499_v27, %v3499_v27 }
0x135e   :  { %v4058_v55 = vpop.eup %4057 }
0x135f   :  { %v2062_v36 = vsel %vm1453_vm3, %v4058_v55, 0.0 }
0x1360   :  { %2063 = vadd.xlane.f32.xlu0 %v2062_v36 }
0x13ed   :  { %v2064_v19 = vpop.xlane.xlu0 %2063 }
0x13ee   :  { %4059 = vrcp.f32 %v2064_v19 }
0x13f8   :  { %v4060_v24 = vpop.eup %4059 }
0x13f9   :  { %v2066_v47 = vmul.f32 %v4060_v24, %v4058_v55 }
0x13fb   :  { %2069 = vperm.xlu0 %3873, %v2066_v47   ;;  %2074 = vperm.xlu1 %3874, %v2066_v47  }
0x13ff   :  { %3875 = vset.pattern.permute.xlu1 %v5301_v3  ;;  %3881 = vset.pattern.permute.xlu0 %v5295_v11 }
0x1400   :  { %2080 = vperm.xlu1 %3875, %v2066_v47  }
0x1404   :  { %3876 = vset.pattern.permute.xlu1 %v5299_v33 }
0x1405   :  { %2086 = vperm.xlu1 %3876, %v2066_v47  }
0x1409   :  { %3877 = vset.pattern.permute.xlu1 %v5297_v1 }
0x140a   :  { %2092 = vperm.xlu1 %3877, %v2066_v47  }
0x140e   :  { %3878 = vset.pattern.permute.xlu1 %v5311_v41 }
0x140f   :  { %2098 = vperm.xlu1 %3878, %v2066_v47  }
0x1413   :  { %3879 = vset.pattern.permute.xlu1 %v5312_v25 }
0x1414   :  { %2104 = vperm.xlu1 %3879, %v2066_v47  }
0x1418   :  { %3880 = vset.pattern.permute.xlu1 %v5313_v43 }
0x1419   :  { %2110 = vperm.xlu1 %3880, %v2066_v47  }
0x141d   :  { %2117 = vrot.lane.b32.xlu1 %v2048_v10, %s4197_s6 }
0x141e   :  { %3883 = vset.pattern.permute.xlu1 %v5293_v28 }
0x147a   :  { %v2075_v51 = vpop.permute.xlu1 %2074  ;;  %v2070_v49 = vpop.permute.xlu0 %2069 }
0x147b   :  { %v2072_v44 = vmul.f32 %v2070_v49, %v4456_v52  ;;  %v2077_v13 = vmul.f32 %v2075_v51, %v4481_v26 }
0x147d   :  { %v2078_v0 = vadd.f32 %v2077_v13, %v2072_v44 }
0x147f   :  { %v2081_v2 = vpop.permute.xlu1 %2080 }
0x1480   :  { %v2083_v58 = vmul.f32 %v2081_v2, %v4505_v61 }
0x1482   :  { %v2084_v36 = vadd.f32 %v2083_v58, %v2078_v0 }
0x1484   :  { %v2087_v32 = vpop.permute.xlu1 %2086 }
0x1485   :  { %v2089_v55 = vmul.f32 %v2087_v32, %v4529_v60 }
0x1487   :  { %v2090_v24 = vadd.f32 %v2089_v55, %v2084_v36 }
0x1489   :  { %v2093_v6 = vpop.permute.xlu1 %2092 }
0x148a   :  { %v2095_v19 = vmul.f32 %v2093_v6, %v4553_v38 }
0x148c   :  { %v2096_v27 = vadd.f32 %v2095_v19, %v2090_v24 }
0x148e   :  { %v2099_v46 = vpop.permute.xlu1 %2098 }
0x148f   :  { %v2101_v47 = vmul.f32 %v2099_v46, %v4577_v53 }
0x1491   :  { %v2102_v28 = vadd.f32 %v2101_v47, %v2096_v27 }
0x1493   :  { %v2105_v40 = vpop.permute.xlu1 %2104 }
0x1494   :  { %v2107_v10 = vmul.f32 %v2105_v40, %v4600_v29 }
0x1496   :  { %v2108_v11 = vadd.f32 %v2107_v10, %v2102_v28  ;;  %v1997_v28 = vadd.f32 %v4861_v21, %v4294_v17  ;;  %v2036_v21 = vadd.f32 %v4856_v54, %v4299_v20 }
0x1498   :  { %v2111_v49 = vpop.permute.xlu1 %2110 }
0x1499   :  { %v2113_v51 = vmul.f32 %v2111_v49, %v4641_v23 }
0x149b   :  { %v2114_v2 = vadd.f32 %v2113_v51, %v2108_v11 }
0x149c   :  { %v2118_v44 = vpop.permute.xlu1 %2117 }
0x149d   :  { %v2115_v1 = vpack.c.bf16 %v2114_v2, %v2114_v2 }
0x149f   :  { %v2121_v32 = vsel %vm400_vm10, %v2115_v1, %v2118_v44 }
0x14a0   :  { %3500 = vmatmul.mubr.msk.bf16.vlgmr.msra.gmra.mrb[64].mxu0 %vm1580_vm5, %v2121_v32  ;;  %3743 = vmatmul.mubr.msk.bf16.vlgmr.msra.gmra.mrb[64].mxu1 %vm1580_vm5, %v2121_v32 }
0x14a1   :  { %2231 = vmatpush1.bf16.msra.mxu0 %v4611_v30  ;;  %3747 = vmatpush3.bf16.msra.mxu1 %v4613_v35 }
0x14a2   :  { %2232 = vmatprep.subr.bf16.mxu0 %v4618_v18  ;;  %3748 = vmatprep.subr.bf16.mxu1 %v5305_v12 }
0x14a3   :  { %2262 = vmatprep.mubr.bf16.mxu0 %v5303_v4  ;;  %3750 = vmatprep.mubr.msk.bf16.mxu1 %vm4196_vm9, %v5305_v12 }
0x14a5   :  { %2233 = vmatpush1.bf16.msra.mxu0 %v4621_v34  ;;  %3749 = vmatpush3.bf16.msra.mxu1 %v4623_v48 }
0x14a6   :  { %2394 = vmatprep.subr.bf16.mxu0 %v4681_v5  ;;  %3754 = vmatprep.subr.bf16.mxu1 %v5305_v12 }
0x1573   :  { %v2158_v30 = vpop.f32.mrb[64].mxu0  ;;  %v2199_v11 = vpop.f32.mrb[64].mxu1 }
0x1574   :  { %v2159_v35 = vadd.f32 %v2158_v30, %v4743_v9  ;;  %v2160_v18 = vpop.f32.mrb[65].mxu0  ;;  %v3744_v1 = vpop.f32.mrb[65].mxu1  ;;  %v2200_v10 = vadd.f32 %v2199_v11, %v4289_v15 }
0x1575   :  { %v2161_v6 = vadd.f32 %v2160_v18, %v4285_v14  ;;  %v2162_v13 = vpop.f32.mrb[66].mxu0  ;;  %v2202_v58 = vpop.f32.mrb[66].mxu1 }
0x1576   :  { %v2205_v34 = vadd.f32 %v2159_v35, %v4859_v57  ;;  %v2163_v48 = vpop.f32.mrb[67].mxu0  ;;  %v3745_v46 = vpop.f32.mrb[67].mxu1 }
0x1577   :  { %v2212_v0 = vadd.f32 %v2161_v6, %v1997_v28 }
0x1578   :  { %v3502_v55 = vmul.f32 -1.442695, %v2205_v34 }
0x1579   :  { %v3503_v36 = vmul.f32 -1.442695, %v2212_v0 }
0x157a   :  { %4061 = vpow2.f32 %v3502_v55 }
0x157b   :  { %4063 = vpow2.f32 %v3503_v36 }
0x1584   :  { %v4062_v19 = vpop.eup %4061 }
0x1585   :  { %v2209_v24 = vadd.f32 1.0, %v4062_v19  ;;  %v4064_v47 = vpop.eup %4063 }
0x1586   :  { %v2216_v40 = vadd.f32 1.0, %v4064_v47 }
0x1587   :  { %4065 = vrcp.f32 %v2209_v24 }
0x1588   :  { %4067 = vrcp.f32 %v2216_v40 }
0x1591   :  { %v4066_v27 = vpop.eup %4065 }
0x1592   :  { %v2219_v49 = vmul.f32 %v4066_v27, %v2036_v21  ;;  %v4068_v51 = vpop.eup %4067  ;;  %v5314_v27 = vmov 4  }
0x1593   :  { %v2222_v2 = vsub.f32 1.0, %v4068_v51  ;;  %v2224_v30 = vmul.f32 %v4068_v51, %v4835_v8 }
0x1594   :  { %v2220_v57 = vadd.f32 %v2219_v49, %v2200_v10  ;;  %v5315_v10 = vmov 32  }
0x1596   :  { %4069 = vtanh.f32 %v2220_v57 }
0x15a0   :  { %v4070_v44 = vpop.eup %4069 }
0x15a1   :  { %v2223_v32 = vmul.f32 %v4070_v44, %v2222_v2 }
0x15a3   :  { %v4916_v35 = vadd.f32 %v2224_v30, %v2223_v32 }
0x15a5   :  { %v2226_v18 = vpack.c.bf16 %v4916_v35, %v4916_v35 }
0x15a7   :  { %3504 = vmatmul.mubr.msk.bf16.vlgmr.msra.gmra.mrb[68].mxu0 %vm400_vm10, %v2226_v18  ;;  %3751 = vmatmul.mubr.msk.bf16.vlgmr.msra.gmra.mrb[68].mxu1 %vm400_vm10, %v2226_v18 }
0x15a8   :  { %2395 = vmatpush1.bf16.msra.mxu0 %v4685_v7  ;;  %3755 = vmatpush3.bf16.msra.mxu1 %v4687_v42  ;;  %v4935_v7 = vld [vmem:[#allocation2 + $0x94] ss:$12 sps:$4 sm:$0xff]  }
0x15a9   :  { %2396 = vmatprep.subr.bf16.mxu0 %v4693_v22  ;;  %3756 = vmatprep.subr.bf16.mxu1 %v5305_v12 }
0x15aa   :  { %2426 = vmatprep.mubr.bf16.mxu0 %v5303_v4  ;;  %3760 = vmatprep.mubr.msk.bf16.mxu1 %vm4196_vm9, %v5305_v12 }
0x15ac   :  { %2397 = vmatpush1.bf16.msra.mxu0 %v4696_v45  ;;  %3757 = vmatpush3.bf16.msra.mxu1 %v4698_v31 }
0x15ad   :  { %2398 = vmatprep.subr.bf16.mxu0 %v4704_v62  ;;  %3758 = vmatprep.subr.bf16.mxu1 %v5305_v12 }
0x15b0   :  { %2399 = vmatpush1.bf16.msra.mxu0 %v4707_v39  ;;  %3759 = vmatpush3.bf16.msra.mxu1 %v4709_v50 }
0x15b1   :  { %2500 = vmatprep.subr.bf16.mxu0 %v4935_v7  ;;  %3764 = vmatprep.subr.bf16.mxu1 %v5305_v12 }
0x167a   :  { %v2264_v42 = vpop.f32.mrb[68].mxu0  ;;  %v4939_v22 = vpop.f32.mrb[68].mxu1 }
0x167b   :  { %v4942_v45 = vadd.f32 %v2264_v42, %v4656_v37  ;;  %v4944_v31 = vpop.f32.mrb[69].mxu0  ;;  %v3752_v62 = vpop.f32.mrb[69].mxu1 }
0x167c   :  { %v2268_v8 = vpop.f32.mrb[70].mxu0  ;;  %v2308_v54 = vpop.f32.mrb[70].mxu1 }
0x167d   :  { %v2269_v39 = vpop.f32.mrb[71].mxu0  ;;  %v3753_v11 = vpop.f32.mrb[71].mxu1  ;;  %2321 = vperm.xlu0 %3881, %v4942_v45   ;;  %v4952_v13 = vadd.f32 %v4942_v45, %v4638_v16 }
0x167f   :  { %v2312_v58 = vsel %vm1771_vm6, %v4952_v13, -inf }
0x1681   :  { %3882 = vset.pattern.permute.xlu0 %v5303_v4 }
0x16fc   :  { %v2322_v50 = vpop.permute.xlu0 %2321 }
0x16fd   :  { %v2324_v1 = vadd.f32 %v2322_v50, %v4666_v63 }
0x16ff   :  { %v2325_v28 = vmax.f32 %v2324_v1, 0.0 }
0x1701   :  { %v2326_v6 = vsel %vm1453_vm3, %v2325_v28, -inf }
0x1702   :  { %2327 = vmax.xlane.f32.xlu1 %v2326_v6 }
0x1706   :  { %2313 = vmax.xlane.f32.xlu1 %v2312_v58 }
0x178f   :  { %v2328_v34 = vpop.xlane.xlu1 %2327 }
0x1790   :  { %v2329_v48 = vsub.f32 %v2325_v28, %v2328_v34 }
0x1792   :  { %v2330_v46 = vmul.f32 1.442695, %v2329_v48 }
0x1793   :  { %v2314_v19 = vpop.xlane.xlu1 %2313 }
0x1794   :  { %4071 = vpow2.f32 %v2330_v46  ;;  %vm2315_vm11 = vcmp.eq.f32.partialorder %v4952_v13, %v2314_v19 }
0x1795   :  { %v3506_v40 = vsel %vm2315_vm11, 1.0, %v5305_v12 }
0x1796   :  { %v2318_v21 = vpack.c.bf16 %v3506_v40, %v3506_v40  ;;  %v4984_v40 = vld [vmem:[#allocation2 + $0xac] ss:$12 sps:$4 sm:$0xff]  }
0x179e   :  { %v4072_v0 = vpop.eup %4071 }
0x179f   :  { %v2332_v55 = vsel %vm1453_vm3, %v4072_v0, 0.0 }
0x17a0   :  { %2333 = vadd.xlane.f32.xlu0 %v2332_v55 }
0x182d   :  { %v2334_v36 = vpop.xlane.xlu0 %2333 }
0x182e   :  { %4073 = vrcp.f32 %v2334_v36 }
0x1838   :  { %v4074_v24 = vpop.eup %4073 }
0x1839   :  { %v2336_v47 = vmul.f32 %v4074_v24, %v4072_v0  ;;  %v4978_v24 = vld [vmem:[#allocation2 + $0x90] ss:$12 sps:$4 sm:$0xff]  }
0x183b   :  { %2339 = vperm.xlu0 %3882, %v2336_v47   ;;  %2344 = vperm.xlu1 %3883, %v2336_v47  }
0x183f   :  { %3884 = vset.pattern.permute.xlu1 %v5301_v3  ;;  %2387 = vrot.lane.b32.xlu0 %v2318_v21, %s4197_s6  ;;  %v4991_v21 = vld [vmem:[#allocation2 + $0xa8] ss:$12 sps:$4 sm:$0xff]  }
0x1840   :  { %2350 = vperm.xlu1 %3884, %v2336_v47  }
0x1844   :  { %3885 = vset.pattern.permute.xlu1 %v5299_v33 }
0x1845   :  { %2356 = vperm.xlu1 %3885, %v2336_v47  }
0x1849   :  { %3886 = vset.pattern.permute.xlu1 %v5314_v27 }
0x184a   :  { %2362 = vperm.xlu1 %3886, %v2336_v47  }
0x184e   :  { %3887 = vset.pattern.permute.xlu1 %v5311_v41 }
0x184f   :  { %2368 = vperm.xlu1 %3887, %v2336_v47  }
0x1853   :  { %3888 = vset.pattern.permute.xlu1 %v5312_v25 }
0x1854   :  { %2374 = vperm.xlu1 %3888, %v2336_v47  }
0x1858   :  { %3889 = vset.pattern.permute.xlu1 %v5313_v43 }
0x1859   :  { %2380 = vperm.xlu1 %3889, %v2336_v47   ;;  %v4981_v47 = vld [vmem:[#allocation2 + $0x98] ss:$12 sps:$4 sm:$0xff]  }
0x185d   :  { %3890 = vset.pattern.permute.xlu1 %v5315_v10 }
0x18ba   :  { %v2345_v49 = vpop.permute.xlu1 %2344  ;;  %v2340_v2 = vpop.permute.xlu0 %2339 }
0x18bb   :  { %v2342_v32 = vmul.f32 %v2340_v2, %v4456_v52  ;;  %v2347_v30 = vmul.f32 %v2345_v49, %v4481_v26  ;;  %v4994_v49 = vld [vmem:[#allocation2 + $0xb0] ss:$12 sps:$4 sm:$0xff]  }
0x18bd   :  { %v2348_v62 = vadd.f32 %v2347_v30, %v2342_v32  ;;  %v2267_v30 = vadd.f32 %v4944_v31, %v4294_v17  ;;  %v2306_v31 = vadd.f32 %v4939_v22, %v4299_v20  ;;  %v5014_v22 = vld [vmem:[#allocation2 + $0x48] ss:$12 sps:$4 sm:$0xff]  }
0x18be   :  { %v2388_v36 = vpop.permute.xlu0 %2387 }
0x18bf   :  { %v2351_v57 = vpop.permute.xlu1 %2350 }
0x18c0   :  { %v2353_v18 = vmul.f32 %v2351_v57, %v4505_v61 }
0x18c2   :  { %v2354_v54 = vadd.f32 %v2353_v18, %v2348_v62 }
0x18c4   :  { %v2357_v51 = vpop.permute.xlu1 %2356 }
0x18c5   :  { %v2359_v8 = vmul.f32 %v2357_v51, %v4529_v60 }
0x18c7   :  { %v2360_v11 = vadd.f32 %v2359_v8, %v2354_v54 }
0x18c9   :  { %v2363_v44 = vpop.permute.xlu1 %2362 }
0x18ca   :  { %v2365_v39 = vmul.f32 %v2363_v44, %v4553_v38 }
0x18cc   :  { %v2366_v28 = vadd.f32 %v2365_v39, %v2360_v11 }
0x18ce   :  { %v2369_v42 = vpop.permute.xlu1 %2368 }
0x18cf   :  { %v2371_v50 = vmul.f32 %v2369_v42, %v4577_v53 }
0x18d1   :  { %v2372_v58 = vadd.f32 %v2371_v50, %v2366_v28 }
0x18d3   :  { %v2375_v1 = vpop.permute.xlu1 %2374 }
0x18d4   :  { %v2377_v6 = vmul.f32 %v2375_v1, %v4600_v29 }
0x18d6   :  { %v2378_v48 = vadd.f32 %v2377_v6, %v2372_v58 }
0x18d8   :  { %v2381_v34 = vpop.permute.xlu1 %2380 }
0x18d9   :  { %v2383_v46 = vmul.f32 %v2381_v34, %v4641_v23 }
0x18db   :  { %v2384_v0 = vadd.f32 %v2383_v46, %v2378_v48 }
0x18dd   :  { %v2385_v55 = vpack.c.bf16 %v2384_v0, %v2384_v0 }
0x18df   :  { %v2391_v19 = vsel %vm400_vm10, %v2385_v55, %v2388_v36 }
0x18e0   :  { %3507 = vmatmul.mubr.msk.bf16.vlgmr.msra.gmra.mrb[72].mxu0 %vm1580_vm5, %v2391_v19  ;;  %3761 = vmatmul.mubr.msk.bf16.vlgmr.msra.gmra.mrb[72].mxu1 %vm1580_vm5, %v2391_v19 }
0x18e1   :  { %2501 = vmatpush1.bf16.msra.mxu0 %v4978_v24  ;;  %3765 = vmatpush3.bf16.msra.mxu1 %v4981_v47 }
0x18e2   :  { %2502 = vmatprep.subr.bf16.mxu0 %v4984_v40  ;;  %3766 = vmatprep.subr.bf16.mxu1 %v5305_v12 }
0x18e3   :  { %2532 = vmatprep.mubr.bf16.mxu0 %v5303_v4  ;;  %3768 = vmatprep.mubr.msk.bf16.mxu1 %vm4196_vm9, %v5305_v12 }
0x18e5   :  { %2503 = vmatpush1.bf16.msra.mxu0 %v4991_v21  ;;  %3767 = vmatpush3.bf16.msra.mxu1 %v4994_v49 }
0x18e6   :  { %2664 = vmatprep.subr.bf16.mxu0 %v4681_v5  ;;  %3772 = vmatprep.subr.bf16.mxu1 %v5305_v12 }
0x19b3   :  { %v2428_v57 = vpop.f32.mrb[72].mxu0  ;;  %v2469_v51 = vpop.f32.mrb[72].mxu1 }
0x19b4   :  { %v2429_v2 = vadd.f32 %v2428_v57, %v4743_v9  ;;  %v2430_v44 = vpop.f32.mrb[73].mxu0  ;;  %v3762_v32 = vpop.f32.mrb[73].mxu1  ;;  %v2470_v48 = vadd.f32 %v2469_v51, %v4289_v15  ;;  %v5017_v51 = vld [vmem:[#allocation2 + $0x50] ss:$12 sps:$4 sm:$0xff]  }
0x19b5   :  { %v2431_v18 = vadd.f32 %v2430_v44, %v4285_v14  ;;  %v2432_v42 = vpop.f32.mrb[74].mxu0  ;;  %v2472_v62 = vpop.f32.mrb[74].mxu1  ;;  %v5020_v32 = vld [vmem:[#allocation2 + $0x64] ss:$12 sps:$4 sm:$0xff]  }
0x19b6   :  { %v2475_v8 = vadd.f32 %v2429_v2, %v4942_v45  ;;  %v2433_v54 = vpop.f32.mrb[75].mxu0  ;;  %v3763_v39 = vpop.f32.mrb[75].mxu1  ;;  %v5037_v42 = vld [vmem:[#allocation2 + $0x78] ss:$12 sps:$4 sm:$0xff]   ;;  %v5040_v62 = vld [vmem:[#allocation2 + $0x80] ss:$12 sps:$4 sm:$0xff]  }
0x19b7   :  { %v2482_v5 = vadd.f32 %v2431_v18, %v2267_v30  ;;  %v5030_v30 = vld [vmem:[#allocation2 + $0x68] ss:$12 sps:$4 sm:$0xff]  }
0x19b8   :  { %v3509_v11 = vmul.f32 -1.442695, %v2475_v8  ;;  %v5033_v18 = vld [vmem:[#allocation2 + $0x7c] ss:$12 sps:$4 sm:$0xff]  }
0x19b9   :  { %v3510_v50 = vmul.f32 -1.442695, %v2482_v5 }
0x19ba   :  { %4075 = vpow2.f32 %v3509_v11 }
0x19bb   :  { %4077 = vpow2.f32 %v3510_v50 }
0x19c4   :  { %v4076_v1 = vpop.eup %4075 }
0x19c5   :  { %v2479_v28 = vadd.f32 1.0, %v4076_v1  ;;  %v4078_v6 = vpop.eup %4077 }
0x19c6   :  { %v2486_v58 = vadd.f32 1.0, %v4078_v6 }
0x19c7   :  { %4079 = vrcp.f32 %v2479_v28 }
0x19c8   :  { %4081 = vrcp.f32 %v2486_v58  ;;  %v5316_v58 = vmov 1  }
0x19d1   :  { %v4080_v34 = vpop.eup %4079 }
0x19d2   :  { %v2489_v46 = vmul.f32 %v4080_v34, %v2306_v31  ;;  %v4082_v0 = vpop.eup %4081 }
0x19d3   :  { %v2492_v55 = vsub.f32 1.0, %v4082_v0  ;;  %v2494_v57 = vmul.f32 %v4082_v0, %v4916_v35  ;;  %v5027_v35 = vld [vmem:[#allocation2 + $0x60] ss:$12 sps:$4 sm:$0xff]  }
0x19d4   :  { %v2490_v45 = vadd.f32 %v2489_v46, %v2470_v48 }
0x19d6   :  { %4083 = vtanh.f32 %v2490_v45 }
0x19e0   :  { %v4084_v36 = vpop.eup %4083 }
0x19e1   :  { %v2493_v19 = vmul.f32 %v4084_v36, %v2492_v55 }
0x19e3   :  { %v5008_v2 = vadd.f32 %v2494_v57, %v2493_v19 }
0x19e5   :  { %v2496_v44 = vpack.c.bf16 %v5008_v2, %v5008_v2 }
0x19e7   :  { %3511 = vmatmul.mubr.msk.bf16.vlgmr.msra.gmra.mrb[76].mxu0 %vm400_vm10, %v2496_v44  ;;  %3769 = vmatmul.mubr.msk.bf16.vlgmr.msra.gmra.mrb[76].mxu1 %vm400_vm10, %v2496_v44 }
0x19e8   :  { %2665 = vmatpush1.bf16.msra.mxu0 %v5014_v22  ;;  %3773 = vmatpush3.bf16.msra.mxu1 %v5017_v51 }
0x19e9   :  { %2666 = vmatprep.subr.bf16.mxu0 %v5020_v32  ;;  %3774 = vmatprep.subr.bf16.mxu1 %v5305_v12 }
0x19ea   :  { %2696 = vmatprep.mubr.bf16.mxu0 %v5303_v4  ;;  %3778 = vmatprep.mubr.msk.bf16.mxu1 %vm4196_vm9, %v5305_v12 }
0x19ec   :  { %2667 = vmatpush1.bf16.msra.mxu0 %v5027_v35  ;;  %3775 = vmatpush3.bf16.msra.mxu1 %v5030_v30 }
0x19ed   :  { %2668 = vmatprep.subr.bf16.mxu0 %v5033_v18  ;;  %3776 = vmatprep.subr.bf16.mxu1 %v5305_v12 }
0x19f0   :  { %2669 = vmatpush1.bf16.msra.mxu0 %v5037_v42  ;;  %3777 = vmatpush3.bf16.msra.mxu1 %v5040_v62 }
0x19f1   :  { %2770 = vmatprep.subr.bf16.mxu0 %v4935_v7  ;;  %3782 = vmatprep.subr.bf16.mxu1 %v5305_v12 }
0x1aba   :  { %v2534_v8 = vpop.f32.mrb[76].mxu0  ;;  %v5045_v54 = vpop.f32.mrb[76].mxu1 }
0x1abb   :  { %v5048_v39 = vadd.f32 %v2534_v8, %v4656_v37  ;;  %v5050_v5 = vpop.f32.mrb[77].mxu0  ;;  %v3770_v11 = vpop.f32.mrb[77].mxu1 }
0x1abc   :  { %v2538_v50 = vpop.f32.mrb[78].mxu0  ;;  %v2578_v1 = vpop.f32.mrb[78].mxu1 }
0x1abd   :  { %v2539_v28 = vpop.f32.mrb[79].mxu0  ;;  %v3771_v6 = vpop.f32.mrb[79].mxu1  ;;  %2591 = vperm.xlu1 %3890, %v5048_v39   ;;  %v5058_v45 = vadd.f32 %v5048_v39, %v4638_v16 }
0x1abf   :  { %v2582_v0 = vsel %vm1771_vm6, %v5058_v45, -inf }
0x1ac1   :  { %3891 = vset.pattern.permute.xlu1 %v5316_v58 }
0x1b3c   :  { %v2592_v31 = vpop.permute.xlu1 %2591 }
0x1b3d   :  { %v2594_v34 = vadd.f32 %v2592_v31, %v4666_v63 }
0x1b3f   :  { %v2595_v48 = vmax.f32 %v2594_v34, 0.0 }
0x1b41   :  { %v2596_v46 = vsel %vm1453_vm3, %v2595_v48, -inf }
0x1b42   :  { %2597 = vmax.xlane.f32.xlu0 %v2596_v46 }
0x1b46   :  { %2583 = vmax.xlane.f32.xlu0 %v2582_v0 }
0x1bcf   :  { %v2598_v55 = vpop.xlane.xlu0 %2597 }
0x1bd0   :  { %v2599_v36 = vsub.f32 %v2595_v48, %v2598_v55 }
0x1bd2   :  { %v2600_v19 = vmul.f32 1.442695, %v2599_v36 }
0x1bd3   :  { %v2584_v1 = vpop.xlane.xlu0 %2583 }
0x1bd4   :  { %4085 = vpow2.f32 %v2600_v19  ;;  %vm2585_vm12 = vcmp.eq.f32.partialorder %v5058_v45, %v2584_v1 }
0x1bd5   :  { %v3513_v28 = vsel %vm2585_vm12, 1.0, %v5305_v12 }
0x1bd6   :  { %v2588_v6 = vpack.c.bf16 %v3513_v28, %v3513_v28 }
0x1bde   :  { %v4086_v57 = vpop.eup %4085 }
0x1bdf   :  { %v2602_v44 = vsel %vm1453_vm3, %v4086_v57, 0.0 }
0x1be0   :  { %2603 = vadd.xlane.f32.xlu1 %v2602_v44 }
0x1c6d   :  { %v2604_v8 = vpop.xlane.xlu1 %2603 }
0x1c6e   :  { %4087 = vrcp.f32 %v2604_v8 }
0x1c78   :  { %v4088_v11 = vpop.eup %4087 }
0x1c79   :  { %v2606_v50 = vmul.f32 %v4088_v11, %v4086_v57 }
0x1c7b   :  { %2614 = vperm.xlu1 %3891, %v2606_v50   ;;  %2609 = vperm.xlu0 %3882, %v2606_v50  }
0x1c7f   :  { %3892 = vset.pattern.permute.xlu1 %v5301_v3  ;;  %3893 = vset.pattern.permute.xlu0 %v5299_v33 }
0x1c80   :  { %2620 = vperm.xlu1 %3892, %v2606_v50   ;;  %2626 = vperm.xlu0 %3893, %v2606_v50  }
0x1c84   :  { %3894 = vset.pattern.permute.xlu1 %v5314_v27  ;;  %3896 = vset.pattern.permute.xlu0 %v5312_v25 }
0x1c85   :  { %2632 = vperm.xlu1 %3894, %v2606_v50   ;;  %2644 = vperm.xlu0 %3896, %v2606_v50  }
0x1c89   :  { %3895 = vset.pattern.permute.xlu1 %v5311_v41  ;;  %3898 = vset.pattern.permute.xlu0 %v5315_v10 }
0x1c8a   :  { %2638 = vperm.xlu1 %3895, %v2606_v50  }
0x1c8e   :  { %3897 = vset.pattern.permute.xlu1 %v5313_v43 }
0x1c8f   :  { %2650 = vperm.xlu1 %3897, %v2606_v50  }
0x1c93   :  { %2657 = vrot.lane.b32.xlu1 %v2588_v6, %s4197_s6 }
0x1c94   :  { %3900 = vset.pattern.permute.xlu1 %v5316_v58 }
0x1cfa   :  { %v2615_v31 = vpop.permute.xlu1 %2614  ;;  %v2610_v34 = vpop.permute.xlu0 %2609 }
0x1cfb   :  { %v2617_v48 = vmul.f32 %v2615_v31, %v4481_v26  ;;  %v2612_v46 = vmul.f32 %v2610_v34, %v4456_v52 }
0x1cfd   :  { %v2618_v55 = vadd.f32 %v2617_v48, %v2612_v46 }
0x1cff   :  { %v2621_v0 = vpop.permute.xlu1 %2620  ;;  %v2627_v19 = vpop.permute.xlu0 %2626 }
0x1d00   :  { %v2623_v36 = vmul.f32 %v2621_v0, %v4505_v61  ;;  %v2629_v44 = vmul.f32 %v2627_v19, %v4529_v60 }
0x1d02   :  { %v2624_v57 = vadd.f32 %v2623_v36, %v2618_v55 }
0x1d04   :  { %v2633_v8 = vpop.permute.xlu1 %2632  ;;  %v2630_v11 = vadd.f32 %v2629_v44, %v2624_v57  ;;  %v2645_v1 = vpop.permute.xlu0 %2644 }
0x1d05   :  { %v2635_v50 = vmul.f32 %v2633_v8, %v4553_v38  ;;  %v2647_v31 = vmul.f32 %v2645_v1, %v4600_v29 }
0x1d07   :  { %v2636_v6 = vadd.f32 %v2635_v50, %v2630_v11  ;;  %v2537_v50 = vadd.f32 %v5050_v5, %v4294_v17  ;;  %v2576_v5 = vadd.f32 %v5045_v54, %v4299_v20 }
0x1d09   :  { %v2639_v28 = vpop.permute.xlu1 %2638 }
0x1d0a   :  { %v2641_v33 = vmul.f32 %v2639_v28, %v4577_v53 }
0x1d0c   :  { %v2642_v34 = vadd.f32 %v2641_v33, %v2636_v6 }
0x1d0e   :  { %v2651_v3 = vpop.permute.xlu1 %2650  ;;  %v2648_v48 = vadd.f32 %v2647_v31, %v2642_v34 }
0x1d0f   :  { %v2653_v46 = vmul.f32 %v2651_v3, %v4641_v23  ;;  %v5094_v3 = vld [vmem:[#allocation2 + $0x4c] ss:$12 sps:$4 sm:$0xff]  }
0x1d11   :  { %v2654_v0 = vadd.f32 %v2653_v46, %v2648_v48 }
0x1d12   :  { %v2658_v36 = vpop.permute.xlu1 %2657 }
0x1d13   :  { %v2655_v55 = vpack.c.bf16 %v2654_v0, %v2654_v0 }
0x1d15   :  { %v2661_v19 = vsel %vm400_vm10, %v2655_v55, %v2658_v36 }
0x1d16   :  { %3514 = vmatmul.mubr.msk.bf16.vlgmr.msra.gmra.mrb[80].mxu0 %vm1580_vm5, %v2661_v19  ;;  %3779 = vmatmul.mubr.msk.bf16.vlgmr.msra.gmra.mrb[80].mxu1 %vm1580_vm5, %v2661_v19 }
0x1d17   :  { %2771 = vmatpush1.bf16.msra.mxu0 %v4978_v24  ;;  %3783 = vmatpush3.bf16.msra.mxu1 %v4981_v47 }
0x1d18   :  { %2772 = vmatprep.subr.bf16.mxu0 %v4984_v40  ;;  %3784 = vmatprep.subr.bf16.mxu1 %v5305_v12 }
0x1d19   :  { %2802 = vmatprep.mubr.bf16.mxu0 %v5303_v4  ;;  %3786 = vmatprep.mubr.msk.bf16.mxu1 %vm4196_vm9, %v5305_v12 }
0x1d1b   :  { %2773 = vmatpush1.bf16.msra.mxu0 %v4991_v21  ;;  %3785 = vmatpush3.bf16.msra.mxu1 %v4994_v49 }
0x1d1c   :  { %2934 = vmatprep.subr.bf16.mxu0 %v5094_v3  ;;  %3790 = vmatprep.subr.bf16.mxu1 %v5305_v12 }
0x1de9   :  { %v2698_v33 = vpop.f32.mrb[80].mxu0  ;;  %v2739_v57 = vpop.f32.mrb[80].mxu1 }
0x1dea   :  { %v2699_v44 = vadd.f32 %v2698_v33, %v4743_v9  ;;  %v2700_v8 = vpop.f32.mrb[81].mxu0  ;;  %v3780_v11 = vpop.f32.mrb[81].mxu1 }
0x1deb   :  { %v2701_v1 = vadd.f32 %v2700_v8, %v4285_v14  ;;  %v2702_v28 = vpop.f32.mrb[82].mxu0  ;;  %v2742_v6 = vpop.f32.mrb[82].mxu1 }
0x1dec   :  { %v2745_v31 = vadd.f32 %v2699_v44, %v5048_v39  ;;  %v2703_v34 = vpop.f32.mrb[83].mxu0  ;;  %v3781_v48 = vpop.f32.mrb[83].mxu1  ;;  %v2740_v28 = vadd.f32 %v2739_v57, %v4289_v15 }
0x1ded   :  { %v2752_v46 = vadd.f32 %v2701_v1, %v2537_v50 }
0x1dee   :  { %v3516_v0 = vmul.f32 -1.442695, %v2745_v31 }
0x1def   :  { %v3517_v55 = vmul.f32 -1.442695, %v2752_v46 }
0x1df0   :  { %4089 = vpow2.f32 %v3516_v0 }
0x1df1   :  { %4091 = vpow2.f32 %v3517_v55 }
0x1dfa   :  { %v4090_v36 = vpop.eup %4089 }
0x1dfb   :  { %v2749_v19 = vadd.f32 1.0, %v4090_v36  ;;  %v4092_v33 = vpop.eup %4091 }
0x1dfc   :  { %v2756_v11 = vadd.f32 1.0, %v4092_v33 }
0x1dfd   :  { %4093 = vrcp.f32 %v2749_v19 }
0x1dfe   :  { %4095 = vrcp.f32 %v2756_v11 }
0x1e07   :  { %v4094_v8 = vpop.eup %4093 }
0x1e08   :  { %v2759_v6 = vmul.f32 %v4094_v8, %v2576_v5  ;;  %v4096_v44 = vpop.eup %4095 }
0x1e09   :  { %v2762_v50 = vsub.f32 1.0, %v4096_v44  ;;  %v2764_v34 = vmul.f32 %v4096_v44, %v5008_v2 }
0x1e0a   :  { %v2760_v39 = vadd.f32 %v2759_v6, %v2740_v28 }
0x1e0c   :  { %4097 = vtanh.f32 %v2760_v39 }
0x1e16   :  { %v4098_v1 = vpop.eup %4097 }
0x1e17   :  { %v2763_v31 = vmul.f32 %v4098_v1, %v2762_v50 }
0x1e19   :  { %v5107_v48 = vadd.f32 %v2764_v34, %v2763_v31 }
0x1e1b   :  { %v2766_v46 = vpack.c.bf16 %v5107_v48, %v5107_v48 }
0x1e1d   :  { %3518 = vmatmul.mubr.msk.bf16.vlgmr.msra.gmra.mrb[84].mxu0 %vm400_vm10, %v2766_v46  ;;  %3787 = vmatmul.mubr.msk.bf16.vlgmr.msra.gmra.mrb[84].mxu1 %vm400_vm10, %v2766_v46 }
0x1e1e   :  { %2935 = vmatpush1.bf16.msra.mxu0 %v5014_v22  ;;  %3791 = vmatpush3.bf16.msra.mxu1 %v5017_v51 }
0x1e1f   :  { %2936 = vmatprep.subr.bf16.mxu0 %v5020_v32  ;;  %3792 = vmatprep.subr.bf16.mxu1 %v5305_v12 }
0x1e20   :  { %2966 = vmatprep.mubr.bf16.mxu0 %v5303_v4  ;;  %3796 = vmatprep.mubr.msk.bf16.mxu1 %vm4196_vm9, %v5305_v12 }
0x1e22   :  { %2937 = vmatpush1.bf16.msra.mxu0 %v5027_v35  ;;  %3793 = vmatpush3.bf16.msra.mxu1 %v5030_v30 }
0x1e23   :  { %2938 = vmatprep.subr.bf16.mxu0 %v5033_v18  ;;  %3794 = vmatprep.subr.bf16.mxu1 %v5305_v12 }
0x1e26   :  { %2939 = vmatpush1.bf16.msra.mxu0 %v5037_v42  ;;  %3795 = vmatpush3.bf16.msra.mxu1 %v5040_v62 }
0x1e27   :  { %3040 = vmatprep.subr.bf16.mxu0 %v4935_v7  ;;  %3800 = vmatprep.subr.bf16.mxu1 %v5305_v12 }
0x1ef0   :  { %v2804_v2 = vpop.f32.mrb[84].mxu0  ;;  %v5128_v54 = vpop.f32.mrb[84].mxu1 }
0x1ef1   :  { %v5131_v57 = vadd.f32 %v2804_v2, %v4656_v37  ;;  %v5133_v0 = vpop.f32.mrb[85].mxu0  ;;  %v3788_v55 = vpop.f32.mrb[85].mxu1 }
0x1ef2   :  { %v2808_v36 = vpop.f32.mrb[86].mxu0  ;;  %v2848_v19 = vpop.f32.mrb[86].mxu1 }
0x1ef3   :  { %v2809_v33 = vpop.f32.mrb[87].mxu0  ;;  %v3789_v11 = vpop.f32.mrb[87].mxu1  ;;  %2861 = vperm.xlu0 %3898, %v5131_v57   ;;  %v5140_v28 = vadd.f32 %v5131_v57, %v4638_v16  ;;  %v5317_v36 = vmov 2   ;;  %v5318_v19 = vmov 3  }
0x1ef5   :  { %v2852_v39 = vsel %vm1771_vm6, %v5140_v28, -inf }
0x1ef7   :  { %3899 = vset.pattern.permute.xlu0 %v5303_v4 }
0x1f72   :  { %v2862_v7 = vpop.permute.xlu0 %2861 }
0x1f73   :  { %v2864_v5 = vadd.f32 %v2862_v7, %v4666_v63 }
0x1f75   :  { %v2865_v8 = vmax.f32 %v2864_v5, 0.0 }
0x1f77   :  { %v2866_v6 = vsel %vm1453_vm3, %v2865_v8, -inf }
0x1f78   :  { %2867 = vmax.xlane.f32.xlu1 %v2866_v6 }
0x1f7c   :  { %2853 = vmax.xlane.f32.xlu1 %v2852_v39 }
0x2005   :  { %v2868_v44 = vpop.xlane.xlu1 %2867 }
0x2006   :  { %v2869_v50 = vsub.f32 %v2865_v8, %v2868_v44 }
0x2008   :  { %v2870_v1 = vmul.f32 1.442695, %v2869_v50 }
0x2009   :  { %v2854_v33 = vpop.xlane.xlu1 %2853 }
0x200a   :  { %4099 = vpow2.f32 %v2870_v1  ;;  %vm2855_vm13 = vcmp.eq.f32.partialorder %v5140_v28, %v2854_v33 }
0x200b   :  { %v3520_v11 = vsel %vm2855_vm13, 1.0, %v5305_v12 }
0x2014   :  { %v4100_v31 = vpop.eup %4099 }
0x2015   :  { %v2872_v34 = vsel %vm1453_vm3, %v4100_v31, 0.0 }
0x2016   :  { %2873 = vadd.xlane.f32.xlu0 %v2872_v34 }
0x20a3   :  { %v2874_v46 = vpop.xlane.xlu0 %2873 }
0x20a4   :  { %4101 = vrcp.f32 %v2874_v46 }
0x20ae   :  { %v4102_v2 = vpop.eup %4101 }
0x20af   :  { %v2876_v55 = vmul.f32 %v4102_v2, %v4100_v31 }
0x20b1   :  { %2879 = vperm.xlu0 %3899, %v2876_v55   ;;  %2884 = vperm.xlu1 %3900, %v2876_v55  }
0x20b5   :  { %3901 = vset.pattern.permute.xlu1 %v5317_v36  ;;  %3907 = vset.pattern.permute.xlu0 %v5315_v10  ;;  %v2858_v10 = vpack.c.bf16 %v3520_v11, %v3520_v11 }
0x20b6   :  { %2890 = vperm.xlu1 %3901, %v2876_v55  }
0x20ba   :  { %3902 = vset.pattern.permute.xlu1 %v5318_v19 }
0x20bb   :  { %2896 = vperm.xlu1 %3902, %v2876_v55  }
0x20bf   :  { %3903 = vset.pattern.permute.xlu1 %v5314_v27 }
0x20c0   :  { %2902 = vperm.xlu1 %3903, %v2876_v55  }
0x20c4   :  { %3904 = vset.pattern.permute.xlu1 %v5311_v41 }
0x20c5   :  { %2908 = vperm.xlu1 %3904, %v2876_v55  }
0x20c9   :  { %3905 = vset.pattern.permute.xlu1 %v5312_v25 }
0x20ca   :  { %2914 = vperm.xlu1 %3905, %v2876_v55  }
0x20ce   :  { %3906 = vset.pattern.permute.xlu1 %v5313_v43 }
0x20cf   :  { %2920 = vperm.xlu1 %3906, %v2876_v55  }
0x20d3   :  { %2927 = vrot.lane.b32.xlu1 %v2858_v10, %s4197_s6 }
0x20d4   :  { %3909 = vset.pattern.permute.xlu1 %v5316_v58 }
0x2130   :  { %v2885_v7 = vpop.permute.xlu1 %2884  ;;  %v2880_v6 = vpop.permute.xlu0 %2879 }
0x2131   :  { %v2882_v44 = vmul.f32 %v2880_v6, %v4456_v52  ;;  %v2887_v50 = vmul.f32 %v2885_v7, %v4481_v26 }
0x2133   :  { %v2888_v34 = vadd.f32 %v2887_v50, %v2882_v44  ;;  %v2807_v50 = vadd.f32 %v5133_v0, %v4294_v17  ;;  %v2846_v0 = vadd.f32 %v5128_v54, %v4299_v20 }
0x2135   :  { %v2891_v5 = vpop.permute.xlu1 %2890 }
0x2136   :  { %v2893_v1 = vmul.f32 %v2891_v5, %v4505_v61 }
0x2138   :  { %v2894_v2 = vadd.f32 %v2893_v1, %v2888_v34 }
0x213a   :  { %v2897_v8 = vpop.permute.xlu1 %2896 }
0x213b   :  { %v2899_v46 = vmul.f32 %v2897_v8, %v4529_v60 }
0x213d   :  { %v2900_v33 = vadd.f32 %v2899_v46, %v2894_v2 }
0x213f   :  { %v2903_v39 = vpop.permute.xlu1 %2902 }
0x2140   :  { %v2905_v55 = vmul.f32 %v2903_v39, %v4553_v38  ;;  %v5319_v39 = vmov 0.0  }
0x2142   :  { %v2906_v10 = vadd.f32 %v2905_v55, %v2900_v33 }
0x2144   :  { %v2909_v31 = vpop.permute.xlu1 %2908 }
0x2145   :  { %v2911_v58 = vmul.f32 %v2909_v31, %v4577_v53 }
0x2147   :  { %v2912_v12 = vadd.f32 %v2911_v58, %v2906_v10 }
0x2149   :  { %v2915_v11 = vpop.permute.xlu1 %2914 }
0x214a   :  { %v2917_v4 = vmul.f32 %v2915_v11, %v4600_v29 }
0x214c   :  { %v2918_v52 = vadd.f32 %v2917_v4, %v2912_v12  ;;  %v5320_v4 = vmov 0  }
0x214e   :  { %v2921_v6 = vpop.permute.xlu1 %2920 }
0x214f   :  { %v2923_v7 = vmul.f32 %v2921_v6, %v4641_v23 }
0x2151   :  { %v2924_v5 = vadd.f32 %v2923_v7, %v2918_v52 }
0x2152   :  { %v2928_v44 = vpop.permute.xlu1 %2927 }
0x2153   :  { %v2925_v61 = vpack.c.bf16 %v2924_v5, %v2924_v5 }
0x2155   :  { %v2931_v8 = vsel %vm400_vm10, %v2925_v61, %v2928_v44 }
0x2156   :  { %3521 = vmatmul.mubr.msk.bf16.vlgmr.msra.gmra.mrb[88].mxu0 %vm1580_vm5, %v2931_v8  ;;  %3797 = vmatmul.mubr.msk.bf16.vlgmr.msra.gmra.mrb[88].mxu1 %vm1580_vm5, %v2931_v8 }
0x2157   :  { %3041 = vmatpush1.bf16.msra.mxu0 %v4978_v24  ;;  %3801 = vmatpush3.bf16.msra.mxu1 %v4981_v47 }
0x2158   :  { %3042 = vmatprep.subr.bf16.mxu0 %v4984_v40  ;;  %3802 = vmatprep.subr.bf16.mxu1 %v5319_v39 }
0x2159   :  { %3072 = vmatprep.mubr.bf16.mxu0 %v5320_v4  ;;  %3804 = vmatprep.mubr.msk.bf16.mxu1 %vm4196_vm9, %v5319_v39 }
0x215b   :  { %3043 = vmatpush1.bf16.msra.mxu0 %v4991_v21  ;;  %3803 = vmatpush3.bf16.msra.mxu1 %v4994_v49 }
0x215c   :  { %3204 = vmatprep.subr.bf16.mxu0 %v5094_v3  ;;  %3808 = vmatprep.subr.bf16.mxu1 %v5319_v39 }
0x2229   :  { %v2968_v12 = vpop.f32.mrb[88].mxu0  ;;  %v3009_v52 = vpop.f32.mrb[88].mxu1 }
0x222a   :  { %v2969_v61 = vadd.f32 %v2968_v12, %v4743_v9  ;;  %v2970_v47 = vpop.f32.mrb[89].mxu0  ;;  %v3798_v40 = vpop.f32.mrb[89].mxu1  ;;  %v3010_v5 = vadd.f32 %v3009_v52, %v4289_v15 }
0x222b   :  { %v2971_v1 = vadd.f32 %v2970_v47, %v4285_v14  ;;  %v2972_v31 = vpop.f32.mrb[90].mxu0  ;;  %v3012_v34 = vpop.f32.mrb[90].mxu1 }
0x222c   :  { %v3015_v46 = vadd.f32 %v2969_v61, %v5131_v57  ;;  %v2973_v49 = vpop.f32.mrb[91].mxu0  ;;  %v3799_v2 = vpop.f32.mrb[91].mxu1 }
0x222d   :  { %v3022_v3 = vadd.f32 %v2971_v1, %v2807_v50 }
0x222e   :  { %v3523_v55 = vmul.f32 -1.442695, %v3015_v46 }
0x222f   :  { %v3524_v33 = vmul.f32 -1.442695, %v3022_v3 }
0x2230   :  { %4103 = vpow2.f32 %v3523_v55 }
0x2231   :  { %4105 = vpow2.f32 %v3524_v33 }
0x223a   :  { %v4104_v58 = vpop.eup %4103 }
0x223b   :  { %v3019_v11 = vadd.f32 1.0, %v4104_v58  ;;  %v4106_v10 = vpop.eup %4105 }
0x223c   :  { %v3026_v6 = vadd.f32 1.0, %v4106_v10 }
0x223d   :  { %4107 = vrcp.f32 %v3019_v11 }
0x223e   :  { %4109 = vrcp.f32 %v3026_v6 }
0x2247   :  { %v4108_v7 = vpop.eup %4107 }
0x2248   :  { %v3029_v44 = vmul.f32 %v4108_v7, %v2846_v0  ;;  %v4110_v8 = vpop.eup %4109 }
0x2249   :  { %v3032_v12 = vsub.f32 1.0, %v4110_v8  ;;  %v3034_v40 = vmul.f32 %v4110_v8, %v5107_v48 }
0x224a   :  { %v3030_v57 = vadd.f32 %v3029_v44, %v3010_v5 }
0x224c   :  { %4111 = vtanh.f32 %v3030_v57 }
0x2256   :  { %v4112_v61 = vpop.eup %4111 }
0x2257   :  { %v3033_v47 = vmul.f32 %v4112_v61, %v3032_v12 }
0x2259   :  { %v5188_v50 = vadd.f32 %v3034_v40, %v3033_v47 }
0x225b   :  { %v3036_v1 = vpack.c.bf16 %v5188_v50, %v5188_v50 }
0x225d   :  { %3525 = vmatmul.mubr.msk.bf16.vlgmr.msra.gmra.mrb[92].mxu0 %vm400_vm10, %v3036_v1  ;;  %3805 = vmatmul.mubr.msk.bf16.vlgmr.msra.gmra.mrb[92].mxu1 %vm400_vm10, %v3036_v1 }
0x225e   :  { %3205 = vmatpush1.bf16.msra.mxu0 %v5014_v22  ;;  %3809 = vmatpush3.bf16.msra.mxu1 %v5017_v51 }
0x225f   :  { %3206 = vmatprep.subr.bf16.mxu0 %v5020_v32  ;;  %3810 = vmatprep.subr.bf16.mxu1 %v5319_v39 }
0x2260   :  { %3236 = vmatprep.mubr.bf16.mxu0 %v5320_v4  ;;  %3814 = vmatprep.mubr.msk.bf16.mxu1 %vm4196_vm9, %v5319_v39 }
0x2262   :  { %3207 = vmatpush1.bf16.msra.mxu0 %v5027_v35  ;;  %3811 = vmatpush3.bf16.msra.mxu1 %v5030_v30 }
0x2263   :  { %3208 = vmatprep.subr.bf16.mxu0 %v5033_v18  ;;  %3812 = vmatprep.subr.bf16.mxu1 %v5319_v39 }
0x2266   :  { %3209 = vmatpush1.bf16.msra.mxu0 %v5037_v42  ;;  %3813 = vmatpush3.bf16.msra.mxu1 %v5040_v62 }
0x2267   :  { %3818 = vmatprep.subr.bf16.mxu0 %v5319_v39 }
0x2330   :  { %v3074_v22 = vpop.f32.mrb[92].mxu0  ;;  %v5208_v51 = vpop.f32.mrb[92].mxu1 }
0x2331   :  { %v5211_v32 = vadd.f32 %v3074_v22, %v4656_v37  ;;  %v5213_v48 = vpop.f32.mrb[93].mxu0  ;;  %v3806_v35 = vpop.f32.mrb[93].mxu1 }
0x2332   :  { %v3078_v30 = vpop.f32.mrb[94].mxu0  ;;  %v3118_v54 = vpop.f32.mrb[94].mxu1 }
0x2333   :  { %v3079_v18 = vpop.f32.mrb[95].mxu0  ;;  %v3807_v52 = vpop.f32.mrb[95].mxu1  ;;  %3131 = vperm.xlu0 %3907, %v5211_v32   ;;  %v3121_v34 = vadd.f32 %v5211_v32, %v4638_v16 }
0x2335   :  { %v3122_v46 = vsel %vm1771_vm6, %v3121_v34, -inf }
0x2337   :  { %3908 = vset.pattern.permute.xlu0 %v5320_v4 }
0x23b2   :  { %v3132_v42 = vpop.permute.xlu0 %3131 }
0x23b3   :  { %v3134_v62 = vadd.f32 %v3132_v42, %v4666_v63 }
0x23b5   :  { %v3135_v31 = vmax.f32 %v3134_v62, 0.0 }
0x23b7   :  { %v3136_v37 = vsel %vm1453_vm3, %v3135_v31, -inf }
0x23b8   :  { %3137 = vmax.xlane.f32.xlu1 %v3136_v37 }
0x23bc   :  { %3123 = vmax.xlane.f32.xlu1 %v3122_v46  ;;  %v3077_v46 = vadd.f32 %v5213_v48, %v4294_v17  ;;  %v3116_v17 = vadd.f32 %v5208_v51, %v4299_v20 }
0x2445   :  { %v3138_v49 = vpop.xlane.xlu1 %3137 }
0x2446   :  { %v3139_v2 = vsub.f32 %v3135_v31, %v3138_v49 }
0x2448   :  { %v3140_v3 = vmul.f32 1.442695, %v3139_v2 }
0x2449   :  { %v3124_v63 = vpop.xlane.xlu1 %3123 }
0x244a   :  { %4113 = vpow2.f32 %v3140_v3  ;;  %vm3125_vm14 = vcmp.eq.f32.partialorder %v3121_v34, %v3124_v63 }
0x244b   :  { %v3527_v10 = vsel %vm3125_vm14, 1.0, %v5319_v39 }
0x244c   :  { %v3128_v6 = vpack.c.bf16 %v3527_v10, %v3527_v10 }
0x2454   :  { %v4114_v55 = vpop.eup %4113 }
0x2455   :  { %v3142_v4 = vsel %vm1453_vm3, %v4114_v55, 0.0 }
0x2456   :  { %3143 = vadd.xlane.f32.xlu0 %v3142_v4 }
0x24e3   :  { %v3144_v33 = vpop.xlane.xlu0 %3143 }
0x24e4   :  { %4115 = vrcp.f32 %v3144_v33 }
0x24ee   :  { %v4116_v58 = vpop.eup %4115 }
0x24ef   :  { %v3146_v11 = vmul.f32 %v4116_v58, %v4114_v55 }
0x24f1   :  { %3149 = vperm.xlu0 %3908, %v3146_v11   ;;  %3154 = vperm.xlu1 %3909, %v3146_v11  }
0x24f5   :  { %3910 = vset.pattern.permute.xlu1 %v5317_v36  ;;  %3197 = vrot.lane.b32.xlu0 %v3128_v6, %s4197_s6 }
0x24f6   :  { %3160 = vperm.xlu1 %3910, %v3146_v11   ;;  %3916 = vset.pattern.permute.xlu0 %v5313_v43 }
0x24f9   :  { %3309 = vrot.lane.b32.xlu0 %v4991_v21, %s4213_s2 }
0x24fa   :  { %3911 = vset.pattern.permute.xlu1 %v5318_v19  ;;  %v5321_v19 = vld [vmem:[#allocation8_spill] sm:$0xff] }
0x24fb   :  { %3166 = vperm.xlu1 %3911, %v3146_v11  }
0x24fd   :  { %3361 = vrot.lane.b32.xlu0 %v4788_v59, %s4213_s2 }
0x24ff   :  { %3912 = vset.pattern.permute.xlu1 %v5314_v27 }
0x2500   :  { %3172 = vperm.xlu1 %3912, %v3146_v11  }
0x2501   :  { %3369 = vrot.lane.b32.xlu0 %v4952_v13, %s4213_s2 }
0x2504   :  { %3913 = vset.pattern.permute.xlu1 %v5311_v41 }
0x2505   :  { %3178 = vperm.xlu1 %3913, %v3146_v11   ;;  %3377 = vrot.lane.b32.xlu0 %v5140_v28, %s4213_s2 }
0x2509   :  { %3914 = vset.pattern.permute.xlu1 %v5312_v25 }
0x250a   :  { %3184 = vperm.xlu1 %3914, %v3146_v11  }
0x250e   :  { %3915 = vset.pattern.permute.xlu1 %v5313_v43 }
0x250f   :  { %3190 = vperm.xlu1 %3915, %v3146_v11  }
0x2513   :  { %3307 = vrot.lane.b32.xlu1 %v4978_v24, %s4213_s2 }
0x2517   :  { %3314 = vrot.lane.b32.xlu1 %v4638_v16, %s4213_s2 }
0x251b   :  { %3365 = vrot.lane.b32.xlu1 %v4869_v56, %s4213_s2  ;;  %v5322_v56 = vld [vmem:[#allocation9_spill] sm:$0xff] }
0x251f   :  { %3373 = vrot.lane.b32.xlu1 %v5058_v45, %s4213_s2 }
0x2523   :  { %3381 = vrot.lane.b32.xlu1 %v3121_v34, %s4213_s2 }
0x2570   :  { %v3150_v59 = vpop.permute.xlu0 %3149  ;;  %v3155_v41 = vpop.permute.xlu1 %3154 }
0x2571   :  { %v3152_v24 = vmul.f32 %v3150_v59, %v5321_v19  ;;  %v3157_v16 = vmul.f32 %v3155_v41, %v4481_v26 }
0x2573   :  { %v3158_v5 = vadd.f32 %v3157_v16, %v3152_v24 }
0x2574   :  { %v3198_v13 = vpop.permute.xlu0 %3197 }
0x2575   :  { %v3161_v27 = vpop.permute.xlu1 %3160 }
0x2576   :  { %v3163_v45 = vmul.f32 %v3161_v27, %v5322_v56 }
0x2578   :  { %v3310_v21 = vpop.permute.xlu0 %3309  ;;  %v3164_v57 = vadd.f32 %v3163_v45, %v3158_v5 }
0x257a   :  { %v3167_v28 = vpop.permute.xlu1 %3166 }
0x257b   :  { %v3169_v44 = vmul.f32 %v3167_v28, %v4529_v60 }
0x257c   :  { %v3362_v25 = vpop.permute.xlu0 %3361 }
0x257d   :  { %3385 = vst.msk [vmem:[#allocation5 + $0x8] sm:$0xff] %vm205_vm0, %v3362_v25  ;;  %v3170_v12 = vadd.f32 %v3169_v44, %v3164_v57 }
0x257f   :  { %v3173_v43 = vpop.permute.xlu1 %3172 }
0x2580   :  { %v3370_v36 = vpop.permute.xlu0 %3369  ;;  %v3175_v8 = vmul.f32 %v3173_v43, %v4553_v38 }
0x2581   :  { %3387 = vst.msk [vmem:[#allocation5 + $0x18] sm:$0xff] %vm205_vm0, %v3370_v36 }
0x2582   :  { %v3176_v40 = vadd.f32 %v3175_v8, %v3170_v12 }
0x2584   :  { %v3378_v0 = vpop.permute.xlu0 %3377  ;;  %v3179_v7 = vpop.permute.xlu1 %3178 }
0x2585   :  { %3389 = vst.msk [vmem:[#allocation5 + $0x28] sm:$0xff] %vm205_vm0, %v3378_v0  ;;  %v3181_v61 = vmul.f32 %v3179_v7, %v4577_v53 }
0x2587   :  { %v3182_v1 = vadd.f32 %v3181_v61, %v3176_v40 }
0x2589   :  { %v3185_v47 = vpop.permute.xlu1 %3184 }
0x258a   :  { %v3187_v26 = vmul.f32 %v3185_v47, %v4600_v29 }
0x258c   :  { %v3188_v35 = vadd.f32 %v3187_v26, %v3182_v1 }
0x258e   :  { %v3191_v22 = vpop.permute.xlu1 %3190 }
0x258f   :  { %v3193_v30 = vmul.f32 %v3191_v22, %v4641_v23 }
0x2591   :  { %v3194_v54 = vadd.f32 %v3193_v30, %v3188_v35 }
0x2592   :  { %v3308_v18 = vpop.permute.xlu1 %3307 }
0x2593   :  { %v3195_v60 = vpack.c.bf16 %v3194_v54, %v3194_v54 }
0x2595   :  { %v3201_v52 = vsel %vm400_vm10, %v3195_v60, %v3198_v13 }
0x2596   :  { %3528 = vmatmul.mubr.msk.bf16.vlgmr.msra.gmra.mrb[96].mxu0 %vm1580_vm5, %v3201_v52  ;;  %3815 = vmatmul.mubr.msk.bf16.vlgmr.msra.gmra.mrb[96].mxu1 %vm1580_vm5, %v3201_v52  ;;  %v3315_v38 = vpop.permute.xlu1 %3314 }
0x2597   :  { %3819 = vmatpush3.bf16.msra.mxu0 %v3308_v18  ;;  %3822 = vmatprep.mubr.msk.bf16.mxu0 %vm4196_vm9, %v5319_v39 }
0x2598   :  { %3820 = vmatprep.subr.bf16.mxu0 %v5319_v39 }
0x259a   :  { %v3366_v53 = vpop.permute.xlu1 %3365 }
0x259b   :  { %3386 = vst.msk [vmem:[#allocation5 + $0x10] sm:$0xff] %vm205_vm0, %v3366_v53  ;;  %3821 = vmatpush3.bf16.msra.mxu0 %v3310_v21 }
0x259e   :  { %v3374_v29 = vpop.permute.xlu1 %3373 }
0x259f   :  { %3388 = vst.msk [vmem:[#allocation5 + $0x20] sm:$0xff] %vm205_vm0, %v3374_v29 }
0x25a2   :  { %v3382_v23 = vpop.permute.xlu1 %3381 }
0x25a3   :  { %3390 = vst.msk [vmem:[#allocation5 + $0x30] sm:$0xff] %vm205_vm0, %v3382_v23 }
0x2669   :  { %v3238_v42 = vpop.f32.mrb[96].mxu0  ;;  %v3279_v62 = vpop.f32.mrb[96].mxu1 }
0x266a   :  { %v3239_v31 = vadd.f32 %v3238_v42, %v4743_v9  ;;  %v3240_v34 = vpop.f32.mrb[97].mxu0  ;;  %v3816_v37 = vpop.f32.mrb[97].mxu1  ;;  %v3280_v48 = vadd.f32 %v3279_v62, %v4289_v15 }
0x266b   :  { %v3241_v39 = vadd.f32 %v3240_v34, %v4285_v14  ;;  %v3242_v49 = vpop.f32.mrb[98].mxu0  ;;  %v3282_v2 = vpop.f32.mrb[98].mxu1 }
0x266c   :  { %v3285_v3 = vadd.f32 %v3239_v31, %v5211_v32  ;;  %v3243_v55 = vpop.f32.mrb[99].mxu0  ;;  %v3817_v4 = vpop.f32.mrb[99].mxu1 }
0x266d   :  { %v3292_v33 = vadd.f32 %v3241_v39, %v3077_v46 }
0x266e   :  { %v3530_v63 = vmul.f32 -1.442695, %v3285_v3 }
0x266f   :  { %v3531_v58 = vmul.f32 -1.442695, %v3292_v33 }
0x2670   :  { %4117 = vpow2.f32 %v3530_v63 }
0x2671   :  { %4119 = vpow2.f32 %v3531_v58 }
0x267a   :  { %v4118_v11 = vpop.eup %4117 }
0x267b   :  { %v3289_v9 = vadd.f32 1.0, %v4118_v11  ;;  %v4120_v10 = vpop.eup %4119 }
0x267c   :  { %v3296_v6 = vadd.f32 1.0, %v4120_v10 }
0x267d   :  { %4121 = vrcp.f32 %v3289_v9 }
0x267e   :  { %4123 = vrcp.f32 %v3296_v6 }
0x2687   :  { %v4122_v14 = vpop.eup %4121 }
0x2688   :  { %v3299_v59 = vmul.f32 %v4122_v14, %v3116_v17  ;;  %v4124_v41 = vpop.eup %4123 }
0x2689   :  { %v3302_v13 = vsub.f32 1.0, %v4124_v41  ;;  %v3304_v28 = vmul.f32 %v4124_v41, %v5188_v50 }
0x268a   :  { %v3300_v32 = vadd.f32 %v3299_v59, %v3280_v48 }
0x268c   :  { %4125 = vtanh.f32 %v3300_v32 }
0x2696   :  { %v4126_v27 = vpop.eup %4125 }
0x2697   :  { %v3303_v21 = vmul.f32 %v4126_v27, %v3302_v13 }
0x2699   :  { %v3305_v25 = vadd.f32 %v3304_v28, %v3303_v21 }
0x269b   :  { %v3306_v43 = vpack.c.bf16 %v3305_v25, %v3305_v25 }
0x269d   :  { %3823 = vmatmul.mubr.msk.bf16.vlgmr.msra.gmra.mrb[100].mxu0 %vm400_vm10, %v3306_v43 }
0x2770   :  { %v3354_v20 = vpop.f32.mrb[100].mxu0 }
0x2771   :  { %v3355_v51 = vadd.f32 %v3354_v20, %v3315_v38  ;;  %v3824_v15 = vpop.f32.mrb[101].mxu0 }
0x2772   :  { %v3357_v36 = vpop.f32.mrb[102].mxu0 }
0x2773   :  { %3391 = vst.msk [vmem:[#allocation5 + $0x38] sm:$0xff] %vm205_vm0, %v3355_v51  ;;  %v3825_v19 = vpop.f32.mrb[103].mxu0 }
0x2774   :  { %4176 = shalt.err (!%p4173_p12)
}
0x2775   :  { %s4177_s23 = scalar_lea.hbm %s5286_s3, 1024 }
0x2776   :  { %p4178_p13 = scmp.ne.s32.totalorder %s5286_s3, %s4177_s23  ;;  %p4181_p0 = scmp.lt.u32.totalorder %s4177_s23, %s5286_s3 }
0x2778   :  { %p4183_p1 = pnand %p4181_p0, %p4178_p13 }
0x277a   :  { %4186 = shalt.err (!%p4183_p1)
}
0x277b   :  { %s4215_s27 = smov 128   ;;  %s4216_s28 = smov 8  }
0x277c   :  { %3403 = dma.vmem_to_hbm [thread:$0]  %s3398_s19, 1024, %s5286_s3, [#allocation4], %s4215_s27, %s4215_s27, %s4216_s28  }
0x277d   :  { %4189 = dma.done.wait [#allocation4], 1024  }
0x277e   :  { %4190 = vsyncadd [#allocation4], 4294966272 }
0x277f   :  { %3407 = vsyncpa [#allocation3], 1 }
0x2780   :  { %3408 = vsyncpa [#allocation4], 1 }

</bundles_post_ra>
